<compile_context>
chip_gen: v6e
topology: v6e:2x2x1
jax: 0.10.0
libtpu: 0.0.40
codegen_flags: <defaults>
</compile_context>

<pallas_src>
import functools
import math

import jax
import jax.numpy as jnp
from jax import lax
from jax.experimental import pallas as pl
from jax.experimental.pallas import tpu as pltpu

# ------------------------- configuration (small) -------------------------
IMAGE_SIZE = 32
PATCH_SIZE = 8          # => patchnum = 4, seq len L = 16
KERNEL_SIZE = 5         # padding_q/kv = 2 preserves spatial size
PATCH_STRIDE = 2        # conv+pool reduce patch by 4x (patch_dim match)
IN_CHANS = 3
BATCH = 2
DIM = 32                # embed_dim = dim // 8 = 4, patch_dim = 16
DEPTH = 2
HEADS = 4               # attention operates on 2*DIM = 64, d_head = 16
MLP_DIM = 32
NUM_CLASSES = 5
SPARSITY = 2            # top-k of routing, <= (patchnum/2)^2 = 4

BN_EPS = 1e-5
BN_SCALE = 1.0 / math.sqrt(1.0 + BN_EPS)   # eval-mode BN with init running stats
LN_EPS = 1e-5


def _round_up(x, m):
    return ((x + m - 1) // m) * m


# ============================= Pallas kernels =============================

def _fused_matmul_kernel(a_ref, b_ref, bias_ref, lnw_ref, lnb_ref, o_ref, *,
                         prenorm, has_bias, scale, activation, eps):
    """(tm, K) @ (K, N) with optional fused row-LayerNorm on A, bias, scalar scale
    and activation.  A is cast to bf16 for the MXU; accumulation in f32."""
    a = a_ref[...]
    if prenorm:
        a = a.astype(jnp.float32)
        mu = jnp.mean(a, axis=-1, keepdims=True)
        var = jnp.mean(jnp.square(a - mu), axis=-1, keepdims=True)
        a = (a - mu) * lax.rsqrt(var + eps) * lnw_ref[...] + lnb_ref[...]
    acc = jnp.dot(a.astype(b_ref.dtype), b_ref[...],
                  preferred_element_type=jnp.float32)
    if has_bias:
        acc = acc + bias_ref[...]
    if scale is not None:
        acc = acc * scale
    if activation == "relu":
        acc = jnp.maximum(acc, 0.0)
    o_ref[...] = acc.astype(o_ref.dtype)


def pallas_matmul(a, b, bias=None, scale=None, activation=None, prenorm=None):
    """a: (M, K) f32.  b: (K, N), cast to bf16.  Fused epilogues, no 128-padding:
    full-array blocks satisfy the (8,128) rule because block dims == array dims."""
    M, K = a.shape
    _, N = b.shape
    has_bias = bias is not None
    use_prenorm = prenorm is not None

    if use_prenorm:
        lnw, lnb = prenorm
        lnw = lnw.reshape(1, K).astype(jnp.float32)
        lnb = lnb.reshape(1, K).astype(jnp.float32)
        a_in = a.astype(jnp.float32)          # LN computed in f32 inside the kernel
    else:
        lnw = jnp.ones((1, K), jnp.float32)   # dummies (not read by the kernel)
        lnb = jnp.zeros((1, K), jnp.float32)
        a_in = a.astype(jnp.bfloat16)
    bias2 = (bias.reshape(1, N).astype(jnp.float32) if has_bias
             else jnp.zeros((1, N), jnp.float32))
    b_in = b.astype(jnp.bfloat16)

    # Every matmul in this model fits a single VMEM block; tile rows only if huge.
    if M <= 1024:
        tm, Mp = M, M
    else:
        tm = 256
        Mp = _round_up(M, tm)
        a_in = jnp.pad(a_in, ((0, Mp - M), (0, 0)))

    out = pl.pallas_call(
        functools.partial(_fused_matmul_kernel, prenorm=use_prenorm,
                          has_bias=has_bias, scale=scale,
                          activation=activation, eps=LN_EPS),
        out_shape=jax.ShapeDtypeStruct((Mp, N), jnp.float32),
        grid=(Mp // tm,),
        in_specs=[pl.BlockSpec((tm, K), lambda i: (i, 0)),
                  pl.BlockSpec((K, N), lambda i: (0, 0)),
                  pl.BlockSpec((1, N), lambda i: (0, 0)),
                  pl.BlockSpec((1, K), lambda i: (0, 0)),
                  pl.BlockSpec((1, K), lambda i: (0, 0))],
        out_specs=pl.BlockSpec((tm, N), lambda i: (i, 0)),
        compiler_params=pltpu.CompilerParams(
            dimension_semantics=("arbitrary",)),
    )(a_in, b_in, bias2, lnw, lnb)
    return out[:M] if Mp != M else out


def _attn_kernel(q_ref, k_ref, v_ref, o_ref, *, scale):
    # q: (g, W2, Dh)  k: (g, Dh, KW)  v: (g, KW, Dh)  -- all groups of this block at once
    s = jnp.einsum('gwd,gdk->gwk', q_ref[...], k_ref[...],
                   preferred_element_type=jnp.float32) * scale
    s = s - jnp.max(s, axis=-1, keepdims=True)          # stable softmax
    e = jnp.exp(s)
    p = e / jnp.sum(e, axis=-1, keepdims=True)
    o_ref[...] = jnp.einsum('gwk,gkd->gwd', p.astype(v_ref.dtype), v_ref[...],
                            preferred_element_type=jnp.float32).astype(o_ref.dtype)


def pallas_local_attention(q, k, v, scale):
    """q:(G,W2,Dh)  k:(G,Dh,KW)  v:(G,KW,Dh)  ->  (G,W2,Dh).
    All G groups are processed in (at most) 2 parallel grid steps (megacore-friendly)
    instead of G tiny steps."""
    G, W2, Dh = q.shape
    KW = k.shape[-1]
    gb = G // 2 if (G % 2 == 0 and G >= 2) else G
    return pl.pallas_call(
        functools.partial(_attn_kernel, scale=scale),
        out_shape=jax.ShapeDtypeStruct((G, W2, Dh), jnp.float32),
        grid=(G // gb,),
        in_specs=[pl.BlockSpec((gb, W2, Dh), lambda g: (g, 0, 0)),
                  pl.BlockSpec((gb, Dh, KW), lambda g: (g, 0, 0)),
                  pl.BlockSpec((gb, KW, Dh), lambda g: (g, 0, 0))],
        out_specs=pl.BlockSpec((gb, W2, Dh), lambda g: (g, 0, 0)),
        compiler_params=pltpu.CompilerParams(dimension_semantics=("parallel",)),
    )(q.astype(jnp.bfloat16), k.astype(jnp.bfloat16), v.astype(jnp.bfloat16))


def _ln_dwconv_qkv_kernel(x_ref, mask_ref, lnw_ref, lnb_ref,
                          wq_ref, wk_ref, wv_ref,
                          q_ref, k_ref, v_ref, *, K, eps, bn_scale):
    """Fused: LayerNorm (channel-last) -> three depthwise KxK convs (zero padding)
    -> eval-BN scale.  x_ref is the raw input, spatially zero-padded; mask zeroes the
    border again after LN so the conv's zero-padding semantics are preserved."""
    _, H, W, C = q_ref.shape
    x = x_ref[...].astype(jnp.float32)                       # (1, Hp, Wp, C)
    mu = jnp.mean(x, axis=-1, keepdims=True)
    var = jnp.mean(jnp.square(x - mu), axis=-1, keepdims=True)
    xn = (x - mu) * lax.rsqrt(var + eps) * lnw_ref[...] + lnb_ref[...]
    xn = xn * mask_ref[...]                                  # keep conv padding at zero
    accq = jnp.zeros((1, H, W, C), jnp.float32)
    acck = jnp.zeros((1, H, W, C), jnp.float32)
    accv = jnp.zeros((1, H, W, C), jnp.float32)
    for ki in range(K):
        for kj in range(K):
            win = xn[:, ki:ki + H, kj:kj + W, :]
            accq = accq + win * wq_ref[ki:ki + 1, kj:kj + 1, :]
            acck = acck + win * wk_ref[ki:ki + 1, kj:kj + 1, :]
            accv = accv + win * wv_ref[ki:ki + 1, kj:kj + 1, :]
    q_ref[...] = (accq * bn_scale).astype(q_ref.dtype)
    k_ref[...] = (acck * bn_scale).astype(k_ref.dtype)
    v_ref[...] = (accv * bn_scale).astype(v_ref.dtype)


def fused_ln_dwconv_qkv(x, lnw, lnb, wq, wk, wv, pad):
    """x: (b, L, C) raw (pre-LN).  Returns (q, k, v), each (b, L, C)."""
    b, L, C = x.shape
    h = int(math.sqrt(L))
    w = h
    K = wq.shape[0]
    Hp, Wp = h + 2 * pad, w + 2 * pad
    xs = x.reshape(b, h, w, C).astype(jnp.float32)
    xp = jnp.pad(xs, ((0, 0), (pad, pad), (pad, pad), (0, 0)))
    mask = jnp.pad(jnp.ones((1, h, w, 1), jnp.float32),
                   ((0, 0), (pad, pad), (pad, pad), (0, 0)))
    out_sd = jax.ShapeDtypeStruct((b, h, w, C), jnp.float32)
    q, k, v = pl.pallas_call(
        functools.partial(_ln_dwconv_qkv_kernel, K=K, eps=LN_EPS, bn_scale=BN_SCALE),
        out_shape=(out_sd, out_sd, out_sd),
        grid=(b,),
        in_specs=[pl.BlockSpec((1, Hp, Wp, C), lambda i: (i, 0, 0, 0)),
                  pl.BlockSpec((1, Hp, Wp, 1), lambda i: (0, 0, 0, 0)),
                  pl.BlockSpec((1, C), lambda i: (0, 0)),
                  pl.BlockSpec((1, C), lambda i: (0, 0)),
                  pl.BlockSpec((K, K, C), lambda i: (0, 0, 0)),
                  pl.BlockSpec((K, K, C), lambda i: (0, 0, 0)),
                  pl.BlockSpec((K, K, C), lambda i: (0, 0, 0))],
        out_specs=(pl.BlockSpec((1, h, w, C), lambda i: (i, 0, 0, 0)),
                   pl.BlockSpec((1, h, w, C), lambda i: (i, 0, 0, 0)),
                   pl.BlockSpec((1, h, w, C), lambda i: (i, 0, 0, 0))),
        compiler_params=pltpu.CompilerParams(dimension_semantics=("parallel",)),
    )(xp, mask, lnw.reshape(1, C).astype(jnp.float32),
      lnb.reshape(1, C).astype(jnp.float32),
      wq.astype(jnp.float32), wk.astype(jnp.float32), wv.astype(jnp.float32))
    return q.reshape(b, L, C), k.reshape(b, L, C), v.reshape(b, L, C)


def _upool_kernel(x_ref, w_ref, o_ref):
    """Fused Upool linear (no bias) -> F.normalize over tokens -> temp @ x."""
    x = x_ref[...].astype(jnp.float32)                       # (b, L, d)
    w = w_ref[...].astype(jnp.float32)                       # (1, d)
    t = jnp.sum(x * w, axis=-1, keepdims=True)               # (b, L, 1)
    nrm = jnp.sqrt(jnp.sum(t * t, axis=1, keepdims=True))    # (b, 1, 1)
    t = t / jnp.maximum(nrm, 1e-12)                          # F.normalize(dim=-1)
    o_ref[...] = jnp.sum(t * x, axis=1).astype(o_ref.dtype)  # (b, d)


def pallas_upool(x, w):
    b, L, d = x.shape
    return pl.pallas_call(
        _upool_kernel,
        out_shape=jax.ShapeDtypeStruct((b, d), jnp.float32),
        grid=(1,),
        in_specs=[pl.BlockSpec((b, L, d), lambda i: (0, 0, 0)),
                  pl.BlockSpec((1, d), lambda i: (0, 0))],
        out_specs=pl.BlockSpec((b, d), lambda i: (0, 0)),
        compiler_params=pltpu.CompilerParams(dimension_semantics=("arbitrary",)),
    )(x.astype(jnp.float32), w.astype(jnp.float32))


# ============================== JAX glue ops ==============================

def linear(x, w_t, b=None, **kw):
    """PyTorch Linear with a pre-transposed weight w_t: (in, out)."""
    shape = x.shape
    y = pallas_matmul(x.reshape(-1, shape[-1]), w_t, bias=b, **kw)
    return y.reshape(*shape[:-1], w_t.shape[1])


def conv2d_im2col(x, w_mat, ksize, stride, padding, pad_mode="zeros",
                  bias=None, scale=None):
    """Regular conv via im2col + fused Pallas matmul.
    x: (B, C, H, W)   w_mat: (C*k*k, O) pre-flattened/transposed weight."""
    B, C, H, W = x.shape
    k = ksize
    O = w_mat.shape[1]
    mode = "edge" if pad_mode == "replicate" else "constant"
    xp = jnp.pad(x, ((0, 0), (0, 0), (padding, padding), (padding, padding)), mode=mode)
    Hp, Wp = H + 2 * padding, W + 2 * padding
    Ho = (Hp - k) // stride + 1
    Wo = (Wp - k) // stride + 1
    cols = [xp[:, :, ki:ki + stride * (Ho - 1) + 1:stride,
                  kj:kj + stride * (Wo - 1) + 1:stride]
            for ki in range(k) for kj in range(k)]
    patches = jnp.stack(cols, axis=2)                        # (B, C, k*k, Ho, Wo)
    patches = patches.transpose(0, 3, 4, 1, 2).reshape(B * Ho * Wo, C * k * k)
    out = pallas_matmul(patches, w_mat, bias=bias, scale=scale)   # (B*Ho*Wo, O)
    return out.reshape(B, Ho, Wo, O).transpose(0, 3, 1, 2)


def max_pool2d(x, k=3, stride=2, padding=1):
    B, C, H, W = x.shape
    xp = jnp.pad(x, ((0, 0), (0, 0), (padding, padding), (padding, padding)),
                 constant_values=-jnp.inf)
    Hp, Wp = H + 2 * padding, W + 2 * padding
    Ho = (Hp - k) // stride + 1
    Wo = (Wp - k) // stride + 1
    out = jnp.full((B, C, Ho, Wo), -jnp.inf, x.dtype)
    for ki in range(k):
        for kj in range(k):
            out = jnp.maximum(out, xp[:, :, ki:ki + stride * (Ho - 1) + 1:stride,
                                         kj:kj + stride * (Wo - 1) + 1:stride])
    return out


# ----------------------------- module pieces ------------------------------

def conv_embed(x, w_mat, bias):
    """ConvEmbed: conv(replicate pad, +bias) -> BN(eval) -> GELU -> MaxPool.
    Bias and BN scale fused into the im2col matmul kernel."""
    y = conv2d_im2col(x, w_mat, KERNEL_SIZE, stride=PATCH_STRIDE, padding=1,
                      pad_mode="replicate", bias=bias, scale=BN_SCALE)
    y = jax.nn.gelu(y, approximate=False)    # exact (erf) GELU, XLA glue on tiny output
    y = max_pool2d(y, k=3, stride=PATCH_STRIDE, padding=1)
    return y


def _z_pool(x):
    return jnp.concatenate([jnp.max(x, axis=1, keepdims=True),
                            jnp.mean(x, axis=1, keepdims=True)], axis=1)


def _attention_gate(x, w_mat):
    xc = _z_pool(x)                                           # (B, 2, H, W)
    y = conv2d_im2col(xc, w_mat, 7, stride=1, padding=3, scale=BN_SCALE)  # (B,1,H,W)
    return x * jax.nn.sigmoid(y)


def triplet_attention(x, w_cw, w_hc, w_hw):
    o1 = _attention_gate(x.transpose(0, 2, 1, 3), w_cw).transpose(0, 2, 1, 3)
    o2 = _attention_gate(x.transpose(0, 3, 2, 1), w_hc).transpose(0, 3, 2, 1)
    o3 = _attention_gate(x, w_hw)
    return (o1 + o2 + o3) / 3.0


def attention_local(x, gen_adj, sparsity, lp):
    """PreNorm + Attention_local.forward; x is the raw residual-stream input (b, L, 2*DIM);
    the LayerNorm is fused into the q/k/v depthwise-conv kernel."""
    b, L, d = x.shape
    h = int(math.sqrt(L))
    w = h
    heads = HEADS
    dh = d // heads

    # fused LN1 -> depthwise conv -> BN(eval) for q, k, v (one kernel launch)
    q, k, v = fused_ln_dwconv_qkv(x, lp["ln1_w"], lp["ln1_b"],
                                  lp["dw_q"], lp["dw_k"], lp["dw_v"], pad=2)

    q = q.reshape(b, L, heads, dh).transpose(0, 2, 1, 3)
    k = k.reshape(b, L, heads, dh).transpose(0, 2, 1, 3)
    v = v.reshape(b, L, heads, dh).transpose(0, 2, 1, 3)
    kv = jnp.concatenate([k, v], axis=-1)                     # (b, heads, L, 2*dh)

    # TopkRouting (r_weight unused since KVGather mul_weight='none')
    _, topk_idx = lax.top_k(gen_adj, sparsity)                # (b, heads, P, topk)

    h2, w2 = h // 2, w // 2
    P = h2 * w2

    def to_pix(t):
        c = t.shape[-1]
        t = t.reshape(b * heads, h, w, c)
        t = t.reshape(b * heads, 2, h2, 2, w2, c).transpose(0, 2, 4, 1, 3, 5)
        return t.reshape(b * heads, P, 4, c)

    q_pix = to_pix(q)                                         # (b*heads, P, 4, dh)
    kv_pix = to_pix(kv)                                       # (b*heads, P, 4, 2*dh)

    r_idx = topk_idx.reshape(b * heads, P, sparsity)
    kv_sel = jax.vmap(lambda kvp, idx: kvp[idx])(kv_pix, r_idx)   # (b*heads, P, topk, 4, 2*dh)
    k_sel = kv_sel[..., :dh]
    v_sel = kv_sel[..., dh:]

    KW = sparsity * 4
    k_sel = k_sel.reshape(b, heads, P, sparsity, 4, dh).transpose(0, 2, 1, 5, 3, 4) \
                 .reshape(b * P, heads, dh, KW)
    v_sel = v_sel.reshape(b, heads, P, sparsity, 4, dh).transpose(0, 2, 1, 3, 4, 5) \
                 .reshape(b * P, heads, KW, dh)
    q_pix = q_pix.reshape(b, heads, P, 4, dh).transpose(0, 2, 1, 3, 4) \
                 .reshape(b * P, heads, 4, dh)

    scale = d ** (-0.5)          # faithful: Attention_local scale = (2*DIM) ** -0.5
    G = b * P * heads
    out = pallas_local_attention(q_pix.reshape(G, 4, dh),
                                 k_sel.reshape(G, dh, KW),
                                 v_sel.reshape(G, KW, dh), scale)    # (G, 4, dh)

    out = out.reshape(b, h2, w2, heads, 2, 2, dh)             # (n, h, w, m, i, j, c)
    out = out.transpose(0, 5, 1, 4, 2, 3, 6).reshape(b, h, w, heads * dh)
    return out.reshape(b, h * w, heads * dh)


def feed_forward(x, lp):
    """PreNorm(LN2) + Linear + bias + ReLU fused in one kernel, then Linear + bias."""
    b, L, d = x.shape
    x2 = x.reshape(b * L, d)
    hmid = pallas_matmul(x2, lp["ff_w1T"], bias=lp["ff_b1"], activation="relu",
                         prenorm=(lp["ln2_w"], lp["ln2_b"]))
    y = pallas_matmul(hmid, lp["ff_w2T"], bias=lp["ff_b2"])
    return y.reshape(b, L, -1)


def transformer_forward(params, img, x_pre, x_lowrank, noise, gen_adj, sparsity):
    p = PATCH_SIZE
    b, c, H, W = img.shape
    gh, gw = H // p, W // p
    patchnum = IMAGE_SIZE // PATCH_SIZE

    # 'b c (h p1) (w p2) -> (b h w) c p1 p2'
    x = img.reshape(b, c, gh, p, gw, p).transpose(0, 2, 4, 1, 3, 5).reshape(b * gh * gw, c, p, p)
    conv_img = conv_embed(x, params["conv_embed_mat"], params["conv_embed_b"])
    conv_img = conv_img.reshape(b, gh * gw, -1)               # '(b s) c p1 p2 -> b s (c p1 p2)'

    x = linear(conv_img, params["pte_wT"], params["pte_b"])   # (b, s, DIM)
    x = x.transpose(0, 2, 1).reshape(b, DIM, patchnum, patchnum)
    x = triplet_attention(x, params["tri_cw_mat"], params["tri_hc_mat"], params["tri_hw_mat"])
    x = x.reshape(b, DIM, patchnum * patchnum).transpose(0, 2, 1)
    x = jnp.concatenate([x, x_pre], axis=-1)                  # (b, L, 2*DIM)

    for lp in params["layers"]:
        x = attention_local(x, gen_adj, sparsity, lp) + x     # LN1 fused inside
        x = feed_forward(x, lp) + x                           # LN2 fused inside

    pooled = pallas_upool(x, params["upool_w"])               # (b, 2*DIM) fused pool
    return pooled.reshape(b, 1, 2 * DIM)


def vit_forward(params, img, x_pre, x_lowrank, noise, gen_adj, sparsity):
    x = transformer_forward(params, img, x_pre, x_lowrank, noise, gen_adj, sparsity)
    # PyTorch uses .squeeze(); axis=1 is equivalent here and keeps the batch dim if B==1.
    pred = jnp.squeeze(x, axis=1)                             # (b, 2*DIM)
    class_result = linear(pred, params["pred_wT"], params["pred_b"])   # (b, NUM_CLASSES)
    return pred, class_result


# ---------------------------- parameter init -----------------------------

def init_params(key):
    keys = iter(jax.random.split(key, 64))

    def nrm(shape, scale=0.02):
        return scale * jax.random.normal(next(keys), shape, jnp.float32)

    embed_dim = DIM // 8
    patch_dim = (PATCH_SIZE // 4) ** 2 * DIM // 8
    d2 = 2 * DIM
    params = {
        "conv_embed_w": nrm((embed_dim, IN_CHANS, KERNEL_SIZE, KERNEL_SIZE), 0.1),
        "conv_embed_b": nrm((embed_dim,), 0.1),
        "pte_w": nrm((DIM, patch_dim)),
        "pte_b": nrm((DIM,)),
        "tri_cw_w": nrm((1, 2, 7, 7), 0.1),
        "tri_hc_w": nrm((1, 2, 7, 7), 0.1),
        "tri_hw_w": nrm((1, 2, 7, 7), 0.1),
        "upool_w": nrm((1, d2)),
        "pred_w": nrm((NUM_CLASSES, d2)),
        "pred_b": nrm((NUM_CLASSES,)),
        "layers": [],
    }
    for _ in range(DEPTH):
        params["layers"].append({
            "ln1_w": jnp.ones((d2,), jnp.float32), "ln1_b": jnp.zeros((d2,), jnp.float32),
            "dw_q": nrm((d2, 1, KERNEL_SIZE, KERNEL_SIZE), 0.1),
            "dw_k": nrm((d2, 1, KERNEL_SIZE, KERNEL_SIZE), 0.1),
            "dw_v": nrm((d2, 1, KERNEL_SIZE, KERNEL_SIZE), 0.1),
            "ln2_w": jnp.ones((d2,), jnp.float32), "ln2_b": jnp.zeros((d2,), jnp.float32),
            "ff_w1": nrm((2 * MLP_DIM, d2)), "ff_b1": nrm((2 * MLP_DIM,)),
            "ff_w2": nrm((d2, 2 * MLP_DIM)), "ff_b2": nrm((d2,)),
        })
    return params


def prepare_params(raw):
    """One-time re-layout of PyTorch-convention weights into kernel-friendly form:
    Linear weights pre-transposed to (in, out) and cast to bf16 (f32 accumulation in
    the kernels), conv weights flattened into im2col matrices, depthwise weights to
    (K, K, C).  Avoids per-call W.T materialization and halves weight bytes moved."""
    def lin(w):      # (out, in) -> (in, out) bf16
        return jnp.asarray(w).T.astype(jnp.bfloat16)

    def convmat(w):  # (O, C, k, k) -> (C*k*k, O) bf16
        O = w.shape[0]
        return w.reshape(O, -1).T.astype(jnp.bfloat16)

    def dw(w):       # (C, 1, K, K) -> (K, K, C) f32
        return w[:, 0].transpose(1, 2, 0).astype(jnp.float32)

    p = {
        "conv_embed_mat": convmat(raw["conv_embed_w"]),
        "conv_embed_b": raw["conv_embed_b"],
        "pte_wT": lin(raw["pte_w"]), "pte_b": raw["pte_b"],
        "tri_cw_mat": convmat(raw["tri_cw_w"]),
        "tri_hc_mat": convmat(raw["tri_hc_w"]),
        "tri_hw_mat": convmat(raw["tri_hw_w"]),
        "upool_w": raw["upool_w"].astype(jnp.float32),
        "pred_wT": lin(raw["pred_w"]), "pred_b": raw["pred_b"],
        "layers": [],
    }
    for lp in raw["layers"]:
        p["layers"].append({
            "ln1_w": lp["ln1_w"], "ln1_b": lp["ln1_b"],
            "dw_q": dw(lp["dw_q"]), "dw_k": dw(lp["dw_k"]), "dw_v": dw(lp["dw_v"]),
            "ln2_w": lp["ln2_w"], "ln2_b": lp["ln2_b"],
            "ff_w1T": lin(lp["ff_w1"]), "ff_b1": lp["ff_b1"],
            "ff_w2T": lin(lp["ff_w2"]), "ff_b2": lp["ff_b2"],
        })
    return p


# ================================== main ==================================

if __name__ == "__main__":
    key = jax.random.PRNGKey(0)
    k_img, k_pre, k_lr, k_noise, k_adj, k_par = jax.random.split(key, 6)

    L = (IMAGE_SIZE // PATCH_SIZE) ** 2                      # 16 tokens
    P = (IMAGE_SIZE // PATCH_SIZE // 2) ** 2                 # 4 routing regions

    img = jax.random.normal(k_img, (BATCH, IN_CHANS, IMAGE_SIZE, IMAGE_SIZE), jnp.float32)
    x_pre = jax.random.normal(k_pre, (BATCH, L, DIM), jnp.float32)
    x_lowrank = jax.random.normal(k_lr, (BATCH, L, DIM), jnp.float32)   # unused by forward
    noise = jax.random.normal(k_noise, (BATCH, L, DIM), jnp.float32)    # unused by forward
    gen_adj = jax.random.normal(k_adj, (BATCH, HEADS, P, P), jnp.float32)

    params = prepare_params(init_params(k_par))

    fwd = jax.jit(vit_forward, static_argnums=(6,))
    pred, class_result = fwd(params, img, x_pre, x_lowrank, noise, gen_adj, SPARSITY)
    jax.block_until_ready((pred, class_result))

    assert pred.shape == (BATCH, 2 * DIM), pred.shape
    assert class_result.shape == (BATCH, NUM_CLASSES), class_result.shape
    assert bool(jnp.all(jnp.isfinite(pred))) and bool(jnp.all(jnp.isfinite(class_result)))
    print("KERNEL_OK")
</pallas_src>

<mosaic_0001>
module attributes {stable_mosaic.version = 11 : i64} {
  func.func @_fused_matmul_kernel(%arg0: i32, %arg1: memref<288x75xbf16, #tpu.memory_space<vmem>>, %arg2: memref<75x4xbf16, #tpu.memory_space<vmem>>, %arg3: memref<1x4xf32, #tpu.memory_space<vmem>>, %arg4: memref<1x75xf32, #tpu.memory_space<vmem>>, %arg5: memref<1x75xf32, #tpu.memory_space<vmem>>, %arg6: memref<288x4xf32, #tpu.memory_space<vmem>>) attributes {dimension_semantics = [#tpu.dimension_semantics<arbitrary>], iteration_bounds = array<i64: 1>, scalar_prefetch = 0 : i64, scratch_operands = 0 : i64, tpu.core_type = #tpu.core_type<tc>, window_params = [{transform_indices = @transform_0, window_bounds = array<i64: 288, 75>}, {pipeline_mode = #tpu.pipeline_mode<synchronous>, transform_indices = @transform_1, window_bounds = array<i64: 75, 4>}, {pipeline_mode = #tpu.pipeline_mode<synchronous>, transform_indices = @transform_2, window_bounds = array<i64: 1, 4>}, {pipeline_mode = #tpu.pipeline_mode<synchronous>, transform_indices = @transform_3, window_bounds = array<i64: 1, 75>}, {pipeline_mode = #tpu.pipeline_mode<synchronous>, transform_indices = @transform_4, window_bounds = array<i64: 1, 75>}, {transform_indices = @transform_5, window_bounds = array<i64: 288, 4>}]} {
    %c0 = arith.constant 0 : index
    %c0_0 = arith.constant 0 : index
    %0 = vector.load %arg1[%c0, %c0_0] : memref<288x75xbf16, #tpu.memory_space<vmem>>, vector<288x75xbf16>
    %c0_1 = arith.constant 0 : index
    %c0_2 = arith.constant 0 : index
    %1 = vector.load %arg2[%c0_1, %c0_2] : memref<75x4xbf16, #tpu.memory_space<vmem>>, vector<75x4xbf16>
    %cst = arith.constant dense<0.000000e+00> : vector<288x4xf32>
    %2 = tpu.matmul %0, %1, %cst {dimension_numbers = #tpu.dot_dimension_numbers<[1], [0], [0], [1], [0, 0, 1, 1], [], []>} : vector<288x75xbf16>, vector<75x4xbf16>, vector<288x4xf32> -> vector<288x4xf32>
    %c0_3 = arith.constant 0 : index
    %c0_4 = arith.constant 0 : index
    %3 = vector.load %arg3[%c0_3, %c0_4] : memref<1x4xf32, #tpu.memory_space<vmem>>, vector<1x4xf32>
    %4 = vector.broadcast %3 : vector<1x4xf32> to vector<288x4xf32>
    %5 = arith.addf %2, %4 : vector<288x4xf32>
    %cst_5 = arith.constant 0.999994993 : f32
    %6 = vector.broadcast %cst_5 : f32 to vector<288x4xf32>
    %7 = arith.mulf %5, %6 : vector<288x4xf32>
    %c0_6 = arith.constant 0 : index
    %c0_7 = arith.constant 0 : index
    %8 = vector.load %arg6[%c0_6, %c0_7] : memref<288x4xf32, #tpu.memory_space<vmem>>, vector<288x4xf32>
    tpu.vector_store %arg6[%c0_6, %c0_7], %7 {strides = array<i32>} : memref<288x4xf32, #tpu.memory_space<vmem>>, vector<288x4xf32>,
    return
  }
  func.func @transform_0(%arg0: i32) -> (i32, i32) {
    %c0_i32 = arith.constant 0 : i32
    %c0_i32_0 = arith.constant 0 : i32
    return %arg0, %c0_i32 : i32, i32
  }
  func.func @transform_1(%arg0: i32) -> (i32, i32) {
    %c0_i32 = arith.constant 0 : i32
    %c0_i32_0 = arith.constant 0 : i32
    %c0_i32_1 = arith.constant 0 : i32
    return %c0_i32, %c0_i32_0 : i32, i32
  }
  func.func @transform_2(%arg0: i32) -> (i32, i32) {
    %c0_i32 = arith.constant 0 : i32
    %c0_i32_0 = arith.constant 0 : i32
    %c0_i32_1 = arith.constant 0 : i32
    return %c0_i32, %c0_i32_0 : i32, i32
  }
  func.func @transform_3(%arg0: i32) -> (i32, i32) {
    %c0_i32 = arith.constant 0 : i32
    %c0_i32_0 = arith.constant 0 : i32
    %c0_i32_1 = arith.constant 0 : i32
    return %c0_i32, %c0_i32_0 : i32, i32
  }
  func.func @transform_4(%arg0: i32) -> (i32, i32) {
    %c0_i32 = arith.constant 0 : i32
    %c0_i32_0 = arith.constant 0 : i32
    %c0_i32_1 = arith.constant 0 : i32
    return %c0_i32, %c0_i32_0 : i32, i32
  }
  func.func @transform_5(%arg0: i32) -> (i32, i32) {
    %c0_i32 = arith.constant 0 : i32
    %c0_i32_0 = arith.constant 0 : i32
    return %arg0, %c0_i32 : i32, i32
  }
}

module attributes {stable_mosaic.version = 11 : i64} {
  func.func @_fused_matmul_kernel(%arg0: i32, %arg1: memref<32x16xbf16, #tpu.memory_space<vmem>>, %arg2: memref<16x32xbf16, #tpu.memory_space<vmem>>, %arg3: memref<1x32xf32, #tpu.memory_space<vmem>>, %arg4: memref<1x16xf32, #tpu.memory_space<vmem>>, %arg5: memref<1x16xf32, #tpu.memory_space<vmem>>, %arg6: memref<32x32xf32, #tpu.memory_space<vmem>>) attributes {dimension_semantics = [#tpu.dimension_semantics<arbitrary>], iteration_bounds = array<i64: 1>, scalar_prefetch = 0 : i64, scratch_operands = 0 : i64, tpu.core_type = #tpu.core_type<tc>, window_params = [{transform_indices = @transform_0, window_bounds = array<i64: 32, 16>}, {pipeline_mode = #tpu.pipeline_mode<synchronous>, transform_indices = @transform_1, window_bounds = array<i64: 16, 32>}, {pipeline_mode = #tpu.pipeline_mode<synchronous>, transform_indices = @transform_2, window_bounds = array<i64: 1, 32>}, {pipeline_mode = #tpu.pipeline_mode<synchronous>, transform_indices = @transform_3, window_bounds = array<i64: 1, 16>}, {pipeline_mode = #tpu.pipeline_mode<synchronous>, transform_indices = @transform_4, window_bounds = array<i64: 1, 16>}, {transform_indices = @transform_5, window_bounds = array<i64: 32, 32>}]} {
    %c0 = arith.constant 0 : index
    %c0_0 = arith.constant 0 : index
    %0 = vector.load %arg1[%c0, %c0_0] : memref<32x16xbf16, #tpu.memory_space<vmem>>, vector<32x16xbf16>
    %c0_1 = arith.constant 0 : index
    %c0_2 = arith.constant 0 : index
    %1 = vector.load %arg2[%c0_1, %c0_2] : memref<16x32xbf16, #tpu.memory_space<vmem>>, vector<16x32xbf16>
    %cst = arith.constant dense<0.000000e+00> : vector<32x32xf32>
    %2 = tpu.matmul %0, %1, %cst {dimension_numbers = #tpu.dot_dimension_numbers<[1], [0], [0], [1], [0, 0, 1, 1], [], []>} : vector<32x16xbf16>, vector<16x32xbf16>, vector<32x32xf32> -> vector<32x32xf32>
    %c0_3 = arith.constant 0 : index
    %c0_4 = arith.constant 0 : index
    %3 = vector.load %arg3[%c0_3, %c0_4] : memref<1x32xf32, #tpu.memory_space<vmem>>, vector<1x32xf32>
    %4 = vector.broadcast %3 : vector<1x32xf32> to vector<32x32xf32>
    %5 = arith.addf %2, %4 : vector<32x32xf32>
    %c0_5 = arith.constant 0 : index
    %c0_6 = arith.constant 0 : index
    %6 = vector.load %arg6[%c0_5, %c0_6] : memref<32x32xf32, #tpu.memory_space<vmem>>, vector<32x32xf32>
    tpu.vector_store %arg6[%c0_5, %c0_6], %5 {strides = array<i32>} : memref<32x32xf32, #tpu.memory_space<vmem>>, vector<32x32xf32>,
    return
  }
  func.func @transform_0(%arg0: i32) -> (i32, i32) {
    %c0_i32 = arith.constant 0 : i32
    %c0_i32_0 = arith.constant 0 : i32
    return %arg0, %c0_i32 : i32, i32
  }
  func.func @transform_1(%arg0: i32) -> (i32, i32) {
    %c0_i32 = arith.constant 0 : i32
    %c0_i32_0 = arith.constant 0 : i32
    %c0_i32_1 = arith.constant 0 : i32
    return %c0_i32, %c0_i32_0 : i32, i32
  }
  func.func @transform_2(%arg0: i32) -> (i32, i32) {
    %c0_i32 = arith.constant 0 : i32
    %c0_i32_0 = arith.constant 0 : i32
    %c0_i32_1 = arith.constant 0 : i32
    return %c0_i32, %c0_i32_0 : i32, i32
  }
  func.func @transform_3(%arg0: i32) -> (i32, i32) {
    %c0_i32 = arith.constant 0 : i32
    %c0_i32_0 = arith.constant 0 : i32
    %c0_i32_1 = arith.constant 0 : i32
    return %c0_i32, %c0_i32_0 : i32, i32
  }
  func.func @transform_4(%arg0: i32) -> (i32, i32) {
    %c0_i32 = arith.constant 0 : i32
    %c0_i32_0 = arith.constant 0 : i32
    %c0_i32_1 = arith.constant 0 : i32
    return %c0_i32, %c0_i32_0 : i32, i32
  }
  func.func @transform_5(%arg0: i32) -> (i32, i32) {
    %c0_i32 = arith.constant 0 : i32
    %c0_i32_0 = arith.constant 0 : i32
    return %arg0, %c0_i32 : i32, i32
  }
}

module attributes {stable_mosaic.version = 11 : i64} {
  func.func @_fused_matmul_kernel(%arg0: i32, %arg1: memref<32x98xbf16, #tpu.memory_space<vmem>>, %arg2: memref<98x1xbf16, #tpu.memory_space<vmem>>, %arg3: memref<1x1xf32, #tpu.memory_space<vmem>>, %arg4: memref<1x98xf32, #tpu.memory_space<vmem>>, %arg5: memref<1x98xf32, #tpu.memory_space<vmem>>, %arg6: memref<32x1xf32, #tpu.memory_space<vmem>>) attributes {dimension_semantics = [#tpu.dimension_semantics<arbitrary>], iteration_bounds = array<i64: 1>, scalar_prefetch = 0 : i64, scratch_operands = 0 : i64, tpu.core_type = #tpu.core_type<tc>, window_params = [{transform_indices = @transform_0, window_bounds = array<i64: 32, 98>}, {pipeline_mode = #tpu.pipeline_mode<synchronous>, transform_indices = @transform_1, window_bounds = array<i64: 98, 1>}, {pipeline_mode = #tpu.pipeline_mode<synchronous>, transform_indices = @transform_2, window_bounds = array<i64: 1, 1>}, {pipeline_mode = #tpu.pipeline_mode<synchronous>, transform_indices = @transform_3, window_bounds = array<i64: 1, 98>}, {pipeline_mode = #tpu.pipeline_mode<synchronous>, transform_indices = @transform_4, window_bounds = array<i64: 1, 98>}, {transform_indices = @transform_5, window_bounds = array<i64: 32, 1>}]} {
    %c0 = arith.constant 0 : index
    %c0_0 = arith.constant 0 : index
    %0 = vector.load %arg1[%c0, %c0_0] : memref<32x98xbf16, #tpu.memory_space<vmem>>, vector<32x98xbf16>
    %c0_1 = arith.constant 0 : index
    %c0_2 = arith.constant 0 : index
    %1 = vector.load %arg2[%c0_1, %c0_2] : memref<98x1xbf16, #tpu.memory_space<vmem>>, vector<98x1xbf16>
    %cst = arith.constant dense<0.000000e+00> : vector<32x1xf32>
    %2 = tpu.matmul %0, %1, %cst {dimension_numbers = #tpu.dot_dimension_numbers<[1], [0], [0], [1], [0, 0, 1, 1], [], []>} : vector<32x98xbf16>, vector<98x1xbf16>, vector<32x1xf32> -> vector<32x1xf32>
    %cst_3 = arith.constant 0.999994993 : f32
    %3 = vector.broadcast %cst_3 : f32 to vector<32x1xf32>
    %4 = arith.mulf %2, %3 : vector<32x1xf32>
    %c0_4 = arith.constant 0 : index
    %c0_5 = arith.constant 0 : index
    %5 = vector.load %arg6[%c0_4, %c0_5] : memref<32x1xf32, #tpu.memory_space<vmem>>, vector<32x1xf32>
    tpu.vector_store %arg6[%c0_4, %c0_5], %4 {strides = array<i32>} : memref<32x1xf32, #tpu.memory_space<vmem>>, vector<32x1xf32>,
    return
  }
  func.func @transform_0(%arg0: i32) -> (i32, i32) {
    %c0_i32 = arith.constant 0 : i32
    %c0_i32_0 = arith.constant 0 : i32
    return %arg0, %c0_i32 : i32, i32
  }
  func.func @transform_1(%arg0: i32) -> (i32, i32) {
    %c0_i32 = arith.constant 0 : i32
    %c0_i32_0 = arith.constant 0 : i32
    %c0_i32_1 = arith.constant 0 : i32
    return %c0_i32, %c0_i32_0 : i32, i32
  }
  func.func @transform_2(%arg0: i32) -> (i32, i32) {
    %c0_i32 = arith.constant 0 : i32
    %c0_i32_0 = arith.constant 0 : i32
    %c0_i32_1 = arith.constant 0 : i32
    return %c0_i32, %c0_i32_0 : i32, i32
  }
  func.func @transform_3(%arg0: i32) -> (i32, i32) {
    %c0_i32 = arith.constant 0 : i32
    %c0_i32_0 = arith.constant 0 : i32
    %c0_i32_1 = arith.constant 0 : i32
    return %c0_i32, %c0_i32_0 : i32, i32
  }
  func.func @transform_4(%arg0: i32) -> (i32, i32) {
    %c0_i32 = arith.constant 0 : i32
    %c0_i32_0 = arith.constant 0 : i32
    %c0_i32_1 = arith.constant 0 : i32
    return %c0_i32, %c0_i32_0 : i32, i32
  }
  func.func @transform_5(%arg0: i32) -> (i32, i32) {
    %c0_i32 = arith.constant 0 : i32
    %c0_i32_0 = arith.constant 0 : i32
    return %arg0, %c0_i32 : i32, i32
  }
}

module attributes {stable_mosaic.version = 11 : i64} {
  func.func @_fused_matmul_kernel(%arg0: i32, %arg1: memref<256x98xbf16, #tpu.memory_space<vmem>>, %arg2: memref<98x1xbf16, #tpu.memory_space<vmem>>, %arg3: memref<1x1xf32, #tpu.memory_space<vmem>>, %arg4: memref<1x98xf32, #tpu.memory_space<vmem>>, %arg5: memref<1x98xf32, #tpu.memory_space<vmem>>, %arg6: memref<256x1xf32, #tpu.memory_space<vmem>>) attributes {dimension_semantics = [#tpu.dimension_semantics<arbitrary>], iteration_bounds = array<i64: 1>, scalar_prefetch = 0 : i64, scratch_operands = 0 : i64, tpu.core_type = #tpu.core_type<tc>, window_params = [{transform_indices = @transform_0, window_bounds = array<i64: 256, 98>}, {pipeline_mode = #tpu.pipeline_mode<synchronous>, transform_indices = @transform_1, window_bounds = array<i64: 98, 1>}, {pipeline_mode = #tpu.pipeline_mode<synchronous>, transform_indices = @transform_2, window_bounds = array<i64: 1, 1>}, {pipeline_mode = #tpu.pipeline_mode<synchronous>, transform_indices = @transform_3, window_bounds = array<i64: 1, 98>}, {pipeline_mode = #tpu.pipeline_mode<synchronous>, transform_indices = @transform_4, window_bounds = array<i64: 1, 98>}, {transform_indices = @transform_5, window_bounds = array<i64: 256, 1>}]} {
    %c0 = arith.constant 0 : index
    %c0_0 = arith.constant 0 : index
    %0 = vector.load %arg1[%c0, %c0_0] : memref<256x98xbf16, #tpu.memory_space<vmem>>, vector<256x98xbf16>
    %c0_1 = arith.constant 0 : index
    %c0_2 = arith.constant 0 : index
    %1 = vector.load %arg2[%c0_1, %c0_2] : memref<98x1xbf16, #tpu.memory_space<vmem>>, vector<98x1xbf16>
    %cst = arith.constant dense<0.000000e+00> : vector<256x1xf32>
    %2 = tpu.matmul %0, %1, %cst {dimension_numbers = #tpu.dot_dimension_numbers<[1], [0], [0], [1], [0, 0, 1, 1], [], []>} : vector<256x98xbf16>, vector<98x1xbf16>, vector<256x1xf32> -> vector<256x1xf32>
    %cst_3 = arith.constant 0.999994993 : f32
    %3 = vector.broadcast %cst_3 : f32 to vector<256x1xf32>
    %4 = arith.mulf %2, %3 : vector<256x1xf32>
    %c0_4 = arith.constant 0 : index
    %c0_5 = arith.constant 0 : index
    %5 = vector.load %arg6[%c0_4, %c0_5] : memref<256x1xf32, #tpu.memory_space<vmem>>, vector<256x1xf32>
    tpu.vector_store %arg6[%c0_4, %c0_5], %4 {strides = array<i32>} : memref<256x1xf32, #tpu.memory_space<vmem>>, vector<256x1xf32>,
    return
  }
  func.func @transform_0(%arg0: i32) -> (i32, i32) {
    %c0_i32 = arith.constant 0 : i32
    %c0_i32_0 = arith.constant 0 : i32
    return %arg0, %c0_i32 : i32, i32
  }
  func.func @transform_1(%arg0: i32) -> (i32, i32) {
    %c0_i32 = arith.constant 0 : i32
    %c0_i32_0 = arith.constant 0 : i32
    %c0_i32_1 = arith.constant 0 : i32
    return %c0_i32, %c0_i32_0 : i32, i32
  }
  func.func @transform_2(%arg0: i32) -> (i32, i32) {
    %c0_i32 = arith.constant 0 : i32
    %c0_i32_0 = arith.constant 0 : i32
    %c0_i32_1 = arith.constant 0 : i32
    return %c0_i32, %c0_i32_0 : i32, i32
  }
  func.func @transform_3(%arg0: i32) -> (i32, i32) {
    %c0_i32 = arith.constant 0 : i32
    %c0_i32_0 = arith.constant 0 : i32
    %c0_i32_1 = arith.constant 0 : i32
    return %c0_i32, %c0_i32_0 : i32, i32
  }
  func.func @transform_4(%arg0: i32) -> (i32, i32) {
    %c0_i32 = arith.constant 0 : i32
    %c0_i32_0 = arith.constant 0 : i32
    %c0_i32_1 = arith.constant 0 : i32
    return %c0_i32, %c0_i32_0 : i32, i32
  }
  func.func @transform_5(%arg0: i32) -> (i32, i32) {
    %c0_i32 = arith.constant 0 : i32
    %c0_i32_0 = arith.constant 0 : i32
    return %arg0, %c0_i32 : i32, i32
  }
}

module attributes {stable_mosaic.version = 11 : i64} {
  func.func @_ln_dwconv_qkv_kernel(%arg0: i32, %arg1: memref<1x8x8x64xf32, #tpu.memory_space<vmem>>, %arg2: memref<1x8x8x1xf32, #tpu.memory_space<vmem>>, %arg3: memref<1x64xf32, #tpu.memory_space<vmem>>, %arg4: memref<1x64xf32, #tpu.memory_space<vmem>>, %arg5: memref<5x5x64xf32, #tpu.memory_space<vmem>>, %arg6: memref<5x5x64xf32, #tpu.memory_space<vmem>>, %arg7: memref<5x5x64xf32, #tpu.memory_space<vmem>>, %arg8: memref<1x4x4x64xf32, #tpu.memory_space<vmem>>, %arg9: memref<1x4x4x64xf32, #tpu.memory_space<vmem>>, %arg10: memref<1x4x4x64xf32, #tpu.memory_space<vmem>>) attributes {dimension_semantics = [#tpu.dimension_semantics<parallel>], iteration_bounds = array<i64: 2>, scalar_prefetch = 0 : i64, scratch_operands = 0 : i64, tpu.core_type = #tpu.core_type<tc>, window_params = [{transform_indices = @transform_0, window_bounds = array<i64: 1, 8, 8, 64>}, {pipeline_mode = #tpu.pipeline_mode<synchronous>, transform_indices = @transform_1, window_bounds = array<i64: 1, 8, 8, 1>}, {pipeline_mode = #tpu.pipeline_mode<synchronous>, transform_indices = @transform_2, window_bounds = array<i64: 1, 64>}, {pipeline_mode = #tpu.pipeline_mode<synchronous>, transform_indices = @transform_3, window_bounds = array<i64: 1, 64>}, {pipeline_mode = #tpu.pipeline_mode<synchronous>, transform_indices = @transform_4, window_bounds = array<i64: 5, 5, 64>}, {pipeline_mode = #tpu.pipeline_mode<synchronous>, transform_indices = @transform_5, window_bounds = array<i64: 5, 5, 64>}, {pipeline_mode = #tpu.pipeline_mode<synchronous>, transform_indices = @transform_6, window_bounds = array<i64: 5, 5, 64>}, {transform_indices = @transform_7, window_bounds = array<i64: 1, 4, 4, 64>}, {transform_indices = @transform_8, window_bounds = array<i64: 1, 4, 4, 64>}, {transform_indices = @transform_9, window_bounds = array<i64: 1, 4, 4, 64>}]} {
    %c0 = arith.constant 0 : index
    %c0_0 = arith.constant 0 : index
    %c0_1 = arith.constant 0 : index
    %c0_2 = arith.constant 0 : index
    %0 = vector.load %arg1[%c0, %c0_0, %c0_1, %c0_2] : memref<1x8x8x64xf32, #tpu.memory_space<vmem>>, vector<1x8x8x64xf32>
    %cst = arith.constant dense<0.000000e+00> : vector<1x8x8xf32>
    %1 = vector.multi_reduction <add>, %0, %cst [3] : vector<1x8x8x64xf32> to vector<1x8x8xf32>
    %2 = vector.shape_cast %1 : vector<1x8x8xf32> to vector<1x8x8x1xf32>
    %cst_3 = arith.constant 6.400000e+01 : f32
    %3 = vector.broadcast %cst_3 : f32 to vector<1x8x8x1xf32>
    %4 = arith.divf %2, %3 : vector<1x8x8x1xf32>
    %5 = vector.broadcast %4 : vector<1x8x8x1xf32> to vector<1x8x8x64xf32>
    %6 = arith.subf %0, %5 : vector<1x8x8x64xf32>
    %7 = arith.mulf %6, %6 : vector<1x8x8x64xf32>
    %cst_4 = arith.constant dense<0.000000e+00> : vector<1x8x8xf32>
    %8 = vector.multi_reduction <add>, %7, %cst_4 [3] : vector<1x8x8x64xf32> to vector<1x8x8xf32>
    %9 = vector.shape_cast %8 : vector<1x8x8xf32> to vector<1x8x8x1xf32>
    %cst_5 = arith.constant 6.400000e+01 : f32
    %10 = vector.broadcast %cst_5 : f32 to vector<1x8x8x1xf32>
    %11 = arith.divf %9, %10 : vector<1x8x8x1xf32>
    %12 = vector.broadcast %4 : vector<1x8x8x1xf32> to vector<1x8x8x64xf32>
    %13 = arith.subf %0, %12 : vector<1x8x8x64xf32>
    %cst_6 = arith.constant 9.99999974E-6 : f32
    %14 = vector.broadcast %cst_6 : f32 to vector<1x8x8x1xf32>
    %15 = arith.addf %11, %14 : vector<1x8x8x1xf32>
    %16 = math.rsqrt %15 : vector<1x8x8x1xf32>
    %17 = vector.broadcast %16 : vector<1x8x8x1xf32> to vector<1x8x8x64xf32>
    %18 = arith.mulf %13, %17 : vector<1x8x8x64xf32>
    %c0_7 = arith.constant 0 : index
    %c0_8 = arith.constant 0 : index
    %19 = vector.load %arg3[%c0_7, %c0_8] : memref<1x64xf32, #tpu.memory_space<vmem>>, vector<1x64xf32>
    %20 = vector.shape_cast %19 : vector<1x64xf32> to vector<1x1x1x64xf32>
    %21 = vector.broadcast %20 : vector<1x1x1x64xf32> to vector<1x8x8x64xf32>
    %22 = arith.mulf %18, %21 : vector<1x8x8x64xf32>
    %c0_9 = arith.constant 0 : index
    %c0_10 = arith.constant 0 : index
    %23 = vector.load %arg4[%c0_9, %c0_10] : memref<1x64xf32, #tpu.memory_space<vmem>>, vector<1x64xf32>
    %24 = vector.shape_cast %23 : vector<1x64xf32> to vector<1x1x1x64xf32>
    %25 = vector.broadcast %24 : vector<1x1x1x64xf32> to vector<1x8x8x64xf32>
    %26 = arith.addf %22, %25 : vector<1x8x8x64xf32>
    %c0_11 = arith.constant 0 : index
    %c0_12 = arith.constant 0 : index
    %c0_13 = arith.constant 0 : index
    %c0_14 = arith.constant 0 : index
    %27 = vector.load %arg2[%c0_11, %c0_12, %c0_13, %c0_14] : memref<1x8x8x1xf32, #tpu.memory_space<vmem>>, vector<1x8x8x1xf32>
    %28 = vector.broadcast %27 : vector<1x8x8x1xf32> to vector<1x8x8x64xf32>
    %29 = arith.mulf %26, %28 : vector<1x8x8x64xf32>
    %cst_15 = arith.constant 0.000000e+00 : f32
    %30 = vector.broadcast %cst_15 : f32 to vector<1x4x4x64xf32>
    %cst_16 = arith.constant 0.000000e+00 : f32
    %31 = vector.broadcast %cst_16 : f32 to vector<1x4x4x64xf32>
    %cst_17 = arith.constant 0.000000e+00 : f32
    %32 = vector.broadcast %cst_17 : f32 to vector<1x4x4x64xf32>
    %33 = vector.extract_strided_slice %29 {offsets = [0, 0, 0, 0], sizes = [1, 4, 4, 64], strides = [1, 1, 1, 1]} : vector<1x8x8x64xf32> to vector<1x4x4x64xf32>
    %c0_18 = arith.constant 0 : index
    %c0_19 = arith.constant 0 : index
    %c0_20 = arith.constant 0 : index
    %34 = vector.load %arg5[%c0_18, %c0_19, %c0_20] : memref<5x5x64xf32, #tpu.memory_space<vmem>>, vector<1x1x64xf32>
    %35 = vector.shape_cast %34 : vector<1x1x64xf32> to vector<1x1x1x64xf32>
    %36 = vector.broadcast %35 : vector<1x1x1x64xf32> to vector<1x4x4x64xf32>
    %37 = arith.mulf %33, %36 : vector<1x4x4x64xf32>
    %38 = arith.addf %30, %37 : vector<1x4x4x64xf32>
    %c0_21 = arith.constant 0 : index
    %c0_22 = arith.constant 0 : index
    %c0_23 = arith.constant 0 : index
    %39 = vector.load %arg6[%c0_21, %c0_22, %c0_23] : memref<5x5x64xf32, #tpu.memory_space<vmem>>, vector<1x1x64xf32>
    %40 = vector.shape_cast %39 : vector<1x1x64xf32> to vector<1x1x1x64xf32>
    %41 = vector.broadcast %40 : vector<1x1x1x64xf32> to vector<1x4x4x64xf32>
    %42 = arith.mulf %33, %41 : vector<1x4x4x64xf32>
    %43 = arith.addf %31, %42 : vector<1x4x4x64xf32>
    %c0_24 = arith.constant 0 : index
    %c0_25 = arith.constant 0 : index
    %c0_26 = arith.constant 0 : index
    %44 = vector.load %arg7[%c0_24, %c0_25, %c0_26] : memref<5x5x64xf32, #tpu.memory_space<vmem>>, vector<1x1x64xf32>
    %45 = vector.shape_cast %44 : vector<1x1x64xf32> to vector<1x1x1x64xf32>
    %46 = vector.broadcast %45 : vector<1x1x1x64xf32> to vector<1x4x4x64xf32>
    %47 = arith.mulf %33, %46 : vector<1x4x4x64xf32>
    %48 = arith.addf %32, %47 : vector<1x4x4x64xf32>
    %49 = vector.extract_strided_slice %29 {offsets = [0, 0, 1, 0], sizes = [1, 4, 4, 64], strides = [1, 1, 1, 1]} : vector<1x8x8x64xf32> to vector<1x4x4x64xf32>
    %c0_27 = arith.constant 0 : index
    %c1 = arith.constant 1 : index
    %c0_28 = arith.constant 0 : index
    %50 = vector.load %arg5[%c0_27, %c1, %c0_28] : memref<5x5x64xf32, #tpu.memory_space<vmem>>, vector<1x1x64xf32>
    %51 = vector.shape_cast %50 : vector<1x1x64xf32> to vector<1x1x1x64xf32>
    %52 = vector.broadcast %51 : vector<1x1x1x64xf32> to vector<1x4x4x64xf32>
    %53 = arith.mulf %49, %52 : vector<1x4x4x64xf32>
    %54 = arith.addf %38, %53 : vector<1x4x4x64xf32>
    %c0_29 = arith.constant 0 : index
    %c1_30 = arith.constant 1 : index
    %c0_31 = arith.constant 0 : index
    %55 = vector.load %arg6[%c0_29, %c1_30, %c0_31] : memref<5x5x64xf32, #tpu.memory_space<vmem>>, vector<1x1x64xf32>
    %56 = vector.shape_cast %55 : vector<1x1x64xf32> to vector<1x1x1x64xf32>
    %57 = vector.broadcast %56 : vector<1x1x1x64xf32> to vector<1x4x4x64xf32>
    %58 = arith.mulf %49, %57 : vector<1x4x4x64xf32>
    %59 = arith.addf %43, %58 : vector<1x4x4x64xf32>
    %c0_32 = arith.constant 0 : index
    %c1_33 = arith.constant 1 : index
    %c0_34 = arith.constant 0 : index
    %60 = vector.load %arg7[%c0_32, %c1_33, %c0_34] : memref<5x5x64xf32, #tpu.memory_space<vmem>>, vector<1x1x64xf32>
    %61 = vector.shape_cast %60 : vector<1x1x64xf32> to vector<1x1x1x64xf32>
    %62 = vector.broadcast %61 : vector<1x1x1x64xf32> to vector<1x4x4x64xf32>
    %63 = arith.mulf %49, %62 : vector<1x4x4x64xf32>
    %64 = arith.addf %48, %63 : vector<1x4x4x64xf32>
    %65 = vector.extract_strided_slice %29 {offsets = [0, 0, 2, 0], sizes = [1, 4, 4, 64], strides = [1, 1, 1, 1]} : vector<1x8x8x64xf32> to vector<1x4x4x64xf32>
    %c0_35 = arith.constant 0 : index
    %c2 = arith.constant 2 : index
    %c0_36 = arith.constant 0 : index
    %66 = vector.load %arg5[%c0_35, %c2, %c0_36] : memref<5x5x64xf32, #tpu.memory_space<vmem>>, vector<1x1x64xf32>
    %67 = vector.shape_cast %66 : vector<1x1x64xf32> to vector<1x1x1x64xf32>
    %68 = vector.broadcast %67 : vector<1x1x1x64xf32> to vector<1x4x4x64xf32>
    %69 = arith.mulf %65, %68 : vector<1x4x4x64xf32>
    %70 = arith.addf %54, %69 : vector<1x4x4x64xf32>
    %c0_37 = arith.constant 0 : index
    %c2_38 = arith.constant 2 : index
    %c0_39 = arith.constant 0 : index
    %71 = vector.load %arg6[%c0_37, %c2_38, %c0_39] : memref<5x5x64xf32, #tpu.memory_space<vmem>>, vector<1x1x64xf32>
    %72 = vector.shape_cast %71 : vector<1x1x64xf32> to vector<1x1x1x64xf32>
    %73 = vector.broadcast %72 : vector<1x1x1x64xf32> to vector<1x4x4x64xf32>
    %74 = arith.mulf %65, %73 : vector<1x4x4x64xf32>
    %75 = arith.addf %59, %74 : vector<1x4x4x64xf32>
    %c0_40 = arith.constant 0 : index
    %c2_41 = arith.constant 2 : index
    %c0_42 = arith.constant 0 : index
    %76 = vector.load %arg7[%c0_40, %c2_41, %c0_42] : memref<5x5x64xf32, #tpu.memory_space<vmem>>, vector<1x1x64xf32>
    %77 = vector.shape_cast %76 : vector<1x1x64xf32> to vector<1x1x1x64xf32>
    %78 = vector.broadcast %77 : vector<1x1x1x64xf32> to vector<1x4x4x64xf32>
    %79 = arith.mulf %65, %78 : vector<1x4x4x64xf32>
    %80 = arith.addf %64, %79 : vector<1x4x4x64xf32>
    %81 = vector.extract_strided_slice %29 {offsets = [0, 0, 3, 0], sizes = [1, 4, 4, 64], strides = [1, 1, 1, 1]} : vector<1x8x8x64xf32> to vector<1x4x4x64xf32>
    %c0_43 = arith.constant 0 : index
    %c3 = arith.constant 3 : index
    %c0_44 = arith.constant 0 : index
    %82 = vector.load %arg5[%c0_43, %c3, %c0_44] : memref<5x5x64xf32, #tpu.memory_space<vmem>>, vector<1x1x64xf32>
    %83 = vector.shape_cast %82 : vector<1x1x64xf32> to vector<1x1x1x64xf32>
    %84 = vector.broadcast %83 : vector<1x1x1x64xf32> to vector<1x4x4x64xf32>
    %85 = arith.mulf %81, %84 : vector<1x4x4x64xf32>
    %86 = arith.addf %70, %85 : vector<1x4x4x64xf32>
    %c0_45 = arith.constant 0 : index
    %c3_46 = arith.constant 3 : index
    %c0_47 = arith.constant 0 : index
    %87 = vector.load %arg6[%c0_45, %c3_46, %c0_47] : memref<5x5x64xf32, #tpu.memory_space<vmem>>, vector<1x1x64xf32>
    %88 = vector.shape_cast %87 : vector<1x1x64xf32> to vector<1x1x1x64xf32>
    %89 = vector.broadcast %88 : vector<1x1x1x64xf32> to vector<1x4x4x64xf32>
    %90 = arith.mulf %81, %89 : vector<1x4x4x64xf32>
    %91 = arith.addf %75, %90 : vector<1x4x4x64xf32>
    %c0_48 = arith.constant 0 : index
    %c3_49 = arith.constant 3 : index
    %c0_50 = arith.constant 0 : index
    %92 = vector.load %arg7[%c0_48, %c3_49, %c0_50] : memref<5x5x64xf32, #tpu.memory_space<vmem>>, vector<1x1x64xf32>
    %93 = vector.shape_cast %92 : vector<1x1x64xf32> to vector<1x1x1x64xf32>
    %94 = vector.broadcast %93 : vector<1x1x1x64xf32> to vector<1x4x4x64xf32>
    %95 = arith.mulf %81, %94 : vector<1x4x4x64xf32>
    %96 = arith.addf %80, %95 : vector<1x4x4x64xf32>
    %97 = vector.extract_strided_slice %29 {offsets = [0, 0, 4, 0], sizes = [1, 4, 4, 64], strides = [1, 1, 1, 1]} : vector<1x8x8x64xf32> to vector<1x4x4x64xf32>
    %c0_51 = arith.constant 0 : index
    %c4 = arith.constant 4 : index
    %c0_52 = arith.constant 0 : index
    %98 = vector.load %arg5[%c0_51, %c4, %c0_52] : memref<5x5x64xf32, #tpu.memory_space<vmem>>, vector<1x1x64xf32>
    %99 = vector.shape_cast %98 : vector<1x1x64xf32> to vector<1x1x1x64xf32>
    %100 = vector.broadcast %99 : vector<1x1x1x64xf32> to vector<1x4x4x64xf32>
    %101 = arith.mulf %97, %100 : vector<1x4x4x64xf32>
    %102 = arith.addf %86, %101 : vector<1x4x4x64xf32>
    %c0_53 = arith.constant 0 : index
    %c4_54 = arith.constant 4 : index
    %c0_55 = arith.constant 0 : index
    %103 = vector.load %arg6[%c0_53, %c4_54, %c0_55] : memref<5x5x64xf32, #tpu.memory_space<vmem>>, vector<1x1x64xf32>
    %104 = vector.shape_cast %103 : vector<1x1x64xf32> to vector<1x1x1x64xf32>
    %105 = vector.broadcast %104 : vector<1x1x1x64xf32> to vector<1x4x4x64xf32>
    %106 = arith.mulf %97, %105 : vector<1x4x4x64xf32>
    %107 = arith.addf %91, %106 : vector<1x4x4x64xf32>
    %c0_56 = arith.constant 0 : index
    %c4_57 = arith.constant 4 : index
    %c0_58 = arith.constant 0 : index
    %108 = vector.load %arg7[%c0_56, %c4_57, %c0_58] : memref<5x5x64xf32, #tpu.memory_space<vmem>>, vector<1x1x64xf32>
    %109 = vector.shape_cast %108 : vector<1x1x64xf32> to vector<1x1x1x64xf32>
    %110 = vector.broadcast %109 : vector<1x1x1x64xf32> to vector<1x4x4x64xf32>
    %111 = arith.mulf %97, %110 : vector<1x4x4x64xf32>
    %112 = arith.addf %96, %111 : vector<1x4x4x64xf32>
    %113 = vector.extract_strided_slice %29 {offsets = [0, 1, 0, 0], sizes = [1, 4, 4, 64], strides = [1, 1, 1, 1]} : vector<1x8x8x64xf32> to vector<1x4x4x64xf32>
    %c1_59 = arith.constant 1 : index
    %c0_60 = arith.constant 0 : index
    %c0_61 = arith.constant 0 : index
    %114 = vector.load %arg5[%c1_59, %c0_60, %c0_61] : memref<5x5x64xf32, #tpu.memory_space<vmem>>, vector<1x1x64xf32>
    %115 = vector.shape_cast %114 : vector<1x1x64xf32> to vector<1x1x1x64xf32>
    %116 = vector.broadcast %115 : vector<1x1x1x64xf32> to vector<1x4x4x64xf32>
    %117 = arith.mulf %113, %116 : vector<1x4x4x64xf32>
    %118 = arith.addf %102, %117 : vector<1x4x4x64xf32>
    %c1_62 = arith.constant 1 : index
    %c0_63 = arith.constant 0 : index
    %c0_64 = arith.constant 0 : index
    %119 = vector.load %arg6[%c1_62, %c0_63, %c0_64] : memref<5x5x64xf32, #tpu.memory_space<vmem>>, vector<1x1x64xf32>
    %120 = vector.shape_cast %119 : vector<1x1x64xf32> to vector<1x1x1x64xf32>
    %121 = vector.broadcast %120 : vector<1x1x1x64xf32> to vector<1x4x4x64xf32>
    %122 = arith.mulf %113, %121 : vector<1x4x4x64xf32>
    %123 = arith.addf %107, %122 : vector<1x4x4x64xf32>
    %c1_65 = arith.constant 1 : index
    %c0_66 = arith.constant 0 : index
    %c0_67 = arith.constant 0 : index
    %124 = vector.load %arg7[%c1_65, %c0_66, %c0_67] : memref<5x5x64xf32, #tpu.memory_space<vmem>>, vector<1x1x64xf32>
    %125 = vector.shape_cast %124 : vector<1x1x64xf32> to vector<1x1x1x64xf32>
    %126 = vector.broadcast %125 : vector<1x1x1x64xf32> to vector<1x4x4x64xf32>
    %127 = arith.mulf %113, %126 : vector<1x4x4x64xf32>
    %128 = arith.addf %112, %127 : vector<1x4x4x64xf32>
    %129 = vector.extract_strided_slice %29 {offsets = [0, 1, 1, 0], sizes = [1, 4, 4, 64], strides = [1, 1, 1, 1]} : vector<1x8x8x64xf32> to vector<1x4x4x64xf32>
    %c1_68 = arith.constant 1 : index
    %c1_69 = arith.constant 1 : index
    %c0_70 = arith.constant 0 : index
    %130 = vector.load %arg5[%c1_68, %c1_69, %c0_70] : memref<5x5x64xf32, #tpu.memory_space<vmem>>, vector<1x1x64xf32>
    %131 = vector.shape_cast %130 : vector<1x1x64xf32> to vector<1x1x1x64xf32>
    %132 = vector.broadcast %131 : vector<1x1x1x64xf32> to vector<1x4x4x64xf32>
    %133 = arith.mulf %129, %132 : vector<1x4x4x64xf32>
    %134 = arith.addf %118, %133 : vector<1x4x4x64xf32>
    %c1_71 = arith.constant 1 : index
    %c1_72 = arith.constant 1 : index
    %c0_73 = arith.constant 0 : index
    %135 = vector.load %arg6[%c1_71, %c1_72, %c0_73] : memref<5x5x64xf32, #tpu.memory_space<vmem>>, vector<1x1x64xf32>
    %136 = vector.shape_cast %135 : vector<1x1x64xf32> to vector<1x1x1x64xf32>
    %137 = vector.broadcast %136 : vector<1x1x1x64xf32> to vector<1x4x4x64xf32>
    %138 = arith.mulf %129, %137 : vector<1x4x4x64xf32>
    %139 = arith.addf %123, %138 : vector<1x4x4x64xf32>
    %c1_74 = arith.constant 1 : index
    %c1_75 = arith.constant 1 : index
    %c0_76 = arith.constant 0 : index
    %140 = vector.load %arg7[%c1_74, %c1_75, %c0_76] : memref<5x5x64xf32, #tpu.memory_space<vmem>>, vector<1x1x64xf32>
    %141 = vector.shape_cast %140 : vector<1x1x64xf32> to vector<1x1x1x64xf32>
    %142 = vector.broadcast %141 : vector<1x1x1x64xf32> to vector<1x4x4x64xf32>
    %143 = arith.mulf %129, %142 : vector<1x4x4x64xf32>
    %144 = arith.addf %128, %143 : vector<1x4x4x64xf32>
    %145 = vector.extract_strided_slice %29 {offsets = [0, 1, 2, 0], sizes = [1, 4, 4, 64], strides = [1, 1, 1, 1]} : vector<1x8x8x64xf32> to vector<1x4x4x64xf32>
    %c1_77 = arith.constant 1 : index
    %c2_78 = arith.constant 2 : index
    %c0_79 = arith.constant 0 : index
    %146 = vector.load %arg5[%c1_77, %c2_78, %c0_79] : memref<5x5x64xf32, #tpu.memory_space<vmem>>, vector<1x1x64xf32>
    %147 = vector.shape_cast %146 : vector<1x1x64xf32> to vector<1x1x1x64xf32>
    %148 = vector.broadcast %147 : vector<1x1x1x64xf32> to vector<1x4x4x64xf32>
    %149 = arith.mulf %145, %148 : vector<1x4x4x64xf32>
    %150 = arith.addf %134, %149 : vector<1x4x4x64xf32>
    %c1_80 = arith.constant 1 : index
    %c2_81 = arith.constant 2 : index
    %c0_82 = arith.constant 0 : index
    %151 = vector.load %arg6[%c1_80, %c2_81, %c0_82] : memref<5x5x64xf32, #tpu.memory_space<vmem>>, vector<1x1x64xf32>
    %152 = vector.shape_cast %151 : vector<1x1x64xf32> to vector<1x1x1x64xf32>
    %153 = vector.broadcast %152 : vector<1x1x1x64xf32> to vector<1x4x4x64xf32>
    %154 = arith.mulf %145, %153 : vector<1x4x4x64xf32>
    %155 = arith.addf %139, %154 : vector<1x4x4x64xf32>
    %c1_83 = arith.constant 1 : index
    %c2_84 = arith.constant 2 : index
    %c0_85 = arith.constant 0 : index
    %156 = vector.load %arg7[%c1_83, %c2_84, %c0_85] : memref<5x5x64xf32, #tpu.memory_space<vmem>>, vector<1x1x64xf32>
    %157 = vector.shape_cast %156 : vector<1x1x64xf32> to vector<1x1x1x64xf32>
    %158 = vector.broadcast %157 : vector<1x1x1x64xf32> to vector<1x4x4x64xf32>
    %159 = arith.mulf %145, %158 : vector<1x4x4x64xf32>
    %160 = arith.addf %144, %159 : vector<1x4x4x64xf32>
    %161 = vector.extract_strided_slice %29 {offsets = [0, 1, 3, 0], sizes = [1, 4, 4, 64], strides = [1, 1, 1, 1]} : vector<1x8x8x64xf32> to vector<1x4x4x64xf32>
    %c1_86 = arith.constant 1 : index
    %c3_87 = arith.constant 3 : index
    %c0_88 = arith.constant 0 : index
    %162 = vector.load %arg5[%c1_86, %c3_87, %c0_88] : memref<5x5x64xf32, #tpu.memory_space<vmem>>, vector<1x1x64xf32>
    %163 = vector.shape_cast %162 : vector<1x1x64xf32> to vector<1x1x1x64xf32>
    %164 = vector.broadcast %163 : vector<1x1x1x64xf32> to vector<1x4x4x64xf32>
    %165 = arith.mulf %161, %164 : vector<1x4x4x64xf32>
    %166 = arith.addf %150, %165 : vector<1x4x4x64xf32>
    %c1_89 = arith.constant 1 : index
    %c3_90 = arith.constant 3 : index
    %c0_91 = arith.constant 0 : index
    %167 = vector.load %arg6[%c1_89, %c3_90, %c0_91] : memref<5x5x64xf32, #tpu.memory_space<vmem>>, vector<1x1x64xf32>
    %168 = vector.shape_cast %167 : vector<1x1x64xf32> to vector<1x1x1x64xf32>
    %169 = vector.broadcast %168 : vector<1x1x1x64xf32> to vector<1x4x4x64xf32>
    %170 = arith.mulf %161, %169 : vector<1x4x4x64xf32>
    %171 = arith.addf %155, %170 : vector<1x4x4x64xf32>
    %c1_92 = arith.constant 1 : index
    %c3_93 = arith.constant 3 : index
    %c0_94 = arith.constant 0 : index
    %172 = vector.load %arg7[%c1_92, %c3_93, %c0_94] : memref<5x5x64xf32, #tpu.memory_space<vmem>>, vector<1x1x64xf32>
    %173 = vector.shape_cast %172 : vector<1x1x64xf32> to vector<1x1x1x64xf32>
    %174 = vector.broadcast %173 : vector<1x1x1x64xf32> to vector<1x4x4x64xf32>
    %175 = arith.mulf %161, %174 : vector<1x4x4x64xf32>
    %176 = arith.addf %160, %175 : vector<1x4x4x64xf32>
    %177 = vector.extract_strided_slice %29 {offsets = [0, 1, 4, 0], sizes = [1, 4, 4, 64], strides = [1, 1, 1, 1]} : vector<1x8x8x64xf32> to vector<1x4x4x64xf32>
    %c1_95 = arith.constant 1 : index
    %c4_96 = arith.constant 4 : index
    %c0_97 = arith.constant 0 : index
    %178 = vector.load %arg5[%c1_95, %c4_96, %c0_97] : memref<5x5x64xf32, #tpu.memory_space<vmem>>, vector<1x1x64xf32>
    %179 = vector.shape_cast %178 : vector<1x1x64xf32> to vector<1x1x1x64xf32>
    %180 = vector.broadcast %179 : vector<1x1x1x64xf32> to vector<1x4x4x64xf32>
    %181 = arith.mulf %177, %180 : vector<1x4x4x64xf32>
    %182 = arith.addf %166, %181 : vector<1x4x4x64xf32>
    %c1_98 = arith.constant 1 : index
    %c4_99 = arith.constant 4 : index
    %c0_100 = arith.constant 0 : index
    %183 = vector.load %arg6[%c1_98, %c4_99, %c0_100] : memref<5x5x64xf32, #tpu.memory_space<vmem>>, vector<1x1x64xf32>
    %184 = vector.shape_cast %183 : vector<1x1x64xf32> to vector<1x1x1x64xf32>
    %185 = vector.broadcast %184 : vector<1x1x1x64xf32> to vector<1x4x4x64xf32>
    %186 = arith.mulf %177, %185 : vector<1x4x4x64xf32>
    %187 = arith.addf %171, %186 : vector<1x4x4x64xf32>
    %c1_101 = arith.constant 1 : index
    %c4_102 = arith.constant 4 : index
    %c0_103 = arith.constant 0 : index
    %188 = vector.load %arg7[%c1_101, %c4_102, %c0_103] : memref<5x5x64xf32, #tpu.memory_space<vmem>>, vector<1x1x64xf32>
    %189 = vector.shape_cast %188 : vector<1x1x64xf32> to vector<1x1x1x64xf32>
    %190 = vector.broadcast %189 : vector<1x1x1x64xf32> to vector<1x4x4x64xf32>
    %191 = arith.mulf %177, %190 : vector<1x4x4x64xf32>
    %192 = arith.addf %176, %191 : vector<1x4x4x64xf32>
    %193 = vector.extract_strided_slice %29 {offsets = [0, 2, 0, 0], sizes = [1, 4, 4, 64], strides = [1, 1, 1, 1]} : vector<1x8x8x64xf32> to vector<1x4x4x64xf32>
    %c2_104 = arith.constant 2 : index
    %c0_105 = arith.constant 0 : index
    %c0_106 = arith.constant 0 : index
    %194 = vector.load %arg5[%c2_104, %c0_105, %c0_106] : memref<5x5x64xf32, #tpu.memory_space<vmem>>, vector<1x1x64xf32>
    %195 = vector.shape_cast %194 : vector<1x1x64xf32> to vector<1x1x1x64xf32>
    %196 = vector.broadcast %195 : vector<1x1x1x64xf32> to vector<1x4x4x64xf32>
    %197 = arith.mulf %193, %196 : vector<1x4x4x64xf32>
    %198 = arith.addf %182, %197 : vector<1x4x4x64xf32>
    %c2_107 = arith.constant 2 : index
    %c0_108 = arith.constant 0 : index
    %c0_109 = arith.constant 0 : index
    %199 = vector.load %arg6[%c2_107, %c0_108, %c0_109] : memref<5x5x64xf32, #tpu.memory_space<vmem>>, vector<1x1x64xf32>
    %200 = vector.shape_cast %199 : vector<1x1x64xf32> to vector<1x1x1x64xf32>
    %201 = vector.broadcast %200 : vector<1x1x1x64xf32> to vector<1x4x4x64xf32>
    %202 = arith.mulf %193, %201 : vector<1x4x4x64xf32>
    %203 = arith.addf %187, %202 : vector<1x4x4x64xf32>
    %c2_110 = arith.constant 2 : index
    %c0_111 = arith.constant 0 : index
    %c0_112 = arith.constant 0 : index
    %204 = vector.load %arg7[%c2_110, %c0_111, %c0_112] : memref<5x5x64xf32, #tpu.memory_space<vmem>>, vector<1x1x64xf32>
    %205 = vector.shape_cast %204 : vector<1x1x64xf32> to vector<1x1x1x64xf32>
    %206 = vector.broadcast %205 : vector<1x1x1x64xf32> to vector<1x4x4x64xf32>
    %207 = arith.mulf %193, %206 : vector<1x4x4x64xf32>
    %208 = arith.addf %192, %207 : vector<1x4x4x64xf32>
    %209 = vector.extract_strided_slice %29 {offsets = [0, 2, 1, 0], sizes = [1, 4, 4, 64], strides = [1, 1, 1, 1]} : vector<1x8x8x64xf32> to vector<1x4x4x64xf32>
    %c2_113 = arith.constant 2 : index
    %c1_114 = arith.constant 1 : index
    %c0_115 = arith.constant 0 : index
    %210 = vector.load %arg5[%c2_113, %c1_114, %c0_115] : memref<5x5x64xf32, #tpu.memory_space<vmem>>, vector<1x1x64xf32>
    %211 = vector.shape_cast %210 : vector<1x1x64xf32> to vector<1x1x1x64xf32>
    %212 = vector.broadcast %211 : vector<1x1x1x64xf32> to vector<1x4x4x64xf32>
    %213 = arith.mulf %209, %212 : vector<1x4x4x64xf32>
    %214 = arith.addf %198, %213 : vector<1x4x4x64xf32>
    %c2_116 = arith.constant 2 : index
    %c1_117 = arith.constant 1 : index
    %c0_118 = arith.constant 0 : index
    %215 = vector.load %arg6[%c2_116, %c1_117, %c0_118] : memref<5x5x64xf32, #tpu.memory_space<vmem>>, vector<1x1x64xf32>
    %216 = vector.shape_cast %215 : vector<1x1x64xf32> to vector<1x1x1x64xf32>
    %217 = vector.broadcast %216 : vector<1x1x1x64xf32> to vector<1x4x4x64xf32>
    %218 = arith.mulf %209, %217 : vector<1x4x4x64xf32>
    %219 = arith.addf %203, %218 : vector<1x4x4x64xf32>
    %c2_119 = arith.constant 2 : index
    %c1_120 = arith.constant 1 : index
    %c0_121 = arith.constant 0 : index
    %220 = vector.load %arg7[%c2_119, %c1_120, %c0_121] : memref<5x5x64xf32, #tpu.memory_space<vmem>>, vector<1x1x64xf32>
    %221 = vector.shape_cast %220 : vector<1x1x64xf32> to vector<1x1x1x64xf32>
    %222 = vector.broadcast %221 : vector<1x1x1x64xf32> to vector<1x4x4x64xf32>
    %223 = arith.mulf %209, %222 : vector<1x4x4x64xf32>
    %224 = arith.addf %208, %223 : vector<1x4x4x64xf32>
    %225 = vector.extract_strided_slice %29 {offsets = [0, 2, 2, 0], sizes = [1, 4, 4, 64], strides = [1, 1, 1, 1]} : vector<1x8x8x64xf32> to vector<1x4x4x64xf32>
    %c2_122 = arith.constant 2 : index
    %c2_123 = arith.constant 2 : index
    %c0_124 = arith.constant 0 : index
    %226 = vector.load %arg5[%c2_122, %c2_123, %c0_124] : memref<5x5x64xf32, #tpu.memory_space<vmem>>, vector<1x1x64xf32>
    %227 = vector.shape_cast %226 : vector<1x1x64xf32> to vector<1x1x1x64xf32>
    %228 = vector.broadcast %227 : vector<1x1x1x64xf32> to vector<1x4x4x64xf32>
    %229 = arith.mulf %225, %228 : vector<1x4x4x64xf32>
    %230 = arith.addf %214, %229 : vector<1x4x4x64xf32>
    %c2_125 = arith.constant 2 : index
    %c2_126 = arith.constant 2 : index
    %c0_127 = arith.constant 0 : index
    %231 = vector.load %arg6[%c2_125, %c2_126, %c0_127] : memref<5x5x64xf32, #tpu.memory_space<vmem>>, vector<1x1x64xf32>
    %232 = vector.shape_cast %231 : vector<1x1x64xf32> to vector<1x1x1x64xf32>
    %233 = vector.broadcast %232 : vector<1x1x1x64xf32> to vector<1x4x4x64xf32>
    %234 = arith.mulf %225, %233 : vector<1x4x4x64xf32>
    %235 = arith.addf %219, %234 : vector<1x4x4x64xf32>
    %c2_128 = arith.constant 2 : index
    %c2_129 = arith.constant 2 : index
    %c0_130 = arith.constant 0 : index
    %236 = vector.load %arg7[%c2_128, %c2_129, %c0_130] : memref<5x5x64xf32, #tpu.memory_space<vmem>>, vector<1x1x64xf32>
    %237 = vector.shape_cast %236 : vector<1x1x64xf32> to vector<1x1x1x64xf32>
    %238 = vector.broadcast %237 : vector<1x1x1x64xf32> to vector<1x4x4x64xf32>
    %239 = arith.mulf %225, %238 : vector<1x4x4x64xf32>
    %240 = arith.addf %224, %239 : vector<1x4x4x64xf32>
    %241 = vector.extract_strided_slice %29 {offsets = [0, 2, 3, 0], sizes = [1, 4, 4, 64], strides = [1, 1, 1, 1]} : vector<1x8x8x64xf32> to vector<1x4x4x64xf32>
    %c2_131 = arith.constant 2 : index
    %c3_132 = arith.constant 3 : index
    %c0_133 = arith.constant 0 : index
    %242 = vector.load %arg5[%c2_131, %c3_132, %c0_133] : memref<5x5x64xf32, #tpu.memory_space<vmem>>, vector<1x1x64xf32>
    %243 = vector.shape_cast %242 : vector<1x1x64xf32> to vector<1x1x1x64xf32>
    %244 = vector.broadcast %243 : vector<1x1x1x64xf32> to vector<1x4x4x64xf32>
    %245 = arith.mulf %241, %244 : vector<1x4x4x64xf32>
    %246 = arith.addf %230, %245 : vector<1x4x4x64xf32>
    %c2_134 = arith.constant 2 : index
    %c3_135 = arith.constant 3 : index
    %c0_136 = arith.constant 0 : index
    %247 = vector.load %arg6[%c2_134, %c3_135, %c0_136] : memref<5x5x64xf32, #tpu.memory_space<vmem>>, vector<1x1x64xf32>
    %248 = vector.shape_cast %247 : vector<1x1x64xf32> to vector<1x1x1x64xf32>
    %249 = vector.broadcast %248 : vector<1x1x1x64xf32> to vector<1x4x4x64xf32>
    %250 = arith.mulf %241, %249 : vector<1x4x4x64xf32>
    %251 = arith.addf %235, %250 : vector<1x4x4x64xf32>
    %c2_137 = arith.constant 2 : index
    %c3_138 = arith.constant 3 : index
    %c0_139 = arith.constant 0 : index
    %252 = vector.load %arg7[%c2_137, %c3_138, %c0_139] : memref<5x5x64xf32, #tpu.memory_space<vmem>>, vector<1x1x64xf32>
    %253 = vector.shape_cast %252 : vector<1x1x64xf32> to vector<1x1x1x64xf32>
    %254 = vector.broadcast %253 : vector<1x1x1x64xf32> to vector<1x4x4x64xf32>
    %255 = arith.mulf %241, %254 : vector<1x4x4x64xf32>
    %256 = arith.addf %240, %255 : vector<1x4x4x64xf32>
    %257 = vector.extract_strided_slice %29 {offsets = [0, 2, 4, 0], sizes = [1, 4, 4, 64], strides = [1, 1, 1, 1]} : vector<1x8x8x64xf32> to vector<1x4x4x64xf32>
    %c2_140 = arith.constant 2 : index
    %c4_141 = arith.constant 4 : index
    %c0_142 = arith.constant 0 : index
    %258 = vector.load %arg5[%c2_140, %c4_141, %c0_142] : memref<5x5x64xf32, #tpu.memory_space<vmem>>, vector<1x1x64xf32>
    %259 = vector.shape_cast %258 : vector<1x1x64xf32> to vector<1x1x1x64xf32>
    %260 = vector.broadcast %259 : vector<1x1x1x64xf32> to vector<1x4x4x64xf32>
    %261 = arith.mulf %257, %260 : vector<1x4x4x64xf32>
    %262 = arith.addf %246, %261 : vector<1x4x4x64xf32>
    %c2_143 = arith.constant 2 : index
    %c4_144 = arith.constant 4 : index
    %c0_145 = arith.constant 0 : index
    %263 = vector.load %arg6[%c2_143, %c4_144, %c0_145] : memref<5x5x64xf32, #tpu.memory_space<vmem>>, vector<1x1x64xf32>
    %264 = vector.shape_cast %263 : vector<1x1x64xf32> to vector<1x1x1x64xf32>
    %265 = vector.broadcast %264 : vector<1x1x1x64xf32> to vector<1x4x4x64xf32>
    %266 = arith.mulf %257, %265 : vector<1x4x4x64xf32>
    %267 = arith.addf %251, %266 : vector<1x4x4x64xf32>
    %c2_146 = arith.constant 2 : index
    %c4_147 = arith.constant 4 : index
    %c0_148 = arith.constant 0 : index
    %268 = vector.load %arg7[%c2_146, %c4_147, %c0_148] : memref<5x5x64xf32, #tpu.memory_space<vmem>>, vector<1x1x64xf32>
    %269 = vector.shape_cast %268 : vector<1x1x64xf32> to vector<1x1x1x64xf32>
    %270 = vector.broadcast %269 : vector<1x1x1x64xf32> to vector<1x4x4x64xf32>
    %271 = arith.mulf %257, %270 : vector<1x4x4x64xf32>
    %272 = arith.addf %256, %271 : vector<1x4x4x64xf32>
    %273 = vector.extract_strided_slice %29 {offsets = [0, 3, 0, 0], sizes = [1, 4, 4, 64], strides = [1, 1, 1, 1]} : vector<1x8x8x64xf32> to vector<1x4x4x64xf32>
    %c3_149 = arith.constant 3 : index
    %c0_150 = arith.constant 0 : index
    %c0_151 = arith.constant 0 : index
    %274 = vector.load %arg5[%c3_149, %c0_150, %c0_151] : memref<5x5x64xf32, #tpu.memory_space<vmem>>, vector<1x1x64xf32>
    %275 = vector.shape_cast %274 : vector<1x1x64xf32> to vector<1x1x1x64xf32>
    %276 = vector.broadcast %275 : vector<1x1x1x64xf32> to vector<1x4x4x64xf32>
    %277 = arith.mulf %273, %276 : vector<1x4x4x64xf32>
    %278 = arith.addf %262, %277 : vector<1x4x4x64xf32>
    %c3_152 = arith.constant 3 : index
    %c0_153 = arith.constant 0 : index
    %c0_154 = arith.constant 0 : index
    %279 = vector.load %arg6[%c3_152, %c0_153, %c0_154] : memref<5x5x64xf32, #tpu.memory_space<vmem>>, vector<1x1x64xf32>
    %280 = vector.shape_cast %279 : vector<1x1x64xf32> to vector<1x1x1x64xf32>
    %281 = vector.broadcast %280 : vector<1x1x1x64xf32> to vector<1x4x4x64xf32>
    %282 = arith.mulf %273, %281 : vector<1x4x4x64xf32>
    %283 = arith.addf %267, %282 : vector<1x4x4x64xf32>
    %c3_155 = arith.constant 3 : index
    %c0_156 = arith.constant 0 : index
    %c0_157 = arith.constant 0 : index
    %284 = vector.load %arg7[%c3_155, %c0_156, %c0_157] : memref<5x5x64xf32, #tpu.memory_space<vmem>>, vector<1x1x64xf32>
    %285 = vector.shape_cast %284 : vector<1x1x64xf32> to vector<1x1x1x64xf32>
    %286 = vector.broadcast %285 : vector<1x1x1x64xf32> to vector<1x4x4x64xf32>
    %287 = arith.mulf %273, %286 : vector<1x4x4x64xf32>
    %288 = arith.addf %272, %287 : vector<1x4x4x64xf32>
    %289 = vector.extract_strided_slice %29 {offsets = [0, 3, 1, 0], sizes = [1, 4, 4, 64], strides = [1, 1, 1, 1]} : vector<1x8x8x64xf32> to vector<1x4x4x64xf32>
    %c3_158 = arith.constant 3 : index
    %c1_159 = arith.constant 1 : index
    %c0_160 = arith.constant 0 : index
    %290 = vector.load %arg5[%c3_158, %c1_159, %c0_160] : memref<5x5x64xf32, #tpu.memory_space<vmem>>, vector<1x1x64xf32>
    %291 = vector.shape_cast %290 : vector<1x1x64xf32> to vector<1x1x1x64xf32>
    %292 = vector.broadcast %291 : vector<1x1x1x64xf32> to vector<1x4x4x64xf32>
    %293 = arith.mulf %289, %292 : vector<1x4x4x64xf32>
    %294 = arith.addf %278, %293 : vector<1x4x4x64xf32>
    %c3_161 = arith.constant 3 : index
    %c1_162 = arith.constant 1 : index
    %c0_163 = arith.constant 0 : index
    %295 = vector.load %arg6[%c3_161, %c1_162, %c0_163] : memref<5x5x64xf32, #tpu.memory_space<vmem>>, vector<1x1x64xf32>
    %296 = vector.shape_cast %295 : vector<1x1x64xf32> to vector<1x1x1x64xf32>
    %297 = vector.broadcast %296 : vector<1x1x1x64xf32> to vector<1x4x4x64xf32>
    %298 = arith.mulf %289, %297 : vector<1x4x4x64xf32>
    %299 = arith.addf %283, %298 : vector<1x4x4x64xf32>
    %c3_164 = arith.constant 3 : index
    %c1_165 = arith.constant 1 : index
    %c0_166 = arith.constant 0 : index
    %300 = vector.load %arg7[%c3_164, %c1_165, %c0_166] : memref<5x5x64xf32, #tpu.memory_space<vmem>>, vector<1x1x64xf32>
    %301 = vector.shape_cast %300 : vector<1x1x64xf32> to vector<1x1x1x64xf32>
    %302 = vector.broadcast %301 : vector<1x1x1x64xf32> to vector<1x4x4x64xf32>
    %303 = arith.mulf %289, %302 : vector<1x4x4x64xf32>
    %304 = arith.addf %288, %303 : vector<1x4x4x64xf32>
    %305 = vector.extract_strided_slice %29 {offsets = [0, 3, 2, 0], sizes = [1, 4, 4, 64], strides = [1, 1, 1, 1]} : vector<1x8x8x64xf32> to vector<1x4x4x64xf32>
    %c3_167 = arith.constant 3 : index
    %c2_168 = arith.constant 2 : index
    %c0_169 = arith.constant 0 : index
    %306 = vector.load %arg5[%c3_167, %c2_168, %c0_169] : memref<5x5x64xf32, #tpu.memory_space<vmem>>, vector<1x1x64xf32>
    %307 = vector.shape_cast %306 : vector<1x1x64xf32> to vector<1x1x1x64xf32>
    %308 = vector.broadcast %307 : vector<1x1x1x64xf32> to vector<1x4x4x64xf32>
    %309 = arith.mulf %305, %308 : vector<1x4x4x64xf32>
    %310 = arith.addf %294, %309 : vector<1x4x4x64xf32>
    %c3_170 = arith.constant 3 : index
    %c2_171 = arith.constant 2 : index
    %c0_172 = arith.constant 0 : index
    %311 = vector.load %arg6[%c3_170, %c2_171, %c0_172] : memref<5x5x64xf32, #tpu.memory_space<vmem>>, vector<1x1x64xf32>
    %312 = vector.shape_cast %311 : vector<1x1x64xf32> to vector<1x1x1x64xf32>
    %313 = vector.broadcast %312 : vector<1x1x1x64xf32> to vector<1x4x4x64xf32>
    %314 = arith.mulf %305, %313 : vector<1x4x4x64xf32>
    %315 = arith.addf %299, %314 : vector<1x4x4x64xf32>
    %c3_173 = arith.constant 3 : index
    %c2_174 = arith.constant 2 : index
    %c0_175 = arith.constant 0 : index
    %316 = vector.load %arg7[%c3_173, %c2_174, %c0_175] : memref<5x5x64xf32, #tpu.memory_space<vmem>>, vector<1x1x64xf32>
    %317 = vector.shape_cast %316 : vector<1x1x64xf32> to vector<1x1x1x64xf32>
    %318 = vector.broadcast %317 : vector<1x1x1x64xf32> to vector<1x4x4x64xf32>
    %319 = arith.mulf %305, %318 : vector<1x4x4x64xf32>
    %320 = arith.addf %304, %319 : vector<1x4x4x64xf32>
    %321 = vector.extract_strided_slice %29 {offsets = [0, 3, 3, 0], sizes = [1, 4, 4, 64], strides = [1, 1, 1, 1]} : vector<1x8x8x64xf32> to vector<1x4x4x64xf32>
    %c3_176 = arith.constant 3 : index
    %c3_177 = arith.constant 3 : index
    %c0_178 = arith.constant 0 : index
    %322 = vector.load %arg5[%c3_176, %c3_177, %c0_178] : memref<5x5x64xf32, #tpu.memory_space<vmem>>, vector<1x1x64xf32>
    %323 = vector.shape_cast %322 : vector<1x1x64xf32> to vector<1x1x1x64xf32>
    %324 = vector.broadcast %323 : vector<1x1x1x64xf32> to vector<1x4x4x64xf32>
    %325 = arith.mulf %321, %324 : vector<1x4x4x64xf32>
    %326 = arith.addf %310, %325 : vector<1x4x4x64xf32>
    %c3_179 = arith.constant 3 : index
    %c3_180 = arith.constant 3 : index
    %c0_181 = arith.constant 0 : index
    %327 = vector.load %arg6[%c3_179, %c3_180, %c0_181] : memref<5x5x64xf32, #tpu.memory_space<vmem>>, vector<1x1x64xf32>
    %328 = vector.shape_cast %327 : vector<1x1x64xf32> to vector<1x1x1x64xf32>
    %329 = vector.broadcast %328 : vector<1x1x1x64xf32> to vector<1x4x4x64xf32>
    %330 = arith.mulf %321, %329 : vector<1x4x4x64xf32>
    %331 = arith.addf %315, %330 : vector<1x4x4x64xf32>
    %c3_182 = arith.constant 3 : index
    %c3_183 = arith.constant 3 : index
    %c0_184 = arith.constant 0 : index
    %332 = vector.load %arg7[%c3_182, %c3_183, %c0_184] : memref<5x5x64xf32, #tpu.memory_space<vmem>>, vector<1x1x64xf32>
    %333 = vector.shape_cast %332 : vector<1x1x64xf32> to vector<1x1x1x64xf32>
    %334 = vector.broadcast %333 : vector<1x1x1x64xf32> to vector<1x4x4x64xf32>
    %335 = arith.mulf %321, %334 : vector<1x4x4x64xf32>
    %336 = arith.addf %320, %335 : vector<1x4x4x64xf32>
    %337 = vector.extract_strided_slice %29 {offsets = [0, 3, 4, 0], sizes = [1, 4, 4, 64], strides = [1, 1, 1, 1]} : vector<1x8x8x64xf32> to vector<1x4x4x64xf32>
    %c3_185 = arith.constant 3 : index
    %c4_186 = arith.constant 4 : index
    %c0_187 = arith.constant 0 : index
    %338 = vector.load %arg5[%c3_185, %c4_186, %c0_187] : memref<5x5x64xf32, #tpu.memory_space<vmem>>, vector<1x1x64xf32>
    %339 = vector.shape_cast %338 : vector<1x1x64xf32> to vector<1x1x1x64xf32>
    %340 = vector.broadcast %339 : vector<1x1x1x64xf32> to vector<1x4x4x64xf32>
    %341 = arith.mulf %337, %340 : vector<1x4x4x64xf32>
    %342 = arith.addf %326, %341 : vector<1x4x4x64xf32>
    %c3_188 = arith.constant 3 : index
    %c4_189 = arith.constant 4 : index
    %c0_190 = arith.constant 0 : index
    %343 = vector.load %arg6[%c3_188, %c4_189, %c0_190] : memref<5x5x64xf32, #tpu.memory_space<vmem>>, vector<1x1x64xf32>
    %344 = vector.shape_cast %343 : vector<1x1x64xf32> to vector<1x1x1x64xf32>
    %345 = vector.broadcast %344 : vector<1x1x1x64xf32> to vector<1x4x4x64xf32>
    %346 = arith.mulf %337, %345 : vector<1x4x4x64xf32>
    %347 = arith.addf %331, %346 : vector<1x4x4x64xf32>
    %c3_191 = arith.constant 3 : index
    %c4_192 = arith.constant 4 : index
    %c0_193 = arith.constant 0 : index
    %348 = vector.load %arg7[%c3_191, %c4_192, %c0_193] : memref<5x5x64xf32, #tpu.memory_space<vmem>>, vector<1x1x64xf32>
    %349 = vector.shape_cast %348 : vector<1x1x64xf32> to vector<1x1x1x64xf32>
    %350 = vector.broadcast %349 : vector<1x1x1x64xf32> to vector<1x4x4x64xf32>
    %351 = arith.mulf %337, %350 : vector<1x4x4x64xf32>
    %352 = arith.addf %336, %351 : vector<1x4x4x64xf32>
    %353 = vector.extract_strided_slice %29 {offsets = [0, 4, 0, 0], sizes = [1, 4, 4, 64], strides = [1, 1, 1, 1]} : vector<1x8x8x64xf32> to vector<1x4x4x64xf32>
    %c4_194 = arith.constant 4 : index
    %c0_195 = arith.constant 0 : index
    %c0_196 = arith.constant 0 : index
    %354 = vector.load %arg5[%c4_194, %c0_195, %c0_196] : memref<5x5x64xf32, #tpu.memory_space<vmem>>, vector<1x1x64xf32>
    %355 = vector.shape_cast %354 : vector<1x1x64xf32> to vector<1x1x1x64xf32>
    %356 = vector.broadcast %355 : vector<1x1x1x64xf32> to vector<1x4x4x64xf32>
    %357 = arith.mulf %353, %356 : vector<1x4x4x64xf32>
    %358 = arith.addf %342, %357 : vector<1x4x4x64xf32>
    %c4_197 = arith.constant 4 : index
    %c0_198 = arith.constant 0 : index
    %c0_199 = arith.constant 0 : index
    %359 = vector.load %arg6[%c4_197, %c0_198, %c0_199] : memref<5x5x64xf32, #tpu.memory_space<vmem>>, vector<1x1x64xf32>
    %360 = vector.shape_cast %359 : vector<1x1x64xf32> to vector<1x1x1x64xf32>
    %361 = vector.broadcast %360 : vector<1x1x1x64xf32> to vector<1x4x4x64xf32>
    %362 = arith.mulf %353, %361 : vector<1x4x4x64xf32>
    %363 = arith.addf %347, %362 : vector<1x4x4x64xf32>
    %c4_200 = arith.constant 4 : index
    %c0_201 = arith.constant 0 : index
    %c0_202 = arith.constant 0 : index
    %364 = vector.load %arg7[%c4_200, %c0_201, %c0_202] : memref<5x5x64xf32, #tpu.memory_space<vmem>>, vector<1x1x64xf32>
    %365 = vector.shape_cast %364 : vector<1x1x64xf32> to vector<1x1x1x64xf32>
    %366 = vector.broadcast %365 : vector<1x1x1x64xf32> to vector<1x4x4x64xf32>
    %367 = arith.mulf %353, %366 : vector<1x4x4x64xf32>
    %368 = arith.addf %352, %367 : vector<1x4x4x64xf32>
    %369 = vector.extract_strided_slice %29 {offsets = [0, 4, 1, 0], sizes = [1, 4, 4, 64], strides = [1, 1, 1, 1]} : vector<1x8x8x64xf32> to vector<1x4x4x64xf32>
    %c4_203 = arith.constant 4 : index
    %c1_204 = arith.constant 1 : index
    %c0_205 = arith.constant 0 : index
    %370 = vector.load %arg5[%c4_203, %c1_204, %c0_205] : memref<5x5x64xf32, #tpu.memory_space<vmem>>, vector<1x1x64xf32>
    %371 = vector.shape_cast %370 : vector<1x1x64xf32> to vector<1x1x1x64xf32>
    %372 = vector.broadcast %371 : vector<1x1x1x64xf32> to vector<1x4x4x64xf32>
    %373 = arith.mulf %369, %372 : vector<1x4x4x64xf32>
    %374 = arith.addf %358, %373 : vector<1x4x4x64xf32>
    %c4_206 = arith.constant 4 : index
    %c1_207 = arith.constant 1 : index
    %c0_208 = arith.constant 0 : index
    %375 = vector.load %arg6[%c4_206, %c1_207, %c0_208] : memref<5x5x64xf32, #tpu.memory_space<vmem>>, vector<1x1x64xf32>
    %376 = vector.shape_cast %375 : vector<1x1x64xf32> to vector<1x1x1x64xf32>
    %377 = vector.broadcast %376 : vector<1x1x1x64xf32> to vector<1x4x4x64xf32>
    %378 = arith.mulf %369, %377 : vector<1x4x4x64xf32>
    %379 = arith.addf %363, %378 : vector<1x4x4x64xf32>
    %c4_209 = arith.constant 4 : index
    %c1_210 = arith.constant 1 : index
    %c0_211 = arith.constant 0 : index
    %380 = vector.load %arg7[%c4_209, %c1_210, %c0_211] : memref<5x5x64xf32, #tpu.memory_space<vmem>>, vector<1x1x64xf32>
    %381 = vector.shape_cast %380 : vector<1x1x64xf32> to vector<1x1x1x64xf32>
    %382 = vector.broadcast %381 : vector<1x1x1x64xf32> to vector<1x4x4x64xf32>
    %383 = arith.mulf %369, %382 : vector<1x4x4x64xf32>
    %384 = arith.addf %368, %383 : vector<1x4x4x64xf32>
    %385 = vector.extract_strided_slice %29 {offsets = [0, 4, 2, 0], sizes = [1, 4, 4, 64], strides = [1, 1, 1, 1]} : vector<1x8x8x64xf32> to vector<1x4x4x64xf32>
    %c4_212 = arith.constant 4 : index
    %c2_213 = arith.constant 2 : index
    %c0_214 = arith.constant 0 : index
    %386 = vector.load %arg5[%c4_212, %c2_213, %c0_214] : memref<5x5x64xf32, #tpu.memory_space<vmem>>, vector<1x1x64xf32>
    %387 = vector.shape_cast %386 : vector<1x1x64xf32> to vector<1x1x1x64xf32>
    %388 = vector.broadcast %387 : vector<1x1x1x64xf32> to vector<1x4x4x64xf32>
    %389 = arith.mulf %385, %388 : vector<1x4x4x64xf32>
    %390 = arith.addf %374, %389 : vector<1x4x4x64xf32>
    %c4_215 = arith.constant 4 : index
    %c2_216 = arith.constant 2 : index
    %c0_217 = arith.constant 0 : index
    %391 = vector.load %arg6[%c4_215, %c2_216, %c0_217] : memref<5x5x64xf32, #tpu.memory_space<vmem>>, vector<1x1x64xf32>
    %392 = vector.shape_cast %391 : vector<1x1x64xf32> to vector<1x1x1x64xf32>
    %393 = vector.broadcast %392 : vector<1x1x1x64xf32> to vector<1x4x4x64xf32>
    %394 = arith.mulf %385, %393 : vector<1x4x4x64xf32>
    %395 = arith.addf %379, %394 : vector<1x4x4x64xf32>
    %c4_218 = arith.constant 4 : index
    %c2_219 = arith.constant 2 : index
    %c0_220 = arith.constant 0 : index
    %396 = vector.load %arg7[%c4_218, %c2_219, %c0_220] : memref<5x5x64xf32, #tpu.memory_space<vmem>>, vector<1x1x64xf32>
    %397 = vector.shape_cast %396 : vector<1x1x64xf32> to vector<1x1x1x64xf32>
    %398 = vector.broadcast %397 : vector<1x1x1x64xf32> to vector<1x4x4x64xf32>
    %399 = arith.mulf %385, %398 : vector<1x4x4x64xf32>
    %400 = arith.addf %384, %399 : vector<1x4x4x64xf32>
    %401 = vector.extract_strided_slice %29 {offsets = [0, 4, 3, 0], sizes = [1, 4, 4, 64], strides = [1, 1, 1, 1]} : vector<1x8x8x64xf32> to vector<1x4x4x64xf32>
    %c4_221 = arith.constant 4 : index
    %c3_222 = arith.constant 3 : index
    %c0_223 = arith.constant 0 : index
    %402 = vector.load %arg5[%c4_221, %c3_222, %c0_223] : memref<5x5x64xf32, #tpu.memory_space<vmem>>, vector<1x1x64xf32>
    %403 = vector.shape_cast %402 : vector<1x1x64xf32> to vector<1x1x1x64xf32>
    %404 = vector.broadcast %403 : vector<1x1x1x64xf32> to vector<1x4x4x64xf32>
    %405 = arith.mulf %401, %404 : vector<1x4x4x64xf32>
    %406 = arith.addf %390, %405 : vector<1x4x4x64xf32>
    %c4_224 = arith.constant 4 : index
    %c3_225 = arith.constant 3 : index
    %c0_226 = arith.constant 0 : index
    %407 = vector.load %arg6[%c4_224, %c3_225, %c0_226] : memref<5x5x64xf32, #tpu.memory_space<vmem>>, vector<1x1x64xf32>
    %408 = vector.shape_cast %407 : vector<1x1x64xf32> to vector<1x1x1x64xf32>
    %409 = vector.broadcast %408 : vector<1x1x1x64xf32> to vector<1x4x4x64xf32>
    %410 = arith.mulf %401, %409 : vector<1x4x4x64xf32>
    %411 = arith.addf %395, %410 : vector<1x4x4x64xf32>
    %c4_227 = arith.constant 4 : index
    %c3_228 = arith.constant 3 : index
    %c0_229 = arith.constant 0 : index
    %412 = vector.load %arg7[%c4_227, %c3_228, %c0_229] : memref<5x5x64xf32, #tpu.memory_space<vmem>>, vector<1x1x64xf32>
    %413 = vector.shape_cast %412 : vector<1x1x64xf32> to vector<1x1x1x64xf32>
    %414 = vector.broadcast %413 : vector<1x1x1x64xf32> to vector<1x4x4x64xf32>
    %415 = arith.mulf %401, %414 : vector<1x4x4x64xf32>
    %416 = arith.addf %400, %415 : vector<1x4x4x64xf32>
    %417 = vector.extract_strided_slice %29 {offsets = [0, 4, 4, 0], sizes = [1, 4, 4, 64], strides = [1, 1, 1, 1]} : vector<1x8x8x64xf32> to vector<1x4x4x64xf32>
    %c4_230 = arith.constant 4 : index
    %c4_231 = arith.constant 4 : index
    %c0_232 = arith.constant 0 : index
    %418 = vector.load %arg5[%c4_230, %c4_231, %c0_232] : memref<5x5x64xf32, #tpu.memory_space<vmem>>, vector<1x1x64xf32>
    %419 = vector.shape_cast %418 : vector<1x1x64xf32> to vector<1x1x1x64xf32>
    %420 = vector.broadcast %419 : vector<1x1x1x64xf32> to vector<1x4x4x64xf32>
    %421 = arith.mulf %417, %420 : vector<1x4x4x64xf32>
    %422 = arith.addf %406, %421 : vector<1x4x4x64xf32>
    %c4_233 = arith.constant 4 : index
    %c4_234 = arith.constant 4 : index
    %c0_235 = arith.constant 0 : index
    %423 = vector.load %arg6[%c4_233, %c4_234, %c0_235] : memref<5x5x64xf32, #tpu.memory_space<vmem>>, vector<1x1x64xf32>
    %424 = vector.shape_cast %423 : vector<1x1x64xf32> to vector<1x1x1x64xf32>
    %425 = vector.broadcast %424 : vector<1x1x1x64xf32> to vector<1x4x4x64xf32>
    %426 = arith.mulf %417, %425 : vector<1x4x4x64xf32>
    %427 = arith.addf %411, %426 : vector<1x4x4x64xf32>
    %c4_236 = arith.constant 4 : index
    %c4_237 = arith.constant 4 : index
    %c0_238 = arith.constant 0 : index
    %428 = vector.load %arg7[%c4_236, %c4_237, %c0_238] : memref<5x5x64xf32, #tpu.memory_space<vmem>>, vector<1x1x64xf32>
    %429 = vector.shape_cast %428 : vector<1x1x64xf32> to vector<1x1x1x64xf32>
    %430 = vector.broadcast %429 : vector<1x1x1x64xf32> to vector<1x4x4x64xf32>
    %431 = arith.mulf %417, %430 : vector<1x4x4x64xf32>
    %432 = arith.addf %416, %431 : vector<1x4x4x64xf32>
    %cst_239 = arith.constant 0.999994993 : f32
    %433 = vector.broadcast %cst_239 : f32 to vector<1x4x4x64xf32>
    %434 = arith.mulf %422, %433 : vector<1x4x4x64xf32>
    %c0_240 = arith.constant 0 : index
    %c0_241 = arith.constant 0 : index
    %c0_242 = arith.constant 0 : index
    %c0_243 = arith.constant 0 : index
    %435 = vector.load %arg8[%c0_240, %c0_241, %c0_242, %c0_243] : memref<1x4x4x64xf32, #tpu.memory_space<vmem>>, vector<1x4x4x64xf32>
    tpu.vector_store %arg8[%c0_240, %c0_241, %c0_242, %c0_243], %434 {strides = array<i32>} : memref<1x4x4x64xf32, #tpu.memory_space<vmem>>, vector<1x4x4x64xf32>,
    %cst_244 = arith.constant 0.999994993 : f32
    %436 = vector.broadcast %cst_244 : f32 to vector<1x4x4x64xf32>
    %437 = arith.mulf %427, %436 : vector<1x4x4x64xf32>
    %c0_245 = arith.constant 0 : index
    %c0_246 = arith.constant 0 : index
    %c0_247 = arith.constant 0 : index
    %c0_248 = arith.constant 0 : index
    %438 = vector.load %arg9[%c0_245, %c0_246, %c0_247, %c0_248] : memref<1x4x4x64xf32, #tpu.memory_space<vmem>>, vector<1x4x4x64xf32>
    tpu.vector_store %arg9[%c0_245, %c0_246, %c0_247, %c0_248], %437 {strides = array<i32>} : memref<1x4x4x64xf32, #tpu.memory_space<vmem>>, vector<1x4x4x64xf32>,
    %cst_249 = arith.constant 0.999994993 : f32
    %439 = vector.broadcast %cst_249 : f32 to vector<1x4x4x64xf32>
    %440 = arith.mulf %432, %439 : vector<1x4x4x64xf32>
    %c0_250 = arith.constant 0 : index
    %c0_251 = arith.constant 0 : index
    %c0_252 = arith.constant 0 : index
    %c0_253 = arith.constant 0 : index
    %441 = vector.load %arg10[%c0_250, %c0_251, %c0_252, %c0_253] : memref<1x4x4x64xf32, #tpu.memory_space<vmem>>, vector<1x4x4x64xf32>
    tpu.vector_store %arg10[%c0_250, %c0_251, %c0_252, %c0_253], %440 {strides = array<i32>} : memref<1x4x4x64xf32, #tpu.memory_space<vmem>>, vector<1x4x4x64xf32>,
    return
  }
  func.func @transform_0(%arg0: i32) -> (i32, i32, i32, i32) {
    %c0_i32 = arith.constant 0 : i32
    %c0_i32_0 = arith.constant 0 : i32
    %c0_i32_1 = arith.constant 0 : i32
    %c0_i32_2 = arith.constant 0 : i32
    return %arg0, %c0_i32, %c0_i32_0, %c0_i32_1 : i32, i32, i32, i32
  }
  func.func @transform_1(%arg0: i32) -> (i32, i32, i32, i32) {
    %c0_i32 = arith.constant 0 : i32
    %c0_i32_0 = arith.constant 0 : i32
    %c0_i32_1 = arith.constant 0 : i32
    %c0_i32_2 = arith.constant 0 : i32
    %c0_i32_3 = arith.constant 0 : i32
    return %c0_i32, %c0_i32_0, %c0_i32_1, %c0_i32_2 : i32, i32, i32, i32
  }
  func.func @transform_2(%arg0: i32) -> (i32, i32) {
    %c0_i32 = arith.constant 0 : i32
    %c0_i32_0 = arith.constant 0 : i32
    %c0_i32_1 = arith.constant 0 : i32
    return %c0_i32, %c0_i32_0 : i32, i32
  }
  func.func @transform_3(%arg0: i32) -> (i32, i32) {
    %c0_i32 = arith.constant 0 : i32
    %c0_i32_0 = arith.constant 0 : i32
    %c0_i32_1 = arith.constant 0 : i32
    return %c0_i32, %c0_i32_0 : i32, i32
  }
  func.func @transform_4(%arg0: i32) -> (i32, i32, i32) {
    %c0_i32 = arith.constant 0 : i32
    %c0_i32_0 = arith.constant 0 : i32
    %c0_i32_1 = arith.constant 0 : i32
    %c0_i32_2 = arith.constant 0 : i32
    return %c0_i32, %c0_i32_0, %c0_i32_1 : i32, i32, i32
  }
  func.func @transform_5(%arg0: i32) -> (i32, i32, i32) {
    %c0_i32 = arith.constant 0 : i32
    %c0_i32_0 = arith.constant 0 : i32
    %c0_i32_1 = arith.constant 0 : i32
    %c0_i32_2 = arith.constant 0 : i32
    return %c0_i32, %c0_i32_0, %c0_i32_1 : i32, i32, i32
  }
  func.func @transform_6(%arg0: i32) -> (i32, i32, i32) {
    %c0_i32 = arith.constant 0 : i32
    %c0_i32_0 = arith.constant 0 : i32
    %c0_i32_1 = arith.constant 0 : i32
    %c0_i32_2 = arith.constant 0 : i32
    return %c0_i32, %c0_i32_0, %c0_i32_1 : i32, i32, i32
  }
  func.func @transform_7(%arg0: i32) -> (i32, i32, i32, i32) {
    %c0_i32 = arith.constant 0 : i32
    %c0_i32_0 = arith.constant 0 : i32
    %c0_i32_1 = arith.constant 0 : i32
    %c0_i32_2 = arith.constant 0 : i32
    return %arg0, %c0_i32, %c0_i32_0, %c0_i32_1 : i32, i32, i32, i32
  }
  func.func @transform_8(%arg0: i32) -> (i32, i32, i32, i32) {
    %c0_i32 = arith.constant 0 : i32
    %c0_i32_0 = arith.constant 0 : i32
    %c0_i32_1 = arith.constant 0 : i32
    %c0_i32_2 = arith.constant 0 : i32
    return %arg0, %c0_i32, %c0_i32_0, %c0_i32_1 : i32, i32, i32, i32
  }
  func.func @transform_9(%arg0: i32) -> (i32, i32, i32, i32) {
    %c0_i32 = arith.constant 0 : i32
    %c0_i32_0 = arith.constant 0 : i32
    %c0_i32_1 = arith.constant 0 : i32
    %c0_i32_2 = arith.constant 0 : i32
    return %arg0, %c0_i32, %c0_i32_0, %c0_i32_1 : i32, i32, i32, i32
  }
}

module attributes {stable_mosaic.version = 11 : i64} {
  func.func @_attn_kernel(%arg0: i32, %arg1: memref<16x4x16xbf16, #tpu.memory_space<vmem>>, %arg2: memref<16x16x8xbf16, #tpu.memory_space<vmem>>, %arg3: memref<16x8x16xbf16, #tpu.memory_space<vmem>>, %arg4: memref<16x4x16xf32, #tpu.memory_space<vmem>>) attributes {dimension_semantics = [#tpu.dimension_semantics<parallel>], iteration_bounds = array<i64: 2>, scalar_prefetch = 0 : i64, scratch_operands = 0 : i64, tpu.core_type = #tpu.core_type<tc>, window_params = [{transform_indices = @transform_0, window_bounds = array<i64: 16, 4, 16>}, {transform_indices = @transform_1, window_bounds = array<i64: 16, 16, 8>}, {transform_indices = @transform_2, window_bounds = array<i64: 16, 8, 16>}, {transform_indices = @transform_3, window_bounds = array<i64: 16, 4, 16>}]} {
    %c0 = arith.constant 0 : index
    %c0_0 = arith.constant 0 : index
    %c0_1 = arith.constant 0 : index
    %0 = vector.load %arg1[%c0, %c0_0, %c0_1] : memref<16x4x16xbf16, #tpu.memory_space<vmem>>, vector<16x4x16xbf16>
    %c0_2 = arith.constant 0 : index
    %c0_3 = arith.constant 0 : index
    %c0_4 = arith.constant 0 : index
    %1 = vector.load %arg2[%c0_2, %c0_3, %c0_4] : memref<16x16x8xbf16, #tpu.memory_space<vmem>>, vector<16x16x8xbf16>
    "tpu.trace_start"() <{level = 10 : i32, message = "gwd,gdk->gwk"}> : () -> ()
    %cst = arith.constant dense<0.000000e+00> : vector<16x4x8xf32>
    %2 = tpu.matmul %0, %1, %cst {dimension_numbers = #tpu.dot_dimension_numbers<[2], [1], [1], [2], [0, 0, 0, 1, 1, 2], [0], [0]>} : vector<16x4x16xbf16>, vector<16x16x8xbf16>, vector<16x4x8xf32> -> vector<16x4x8xf32>
    "tpu.trace_stop"() : () -> ()
    %cst_5 = arith.constant 1.250000e-01 : f32
    %3 = vector.broadcast %cst_5 : f32 to vector<16x4x8xf32>
    %4 = arith.mulf %2, %3 : vector<16x4x8xf32>
    %cst_6 = arith.constant dense<0xFF800000> : vector<16x4xf32>
    %5 = vector.multi_reduction <maximumf>, %4, %cst_6 [2] : vector<16x4x8xf32> to vector<16x4xf32>
    %6 = vector.shape_cast %5 : vector<16x4xf32> to vector<16x4x1xf32>
    %7 = vector.broadcast %6 : vector<16x4x1xf32> to vector<16x4x8xf32>
    %8 = arith.subf %4, %7 : vector<16x4x8xf32>
    %9 = math.exp %8 : vector<16x4x8xf32>
    %cst_7 = arith.constant dense<0.000000e+00> : vector<16x4xf32>
    %10 = vector.multi_reduction <add>, %9, %cst_7 [2] : vector<16x4x8xf32> to vector<16x4xf32>
    %11 = vector.shape_cast %10 : vector<16x4xf32> to vector<16x4x1xf32>
    %12 = vector.broadcast %11 : vector<16x4x1xf32> to vector<16x4x8xf32>
    %13 = arith.divf %9, %12 : vector<16x4x8xf32>
    %14 = arith.truncf %13 : vector<16x4x8xf32> to vector<16x4x8xbf16>
    %c0_8 = arith.constant 0 : index
    %c0_9 = arith.constant 0 : index
    %c0_10 = arith.constant 0 : index
    %15 = vector.load %arg3[%c0_8, %c0_9, %c0_10] : memref<16x8x16xbf16, #tpu.memory_space<vmem>>, vector<16x8x16xbf16>
    "tpu.trace_start"() <{level = 10 : i32, message = "gwk,gkd->gwd"}> : () -> ()
    %cst_11 = arith.constant dense<0.000000e+00> : vector<16x4x16xf32>
    %16 = tpu.matmul %14, %15, %cst_11 {dimension_numbers = #tpu.dot_dimension_numbers<[2], [1], [1], [2], [0, 0, 0, 1, 1, 2], [0], [0]>} : vector<16x4x8xbf16>, vector<16x8x16xbf16>, vector<16x4x16xf32> -> vector<16x4x16xf32>
    "tpu.trace_stop"() : () -> ()
    %c0_12 = arith.constant 0 : index
    %c0_13 = arith.constant 0 : index
    %c0_14 = arith.constant 0 : index
    %17 = vector.load %arg4[%c0_12, %c0_13, %c0_14] : memref<16x4x16xf32, #tpu.memory_space<vmem>>, vector<16x4x16xf32>
    tpu.vector_store %arg4[%c0_12, %c0_13, %c0_14], %16 {strides = array<i32>} : memref<16x4x16xf32, #tpu.memory_space<vmem>>, vector<16x4x16xf32>,
    return
  }
  func.func @transform_0(%arg0: i32) -> (i32, i32, i32) {
    %c0_i32 = arith.constant 0 : i32
    %c0_i32_0 = arith.constant 0 : i32
    %c0_i32_1 = arith.constant 0 : i32
    return %arg0, %c0_i32, %c0_i32_0 : i32, i32, i32
  }
  func.func @transform_1(%arg0: i32) -> (i32, i32, i32) {
    %c0_i32 = arith.constant 0 : i32
    %c0_i32_0 = arith.constant 0 : i32
    %c0_i32_1 = arith.constant 0 : i32
    return %arg0, %c0_i32, %c0_i32_0 : i32, i32, i32
  }
  func.func @transform_2(%arg0: i32) -> (i32, i32, i32) {
    %c0_i32 = arith.constant 0 : i32
    %c0_i32_0 = arith.constant 0 : i32
    %c0_i32_1 = arith.constant 0 : i32
    return %arg0, %c0_i32, %c0_i32_0 : i32, i32, i32
  }
  func.func @transform_3(%arg0: i32) -> (i32, i32, i32) {
    %c0_i32 = arith.constant 0 : i32
    %c0_i32_0 = arith.constant 0 : i32
    %c0_i32_1 = arith.constant 0 : i32
    return %arg0, %c0_i32, %c0_i32_0 : i32, i32, i32
  }
}

module attributes {stable_mosaic.version = 11 : i64} {
  func.func @_fused_matmul_kernel(%arg0: i32, %arg1: memref<32x64xf32, #tpu.memory_space<vmem>>, %arg2: memref<64x64xbf16, #tpu.memory_space<vmem>>, %arg3: memref<1x64xf32, #tpu.memory_space<vmem>>, %arg4: memref<1x64xf32, #tpu.memory_space<vmem>>, %arg5: memref<1x64xf32, #tpu.memory_space<vmem>>, %arg6: memref<32x64xf32, #tpu.memory_space<vmem>>) attributes {dimension_semantics = [#tpu.dimension_semantics<arbitrary>], iteration_bounds = array<i64: 1>, scalar_prefetch = 0 : i64, scratch_operands = 0 : i64, tpu.core_type = #tpu.core_type<tc>, window_params = [{transform_indices = @transform_0, window_bounds = array<i64: 32, 64>}, {pipeline_mode = #tpu.pipeline_mode<synchronous>, transform_indices = @transform_1, window_bounds = array<i64: 64, 64>}, {pipeline_mode = #tpu.pipeline_mode<synchronous>, transform_indices = @transform_2, window_bounds = array<i64: 1, 64>}, {pipeline_mode = #tpu.pipeline_mode<synchronous>, transform_indices = @transform_3, window_bounds = array<i64: 1, 64>}, {pipeline_mode = #tpu.pipeline_mode<synchronous>, transform_indices = @transform_4, window_bounds = array<i64: 1, 64>}, {transform_indices = @transform_5, window_bounds = array<i64: 32, 64>}]} {
    %c0 = arith.constant 0 : index
    %c0_0 = arith.constant 0 : index
    %0 = vector.load %arg1[%c0, %c0_0] : memref<32x64xf32, #tpu.memory_space<vmem>>, vector<32x64xf32>
    %cst = arith.constant dense<0.000000e+00> : vector<32xf32>
    %1 = vector.multi_reduction <add>, %0, %cst [1] : vector<32x64xf32> to vector<32xf32>
    %2 = vector.shape_cast %1 : vector<32xf32> to vector<32x1xf32>
    %cst_1 = arith.constant 6.400000e+01 : f32
    %3 = vector.broadcast %cst_1 : f32 to vector<32x1xf32>
    %4 = arith.divf %2, %3 : vector<32x1xf32>
    %5 = vector.broadcast %4 : vector<32x1xf32> to vector<32x64xf32>
    %6 = arith.subf %0, %5 : vector<32x64xf32>
    %7 = arith.mulf %6, %6 : vector<32x64xf32>
    %cst_2 = arith.constant dense<0.000000e+00> : vector<32xf32>
    %8 = vector.multi_reduction <add>, %7, %cst_2 [1] : vector<32x64xf32> to vector<32xf32>
    %9 = vector.shape_cast %8 : vector<32xf32> to vector<32x1xf32>
    %cst_3 = arith.constant 6.400000e+01 : f32
    %10 = vector.broadcast %cst_3 : f32 to vector<32x1xf32>
    %11 = arith.divf %9, %10 : vector<32x1xf32>
    %12 = vector.broadcast %4 : vector<32x1xf32> to vector<32x64xf32>
    %13 = arith.subf %0, %12 : vector<32x64xf32>
    %cst_4 = arith.constant 9.99999974E-6 : f32
    %14 = vector.broadcast %cst_4 : f32 to vector<32x1xf32>
    %15 = arith.addf %11, %14 : vector<32x1xf32>
    %16 = math.rsqrt %15 : vector<32x1xf32>
    %17 = vector.broadcast %16 : vector<32x1xf32> to vector<32x64xf32>
    %18 = arith.mulf %13, %17 : vector<32x64xf32>
    %c0_5 = arith.constant 0 : index
    %c0_6 = arith.constant 0 : index
    %19 = vector.load %arg4[%c0_5, %c0_6] : memref<1x64xf32, #tpu.memory_space<vmem>>, vector<1x64xf32>
    %20 = vector.broadcast %19 : vector<1x64xf32> to vector<32x64xf32>
    %21 = arith.mulf %18, %20 : vector<32x64xf32>
    %c0_7 = arith.constant 0 : index
    %c0_8 = arith.constant 0 : index
    %22 = vector.load %arg5[%c0_7, %c0_8] : memref<1x64xf32, #tpu.memory_space<vmem>>, vector<1x64xf32>
    %23 = vector.broadcast %22 : vector<1x64xf32> to vector<32x64xf32>
    %24 = arith.addf %21, %23 : vector<32x64xf32>
    %25 = arith.truncf %24 : vector<32x64xf32> to vector<32x64xbf16>
    %c0_9 = arith.constant 0 : index
    %c0_10 = arith.constant 0 : index
    %26 = vector.load %arg2[%c0_9, %c0_10] : memref<64x64xbf16, #tpu.memory_space<vmem>>, vector<64x64xbf16>
    %cst_11 = arith.constant dense<0.000000e+00> : vector<32x64xf32>
    %27 = tpu.matmul %25, %26, %cst_11 {dimension_numbers = #tpu.dot_dimension_numbers<[1], [0], [0], [1], [0, 0, 1, 1], [], []>} : vector<32x64xbf16>, vector<64x64xbf16>, vector<32x64xf32> -> vector<32x64xf32>
    %c0_12 = arith.constant 0 : index
    %c0_13 = arith.constant 0 : index
    %28 = vector.load %arg3[%c0_12, %c0_13] : memref<1x64xf32, #tpu.memory_space<vmem>>, vector<1x64xf32>
    %29 = vector.broadcast %28 : vector<1x64xf32> to vector<32x64xf32>
    %30 = arith.addf %27, %29 : vector<32x64xf32>
    %cst_14 = arith.constant 0.000000e+00 : f32
    %31 = vector.broadcast %cst_14 : f32 to vector<32x64xf32>
    %32 = arith.maximumf %30, %31 : vector<32x64xf32>
    %c0_15 = arith.constant 0 : index
    %c0_16 = arith.constant 0 : index
    %33 = vector.load %arg6[%c0_15, %c0_16] : memref<32x64xf32, #tpu.memory_space<vmem>>, vector<32x64xf32>
    tpu.vector_store %arg6[%c0_15, %c0_16], %32 {strides = array<i32>} : memref<32x64xf32, #tpu.memory_space<vmem>>, vector<32x64xf32>,
    return
  }
  func.func @transform_0(%arg0: i32) -> (i32, i32) {
    %c0_i32 = arith.constant 0 : i32
    %c0_i32_0 = arith.constant 0 : i32
    return %arg0, %c0_i32 : i32, i32
  }
  func.func @transform_1(%arg0: i32) -> (i32, i32) {
    %c0_i32 = arith.constant 0 : i32
    %c0_i32_0 = arith.constant 0 : i32
    %c0_i32_1 = arith.constant 0 : i32
    return %c0_i32, %c0_i32_0 : i32, i32
  }
  func.func @transform_2(%arg0: i32) -> (i32, i32) {
    %c0_i32 = arith.constant 0 : i32
    %c0_i32_0 = arith.constant 0 : i32
    %c0_i32_1 = arith.constant 0 : i32
    return %c0_i32, %c0_i32_0 : i32, i32
  }
  func.func @transform_3(%arg0: i32) -> (i32, i32) {
    %c0_i32 = arith.constant 0 : i32
    %c0_i32_0 = arith.constant 0 : i32
    %c0_i32_1 = arith.constant 0 : i32
    return %c0_i32, %c0_i32_0 : i32, i32
  }
  func.func @transform_4(%arg0: i32) -> (i32, i32) {
    %c0_i32 = arith.constant 0 : i32
    %c0_i32_0 = arith.constant 0 : i32
    %c0_i32_1 = arith.constant 0 : i32
    return %c0_i32, %c0_i32_0 : i32, i32
  }
  func.func @transform_5(%arg0: i32) -> (i32, i32) {
    %c0_i32 = arith.constant 0 : i32
    %c0_i32_0 = arith.constant 0 : i32
    return %arg0, %c0_i32 : i32, i32
  }
}

module attributes {stable_mosaic.version = 11 : i64} {
  func.func @_fused_matmul_kernel(%arg0: i32, %arg1: memref<32x64xbf16, #tpu.memory_space<vmem>>, %arg2: memref<64x64xbf16, #tpu.memory_space<vmem>>, %arg3: memref<1x64xf32, #tpu.memory_space<vmem>>, %arg4: memref<1x64xf32, #tpu.memory_space<vmem>>, %arg5: memref<1x64xf32, #tpu.memory_space<vmem>>, %arg6: memref<32x64xf32, #tpu.memory_space<vmem>>) attributes {dimension_semantics = [#tpu.dimension_semantics<arbitrary>], iteration_bounds = array<i64: 1>, scalar_prefetch = 0 : i64, scratch_operands = 0 : i64, tpu.core_type = #tpu.core_type<tc>, window_params = [{transform_indices = @transform_0, window_bounds = array<i64: 32, 64>}, {pipeline_mode = #tpu.pipeline_mode<synchronous>, transform_indices = @transform_1, window_bounds = array<i64: 64, 64>}, {pipeline_mode = #tpu.pipeline_mode<synchronous>, transform_indices = @transform_2, window_bounds = array<i64: 1, 64>}, {pipeline_mode = #tpu.pipeline_mode<synchronous>, transform_indices = @transform_3, window_bounds = array<i64: 1, 64>}, {pipeline_mode = #tpu.pipeline_mode<synchronous>, transform_indices = @transform_4, window_bounds = array<i64: 1, 64>}, {transform_indices = @transform_5, window_bounds = array<i64: 32, 64>}]} {
    %c0 = arith.constant 0 : index
    %c0_0 = arith.constant 0 : index
    %0 = vector.load %arg1[%c0, %c0_0] : memref<32x64xbf16, #tpu.memory_space<vmem>>, vector<32x64xbf16>
    %c0_1 = arith.constant 0 : index
    %c0_2 = arith.constant 0 : index
    %1 = vector.load %arg2[%c0_1, %c0_2] : memref<64x64xbf16, #tpu.memory_space<vmem>>, vector<64x64xbf16>
    %cst = arith.constant dense<0.000000e+00> : vector<32x64xf32>
    %2 = tpu.matmul %0, %1, %cst {dimension_numbers = #tpu.dot_dimension_numbers<[1], [0], [0], [1], [0, 0, 1, 1], [], []>} : vector<32x64xbf16>, vector<64x64xbf16>, vector<32x64xf32> -> vector<32x64xf32>
    %c0_3 = arith.constant 0 : index
    %c0_4 = arith.constant 0 : index
    %3 = vector.load %arg3[%c0_3, %c0_4] : memref<1x64xf32, #tpu.memory_space<vmem>>, vector<1x64xf32>
    %4 = vector.broadcast %3 : vector<1x64xf32> to vector<32x64xf32>
    %5 = arith.addf %2, %4 : vector<32x64xf32>
    %c0_5 = arith.constant 0 : index
    %c0_6 = arith.constant 0 : index
    %6 = vector.load %arg6[%c0_5, %c0_6] : memref<32x64xf32, #tpu.memory_space<vmem>>, vector<32x64xf32>
    tpu.vector_store %arg6[%c0_5, %c0_6], %5 {strides = array<i32>} : memref<32x64xf32, #tpu.memory_space<vmem>>, vector<32x64xf32>,
    return
  }
  func.func @transform_0(%arg0: i32) -> (i32, i32) {
    %c0_i32 = arith.constant 0 : i32
    %c0_i32_0 = arith.constant 0 : i32
    return %arg0, %c0_i32 : i32, i32
  }
  func.func @transform_1(%arg0: i32) -> (i32, i32) {
    %c0_i32 = arith.constant 0 : i32
    %c0_i32_0 = arith.constant 0 : i32
    %c0_i32_1 = arith.constant 0 : i32
    return %c0_i32, %c0_i32_0 : i32, i32
  }
  func.func @transform_2(%arg0: i32) -> (i32, i32) {
    %c0_i32 = arith.constant 0 : i32
    %c0_i32_0 = arith.constant 0 : i32
    %c0_i32_1 = arith.constant 0 : i32
    return %c0_i32, %c0_i32_0 : i32, i32
  }
  func.func @transform_3(%arg0: i32) -> (i32, i32) {
    %c0_i32 = arith.constant 0 : i32
    %c0_i32_0 = arith.constant 0 : i32
    %c0_i32_1 = arith.constant 0 : i32
    return %c0_i32, %c0_i32_0 : i32, i32
  }
  func.func @transform_4(%arg0: i32) -> (i32, i32) {
    %c0_i32 = arith.constant 0 : i32
    %c0_i32_0 = arith.constant 0 : i32
    %c0_i32_1 = arith.constant 0 : i32
    return %c0_i32, %c0_i32_0 : i32, i32
  }
  func.func @transform_5(%arg0: i32) -> (i32, i32) {
    %c0_i32 = arith.constant 0 : i32
    %c0_i32_0 = arith.constant 0 : i32
    return %arg0, %c0_i32 : i32, i32
  }
}

module attributes {stable_mosaic.version = 11 : i64} {
  func.func @_upool_kernel(%arg0: i32, %arg1: memref<2x16x64xf32, #tpu.memory_space<vmem>>, %arg2: memref<1x64xf32, #tpu.memory_space<vmem>>, %arg3: memref<2x64xf32, #tpu.memory_space<vmem>>) attributes {dimension_semantics = [#tpu.dimension_semantics<arbitrary>], iteration_bounds = array<i64: 1>, scalar_prefetch = 0 : i64, scratch_operands = 0 : i64, tpu.core_type = #tpu.core_type<tc>, window_params = [{pipeline_mode = #tpu.pipeline_mode<synchronous>, transform_indices = @transform_0, window_bounds = array<i64: 2, 16, 64>}, {pipeline_mode = #tpu.pipeline_mode<synchronous>, transform_indices = @transform_1, window_bounds = array<i64: 1, 64>}, {pipeline_mode = #tpu.pipeline_mode<synchronous>, transform_indices = @transform_2, window_bounds = array<i64: 2, 64>}]} {
    %c0 = arith.constant 0 : index
    %c0_0 = arith.constant 0 : index
    %c0_1 = arith.constant 0 : index
    %0 = vector.load %arg1[%c0, %c0_0, %c0_1] : memref<2x16x64xf32, #tpu.memory_space<vmem>>, vector<2x16x64xf32>
    %c0_2 = arith.constant 0 : index
    %c0_3 = arith.constant 0 : index
    %1 = vector.load %arg2[%c0_2, %c0_3] : memref<1x64xf32, #tpu.memory_space<vmem>>, vector<1x64xf32>
    %2 = vector.shape_cast %1 : vector<1x64xf32> to vector<1x1x64xf32>
    %3 = vector.broadcast %2 : vector<1x1x64xf32> to vector<2x16x64xf32>
    %4 = arith.mulf %0, %3 : vector<2x16x64xf32>
    %cst = arith.constant dense<0.000000e+00> : vector<2x16xf32>
    %5 = vector.multi_reduction <add>, %4, %cst [2] : vector<2x16x64xf32> to vector<2x16xf32>
    %6 = vector.shape_cast %5 : vector<2x16xf32> to vector<2x16x1xf32>
    %7 = arith.mulf %6, %6 : vector<2x16x1xf32>
    %cst_4 = arith.constant dense<0.000000e+00> : vector<2x1xf32>
    %8 = vector.multi_reduction <add>, %7, %cst_4 [1] : vector<2x16x1xf32> to vector<2x1xf32>
    %9 = vector.shape_cast %8 : vector<2x1xf32> to vector<2x1x1xf32>
    %10 = math.sqrt %9 : vector<2x1x1xf32>
    %cst_5 = arith.constant 9.99999996E-13 : f32
    %11 = vector.broadcast %cst_5 : f32 to vector<2x1x1xf32>
    %12 = arith.maximumf %10, %11 : vector<2x1x1xf32>
    %13 = vector.broadcast %12 : vector<2x1x1xf32> to vector<2x16x1xf32>
    %14 = arith.divf %6, %13 : vector<2x16x1xf32>
    %15 = vector.broadcast %14 : vector<2x16x1xf32> to vector<2x16x64xf32>
    %16 = arith.mulf %15, %0 : vector<2x16x64xf32>
    %cst_6 = arith.constant dense<0.000000e+00> : vector<2x64xf32>
    %17 = vector.multi_reduction <add>, %16, %cst_6 [1] : vector<2x16x64xf32> to vector<2x64xf32>
    %c0_7 = arith.constant 0 : index
    %c0_8 = arith.constant 0 : index
    %18 = vector.load %arg3[%c0_7, %c0_8] : memref<2x64xf32, #tpu.memory_space<vmem>>, vector<2x64xf32>
    tpu.vector_store %arg3[%c0_7, %c0_8], %17 {strides = array<i32>} : memref<2x64xf32, #tpu.memory_space<vmem>>, vector<2x64xf32>,
    return
  }
  func.func @transform_0(%arg0: i32) -> (i32, i32, i32) {
    %c0_i32 = arith.constant 0 : i32
    %c0_i32_0 = arith.constant 0 : i32
    %c0_i32_1 = arith.constant 0 : i32
    %c0_i32_2 = arith.constant 0 : i32
    return %c0_i32, %c0_i32_0, %c0_i32_1 : i32, i32, i32
  }
  func.func @transform_1(%arg0: i32) -> (i32, i32) {
    %c0_i32 = arith.constant 0 : i32
    %c0_i32_0 = arith.constant 0 : i32
    %c0_i32_1 = arith.constant 0 : i32
    return %c0_i32, %c0_i32_0 : i32, i32
  }
  func.func @transform_2(%arg0: i32) -> (i32, i32) {
    %c0_i32 = arith.constant 0 : i32
    %c0_i32_0 = arith.constant 0 : i32
    %c0_i32_1 = arith.constant 0 : i32
    return %c0_i32, %c0_i32_0 : i32, i32
  }
}

module attributes {stable_mosaic.version = 11 : i64} {
  func.func @_fused_matmul_kernel(%arg0: i32, %arg1: memref<2x64xbf16, #tpu.memory_space<vmem>>, %arg2: memref<64x5xbf16, #tpu.memory_space<vmem>>, %arg3: memref<1x5xf32, #tpu.memory_space<vmem>>, %arg4: memref<1x64xf32, #tpu.memory_space<vmem>>, %arg5: memref<1x64xf32, #tpu.memory_space<vmem>>, %arg6: memref<2x5xf32, #tpu.memory_space<vmem>>) attributes {dimension_semantics = [#tpu.dimension_semantics<arbitrary>], iteration_bounds = array<i64: 1>, scalar_prefetch = 0 : i64, scratch_operands = 0 : i64, tpu.core_type = #tpu.core_type<tc>, window_params = [{transform_indices = @transform_0, window_bounds = array<i64: 2, 64>}, {pipeline_mode = #tpu.pipeline_mode<synchronous>, transform_indices = @transform_1, window_bounds = array<i64: 64, 5>}, {pipeline_mode = #tpu.pipeline_mode<synchronous>, transform_indices = @transform_2, window_bounds = array<i64: 1, 5>}, {pipeline_mode = #tpu.pipeline_mode<synchronous>, transform_indices = @transform_3, window_bounds = array<i64: 1, 64>}, {pipeline_mode = #tpu.pipeline_mode<synchronous>, transform_indices = @transform_4, window_bounds = array<i64: 1, 64>}, {transform_indices = @transform_5, window_bounds = array<i64: 2, 5>}]} {
    %c0 = arith.constant 0 : index
    %c0_0 = arith.constant 0 : index
    %0 = vector.load %arg1[%c0, %c0_0] : memref<2x64xbf16, #tpu.memory_space<vmem>>, vector<2x64xbf16>
    %c0_1 = arith.constant 0 : index
    %c0_2 = arith.constant 0 : index
    %1 = vector.load %arg2[%c0_1, %c0_2] : memref<64x5xbf16, #tpu.memory_space<vmem>>, vector<64x5xbf16>
    %cst = arith.constant dense<0.000000e+00> : vector<2x5xf32>
    %2 = tpu.matmul %0, %1, %cst {dimension_numbers = #tpu.dot_dimension_numbers<[1], [0], [0], [1], [0, 0, 1, 1], [], []>} : vector<2x64xbf16>, vector<64x5xbf16>, vector<2x5xf32> -> vector<2x5xf32>
    %c0_3 = arith.constant 0 : index
    %c0_4 = arith.constant 0 : index
    %3 = vector.load %arg3[%c0_3, %c0_4] : memref<1x5xf32, #tpu.memory_space<vmem>>, vector<1x5xf32>
    %4 = vector.broadcast %3 : vector<1x5xf32> to vector<2x5xf32>
    %5 = arith.addf %2, %4 : vector<2x5xf32>
    %c0_5 = arith.constant 0 : index
    %c0_6 = arith.constant 0 : index
    %6 = vector.load %arg6[%c0_5, %c0_6] : memref<2x5xf32, #tpu.memory_space<vmem>>, vector<2x5xf32>
    tpu.vector_store %arg6[%c0_5, %c0_6], %5 {strides = array<i32>} : memref<2x5xf32, #tpu.memory_space<vmem>>, vector<2x5xf32>,
    return
  }
  func.func @transform_0(%arg0: i32) -> (i32, i32) {
    %c0_i32 = arith.constant 0 : i32
    %c0_i32_0 = arith.constant 0 : i32
    return %arg0, %c0_i32 : i32, i32
  }
  func.func @transform_1(%arg0: i32) -> (i32, i32) {
    %c0_i32 = arith.constant 0 : i32
    %c0_i32_0 = arith.constant 0 : i32
    %c0_i32_1 = arith.constant 0 : i32
    return %c0_i32, %c0_i32_0 : i32, i32
  }
  func.func @transform_2(%arg0: i32) -> (i32, i32) {
    %c0_i32 = arith.constant 0 : i32
    %c0_i32_0 = arith.constant 0 : i32
    %c0_i32_1 = arith.constant 0 : i32
    return %c0_i32, %c0_i32_0 : i32, i32
  }
  func.func @transform_3(%arg0: i32) -> (i32, i32) {
    %c0_i32 = arith.constant 0 : i32
    %c0_i32_0 = arith.constant 0 : i32
    %c0_i32_1 = arith.constant 0 : i32
    return %c0_i32, %c0_i32_0 : i32, i32
  }
  func.func @transform_4(%arg0: i32) -> (i32, i32) {
    %c0_i32 = arith.constant 0 : i32
    %c0_i32_0 = arith.constant 0 : i32
    %c0_i32_1 = arith.constant 0 : i32
    return %c0_i32, %c0_i32_0 : i32, i32
  }
  func.func @transform_5(%arg0: i32) -> (i32, i32) {
    %c0_i32 = arith.constant 0 : i32
    %c0_i32_0 = arith.constant 0 : i32
    return %arg0, %c0_i32 : i32, i32
  }
}

</mosaic_0001>

<bundles_post_ra>
// kernel: vit_forward.15
= control target key start
LH: loop header
LB: loop body
LE: loop exit
PB: predicated region body
PF: predicated region fallthrough
CT: control target
= control target key end

     0   :  { %vm248_vm0 = vcmask 1044480   ;;  %vm249_vm1 = vcmask 1045504   ;;  %v654_v1 = vmov 65535   ;;  %vm193_vm2 = vcmask 613376   ;;  %s957_s1 = inlined_call_operand.vmem [shape: bf16[75,4], index: 1, kind: input, shape index: {}]   ;;  %s958_s3 = inlined_call_operand.vmem [shape: f32[1,75], index: 3, kind: input, shape index: {}]   ;;  %s959_s4 = inlined_call_operand.vmem [shape: f32[1,75], index: 4, kind: input, shape index: {}]   ;;  %s960_s0 = inlined_call_operand.vmem [shape: bf16[288,75], index: 0, kind: input, shape index: {}]   ;;  %s961_s2 = inlined_call_operand.vmem [shape: f32[1,4], index: 2, kind: input, shape index: {}]   ;;  %s962_s5 = inlined_call_operand.vmem [shape: f32[288,4], index: 5, kind: output, shape index: {}]  }
   0x1   :  { %v631_v0 = vld [vmem:[%s957_s1 + $0x20] sm:$0x3f]   ;;  %v250_v2 = vsel %vm248_vm0, 4294967295, %v654_v1  ;;  %v632_v5 = vld [vmem:[%s957_s1 + $0x18] sm:$0xff]   ;;  %v633_v7 = vld [vmem:[%s957_s1 + $0x10] sm:$0xff]   ;;  %vm468_vm3 = vcmask 31744  }
   0x2   :  { %v251_v3 = vsel %vm249_vm1, %v250_v2, 0  ;;  %v636_v6 = vld [vmem:[%s960_s0] sm:$0xff]   ;;  %v638_v8 = vld [vmem:[%s960_s0 + $0x50] sm:$0xff]   ;;  %v634_v9 = vld [vmem:[%s957_s1 + $0x8] sm:$0xff]  }
   0x3   :  { %v253_v4 = vand.u32 %v631_v0, %v251_v3  ;;  %584 = vmatprep.mubr.msk.bf16.mxu0 %vm193_vm2, %v636_v6  ;;  %604 = vmatprep.mubr.msk.bf16.mxu1 %vm193_vm2, %v638_v8  ;;  %v635_v10 = vld [vmem:[%s957_s1] sm:$0xff]   ;;  %v637_v11 = vld [vmem:[%s960_s0 + $0x8] sm:$0xff]   ;;  %v639_v12 = vld [vmem:[%s960_s0 + $0x58] sm:$0xff]  }
   0x4   :  { %v640_v13 = vld [vmem:[%s960_s0 + $0x10] sm:$0xff]   ;;  %v642_v14 = vld [vmem:[%s960_s0 + $0x60] sm:$0xff]   ;;  %v641_v15 = vld [vmem:[%s960_s0 + $0x18] sm:$0xff]  }
   0x5   :  { %574 = vmatprep.subr.bf16.mxu0 %v253_v4  ;;  %620 = vmatprep.subr.bf16.mxu1 %v253_v4  ;;  %v643_v16 = vld [vmem:[%s960_s0 + $0x68] sm:$0xff]   ;;  %v644_v17 = vld [vmem:[%s960_s0 + $0x20] sm:$0xff]   ;;  %v646_v18 = vld [vmem:[%s960_s0 + $0x70] sm:$0xff]  }
   0x6   :  { %575 = vmatpush3.bf16.msra.mxu0 %v253_v4  ;;  %625 = vmatpush3.bf16.msra.mxu1 %v253_v4  ;;  %v645_v19 = vld [vmem:[%s960_s0 + $0x28] sm:$0xff]   ;;  %v647_v20 = vld [vmem:[%s960_s0 + $0x78] sm:$0xff]   ;;  %v648_v21 = vld [vmem:[%s960_s0 + $0x30] sm:$0xff]  }
   0x7   :  { %576 = vmatprep.subr.bf16.mxu0 %v632_v5  ;;  %621 = vmatprep.subr.bf16.mxu1 %v632_v5  ;;  %v650_v22 = vld [vmem:[%s960_s0 + $0x80] sm:$0xff]   ;;  %v649_v23 = vld [vmem:[%s960_s0 + $0x38] sm:$0xff]   ;;  %v651_v24 = vld [vmem:[%s960_s0 + $0x88] sm:$0xff]  }
   0x8   :  { %v652_v25 = vld [vmem:[%s960_s0 + $0x40] sm:$0xff]   ;;  %v653_v26 = vld [vmem:[%s960_s0 + $0x48] sm:$0xff]  }
   0x9   :  { %v775_v27 = vld [vmem:[%s961_s2] ss:$0 sm:$0xff] }
   0xa   :  { %577 = vmatpush3.bf16.msra.mxu0 %v632_v5  ;;  %626 = vmatpush3.bf16.msra.mxu1 %v632_v5 }
   0xb   :  { %578 = vmatprep.subr.bf16.mxu0 %v633_v7  ;;  %622 = vmatprep.subr.bf16.mxu1 %v633_v7 }
   0xe   :  { %579 = vmatpush3.bf16.msra.mxu0 %v633_v7  ;;  %627 = vmatpush3.bf16.msra.mxu1 %v633_v7 }
   0xf   :  { %580 = vmatprep.subr.bf16.mxu0 %v634_v9  ;;  %623 = vmatprep.subr.bf16.mxu1 %v634_v9 }
  0x12   :  { %581 = vmatpush3.bf16.msra.mxu0 %v634_v9  ;;  %628 = vmatpush3.bf16.msra.mxu1 %v634_v9 }
  0x13   :  { %582 = vmatprep.subr.bf16.mxu0 %v635_v10  ;;  %624 = vmatprep.subr.bf16.mxu1 %v635_v10 }
  0x16   :  { %583 = vmatpush3.bf16.msra.mxu0 %v635_v10  ;;  %629 = vmatpush3.bf16.msra.mxu1 %v635_v10 }
  0x19   :  { %585 = vmatmul.mubr.msk.bf16.vlgmr.msra.gmra.mxu0 %vm193_vm2, %v637_v11  ;;  %605 = vmatmul.mubr.msk.bf16.vlgmr.msra.gmra.mxu1 %vm193_vm2, %v639_v12 }
  0x1a   :  { %588 = vmatprep.mubr.msk.bf16.mxu0 %vm193_vm2, %v640_v13  ;;  %608 = vmatprep.mubr.msk.bf16.mxu1 %vm193_vm2, %v642_v14 }
  0x21   :  { %589 = vmatmul.mubr.msk.bf16.gmra.mxu0 %vm193_vm2, %v641_v15  ;;  %609 = vmatmul.mubr.msk.bf16.gmra.mxu1 %vm193_vm2, %v643_v16 }
  0x22   :  { %592 = vmatprep.mubr.msk.bf16.mxu0 %vm193_vm2, %v644_v17  ;;  %612 = vmatprep.mubr.msk.bf16.mxu1 %vm193_vm2, %v646_v18 }
  0x29   :  { %593 = vmatmul.mubr.msk.bf16.gmra.mxu0 %vm193_vm2, %v645_v19  ;;  %613 = vmatmul.mubr.msk.bf16.gmra.mxu1 %vm193_vm2, %v647_v20 }
  0x2a   :  { %596 = vmatprep.mubr.msk.bf16.mxu0 %vm193_vm2, %v648_v21  ;;  %616 = vmatprep.mubr.msk.bf16.mxu1 %vm193_vm2, %v650_v22 }
  0x31   :  { %597 = vmatmul.mubr.msk.bf16.gmra.mxu0 %vm193_vm2, %v649_v23  ;;  %617 = vmatmul.mubr.msk.bf16.gmra.mxu1 %vm193_vm2, %v651_v24 }
  0x32   :  { %600 = vmatprep.mubr.msk.bf16.mxu0 %vm193_vm2, %v652_v25 }
  0x39   :  { %601 = vmatmul.mubr.msk.bf16.gmra.mxu0 %vm193_vm2, %v653_v26 }
  0xd9   :  { %v586_v28 = vpop.f32.mrf.mxu0  ;;  %v606_v29 = vpop.f32.mrf.mxu1 }
  0xda   :  { %v298_v30 = vadd.f32 %v586_v28, %v775_v27  ;;  %v378_v31 = vadd.f32 %v606_v29, %v775_v27 }
  0xdb   :  { %v289_v32 = vpop.f32.mrf.mxu0  ;;  %v369_v33 = vpop.f32.mrf.mxu1 }
  0xdc   :  { %v434_v34 = vmul.f32 0.999995, %v298_v30  ;;  %v290_v35 = vadd.f32 %v775_v27, %v289_v32  ;;  %v454_v36 = vmul.f32 0.999995, %v378_v31  ;;  %v370_v37 = vadd.f32 %v775_v27, %v369_v33 }
  0xdd   :  { %v587_v38 = vpop.f32.mrf.mxu0  ;;  %v607_v39 = vpop.f32.mrf.mxu1 }
  0xde   :  { %471 = vst.msk [vmem:[%s962_s5 + $0x10] sm:$0xff] %vm468_vm3, %v434_v34  ;;  %v432_v40 = vmul.f32 0.999995, %v290_v35  ;;  %491 = vst.msk [vmem:[%s962_s5 + $0xb0] sm:$0xff] %vm468_vm3, %v454_v36  ;;  %v301_v41 = vadd.f32 %v587_v38, %v775_v27  ;;  %v452_v42 = vmul.f32 0.999995, %v370_v37  ;;  %v381_v43 = vadd.f32 %v607_v39, %v775_v27 }
  0xdf   :  { %v292_v44 = vpop.f32.mrf.mxu0  ;;  %v372_v45 = vpop.f32.mrf.mxu1 }
  0xe0   :  { %469 = vst.msk [vmem:[%s962_s5] sm:$0xff] %vm468_vm3, %v432_v40  ;;  %v435_v46 = vmul.f32 0.999995, %v301_v41  ;;  %489 = vst.msk [vmem:[%s962_s5 + $0xa0] sm:$0xff] %vm468_vm3, %v452_v42  ;;  %v293_v47 = vadd.f32 %v775_v27, %v292_v44  ;;  %v455_v48 = vmul.f32 0.999995, %v381_v43  ;;  %v373_v49 = vadd.f32 %v775_v27, %v372_v45 }
  0xe1   :  { %v590_v50 = vpop.f32.mrf.mxu0  ;;  %v610_v51 = vpop.f32.mrf.mxu1 }
  0xe2   :  { %472 = vst.msk [vmem:[%s962_s5 + $0x18] sm:$0xff] %vm468_vm3, %v435_v46  ;;  %v433_v52 = vmul.f32 0.999995, %v293_v47  ;;  %492 = vst.msk [vmem:[%s962_s5 + $0xb8] sm:$0xff] %vm468_vm3, %v455_v48  ;;  %v314_v53 = vadd.f32 %v590_v50, %v775_v27  ;;  %v453_v54 = vmul.f32 0.999995, %v373_v49  ;;  %v394_v55 = vadd.f32 %v610_v51, %v775_v27 }
  0xe3   :  { %v305_v56 = vpop.f32.mrf.mxu0  ;;  %v385_v57 = vpop.f32.mrf.mxu1 }
  0xe4   :  { %470 = vst.msk [vmem:[%s962_s5 + $0x8] sm:$0xff] %vm468_vm3, %v433_v52  ;;  %v438_v58 = vmul.f32 0.999995, %v314_v53  ;;  %490 = vst.msk [vmem:[%s962_s5 + $0xa8] sm:$0xff] %vm468_vm3, %v453_v54  ;;  %v306_v59 = vadd.f32 %v775_v27, %v305_v56  ;;  %v458_v60 = vmul.f32 0.999995, %v394_v55  ;;  %v386_v61 = vadd.f32 %v775_v27, %v385_v57 }
  0xe5   :  { %v591_v62 = vpop.f32.mrf.mxu0  ;;  %v611_v63 = vpop.f32.mrf.mxu1 }
  0xe6   :  { %475 = vst.msk [vmem:[%s962_s5 + $0x30] sm:$0xff] %vm468_vm3, %v438_v58  ;;  %v436_v0 = vmul.f32 0.999995, %v306_v59  ;;  %495 = vst.msk [vmem:[%s962_s5 + $0xd0] sm:$0xff] %vm468_vm3, %v458_v60  ;;  %v317_v1 = vadd.f32 %v591_v62, %v775_v27  ;;  %v456_v2 = vmul.f32 0.999995, %v386_v61  ;;  %v397_v3 = vadd.f32 %v611_v63, %v775_v27 }
  0xe7   :  { %v308_v4 = vpop.f32.mrf.mxu0  ;;  %v388_v5 = vpop.f32.mrf.mxu1 }
  0xe8   :  { %473 = vst.msk [vmem:[%s962_s5 + $0x20] sm:$0xff] %vm468_vm3, %v436_v0  ;;  %v439_v6 = vmul.f32 0.999995, %v317_v1  ;;  %493 = vst.msk [vmem:[%s962_s5 + $0xc0] sm:$0xff] %vm468_vm3, %v456_v2  ;;  %v309_v7 = vadd.f32 %v775_v27, %v308_v4  ;;  %v459_v8 = vmul.f32 0.999995, %v397_v3  ;;  %v389_v9 = vadd.f32 %v775_v27, %v388_v5 }
  0xe9   :  { %v594_v10 = vpop.f32.mrf.mxu0  ;;  %v614_v11 = vpop.f32.mrf.mxu1 }
  0xea   :  { %476 = vst.msk [vmem:[%s962_s5 + $0x38] sm:$0xff] %vm468_vm3, %v439_v6  ;;  %v437_v12 = vmul.f32 0.999995, %v309_v7  ;;  %496 = vst.msk [vmem:[%s962_s5 + $0xd8] sm:$0xff] %vm468_vm3, %v459_v8  ;;  %v330_v13 = vadd.f32 %v594_v10, %v775_v27  ;;  %v457_v14 = vmul.f32 0.999995, %v389_v9  ;;  %v410_v15 = vadd.f32 %v614_v11, %v775_v27 }
  0xeb   :  { %v321_v16 = vpop.f32.mrf.mxu0  ;;  %v401_v17 = vpop.f32.mrf.mxu1 }
  0xec   :  { %474 = vst.msk [vmem:[%s962_s5 + $0x28] sm:$0xff] %vm468_vm3, %v437_v12  ;;  %v442_v18 = vmul.f32 0.999995, %v330_v13  ;;  %494 = vst.msk [vmem:[%s962_s5 + $0xc8] sm:$0xff] %vm468_vm3, %v457_v14  ;;  %v322_v19 = vadd.f32 %v775_v27, %v321_v16  ;;  %v462_v20 = vmul.f32 0.999995, %v410_v15  ;;  %v402_v21 = vadd.f32 %v775_v27, %v401_v17 }
  0xed   :  { %v595_v22 = vpop.f32.mrf.mxu0  ;;  %v615_v23 = vpop.f32.mrf.mxu1 }
  0xee   :  { %479 = vst.msk [vmem:[%s962_s5 + $0x50] sm:$0xff] %vm468_vm3, %v442_v18  ;;  %v440_v24 = vmul.f32 0.999995, %v322_v19  ;;  %499 = vst.msk [vmem:[%s962_s5 + $0xf0] sm:$0xff] %vm468_vm3, %v462_v20  ;;  %v333_v25 = vadd.f32 %v595_v22, %v775_v27  ;;  %v460_v26 = vmul.f32 0.999995, %v402_v21  ;;  %v413_v28 = vadd.f32 %v615_v23, %v775_v27 }
  0xef   :  { %v324_v29 = vpop.f32.mrf.mxu0  ;;  %v404_v30 = vpop.f32.mrf.mxu1 }
  0xf0   :  { %477 = vst.msk [vmem:[%s962_s5 + $0x40] sm:$0xff] %vm468_vm3, %v440_v24  ;;  %v443_v31 = vmul.f32 0.999995, %v333_v25  ;;  %497 = vst.msk [vmem:[%s962_s5 + $0xe0] sm:$0xff] %vm468_vm3, %v460_v26  ;;  %v325_v32 = vadd.f32 %v775_v27, %v324_v29  ;;  %v463_v33 = vmul.f32 0.999995, %v413_v28  ;;  %v405_v34 = vadd.f32 %v775_v27, %v404_v30 }
  0xf1   :  { %v598_v35 = vpop.f32.mrf.mxu0  ;;  %v618_v36 = vpop.f32.mrf.mxu1 }
  0xf2   :  { %480 = vst.msk [vmem:[%s962_s5 + $0x58] sm:$0xff] %vm468_vm3, %v443_v31  ;;  %v441_v37 = vmul.f32 0.999995, %v325_v32  ;;  %500 = vst.msk [vmem:[%s962_s5 + $0xf8] sm:$0xff] %vm468_vm3, %v463_v33  ;;  %v346_v38 = vadd.f32 %v598_v35, %v775_v27  ;;  %v461_v39 = vmul.f32 0.999995, %v405_v34  ;;  %v426_v40 = vadd.f32 %v618_v36, %v775_v27 }
  0xf3   :  { %v337_v41 = vpop.f32.mrf.mxu0  ;;  %v417_v42 = vpop.f32.mrf.mxu1 }
  0xf4   :  { %478 = vst.msk [vmem:[%s962_s5 + $0x48] sm:$0xff] %vm468_vm3, %v441_v37  ;;  %v446_v43 = vmul.f32 0.999995, %v346_v38  ;;  %498 = vst.msk [vmem:[%s962_s5 + $0xe8] sm:$0xff] %vm468_vm3, %v461_v39  ;;  %v338_v44 = vadd.f32 %v775_v27, %v337_v41  ;;  %v466_v45 = vmul.f32 0.999995, %v426_v40  ;;  %v418_v46 = vadd.f32 %v775_v27, %v417_v42 }
  0xf5   :  { %v599_v47 = vpop.f32.mrf.mxu0  ;;  %v619_v48 = vpop.f32.mrf.mxu1 }
  0xf6   :  { %483 = vst.msk [vmem:[%s962_s5 + $0x70] sm:$0xff] %vm468_vm3, %v446_v43  ;;  %v444_v49 = vmul.f32 0.999995, %v338_v44  ;;  %503 = vst.msk [vmem:[%s962_s5 + $0x110] sm:$0xff] %vm468_vm3, %v466_v45  ;;  %v349_v50 = vadd.f32 %v599_v47, %v775_v27  ;;  %v464_v51 = vmul.f32 0.999995, %v418_v46  ;;  %v429_v52 = vadd.f32 %v619_v48, %v775_v27 }
  0xf7   :  { %v340_v53 = vpop.f32.mrf.mxu0  ;;  %v420_v54 = vpop.f32.mrf.mxu1 }
  0xf8   :  { %481 = vst.msk [vmem:[%s962_s5 + $0x60] sm:$0xff] %vm468_vm3, %v444_v49  ;;  %v447_v55 = vmul.f32 0.999995, %v349_v50  ;;  %501 = vst.msk [vmem:[%s962_s5 + $0x100] sm:$0xff] %vm468_vm3, %v464_v51  ;;  %v341_v56 = vadd.f32 %v775_v27, %v340_v53  ;;  %v467_v57 = vmul.f32 0.999995, %v429_v52  ;;  %v421_v58 = vadd.f32 %v775_v27, %v420_v54 }
  0xf9   :  { %v602_v59 = vpop.f32.mrf.mxu0 }
  0xfa   :  { %484 = vst.msk [vmem:[%s962_s5 + $0x78] sm:$0xff] %vm468_vm3, %v447_v55  ;;  %v445_v60 = vmul.f32 0.999995, %v341_v56  ;;  %504 = vst.msk [vmem:[%s962_s5 + $0x118] sm:$0xff] %vm468_vm3, %v467_v57  ;;  %v362_v61 = vadd.f32 %v602_v59, %v775_v27  ;;  %v465_v62 = vmul.f32 0.999995, %v421_v58 }
  0xfb   :  { %v353_v63 = vpop.f32.mrf.mxu0 }
  0xfc   :  { %482 = vst.msk [vmem:[%s962_s5 + $0x68] sm:$0xff] %vm468_vm3, %v445_v60  ;;  %v450_v0 = vmul.f32 0.999995, %v362_v61  ;;  %502 = vst.msk [vmem:[%s962_s5 + $0x108] sm:$0xff] %vm468_vm3, %v465_v62  ;;  %v354_v1 = vadd.f32 %v775_v27, %v353_v63 }
  0xfd   :  { %v603_v2 = vpop.f32.mrf.mxu0 }
  0xfe   :  { %487 = vst.msk [vmem:[%s962_s5 + $0x90] sm:$0xff] %vm468_vm3, %v450_v0  ;;  %v448_v3 = vmul.f32 0.999995, %v354_v1  ;;  %v365_v4 = vadd.f32 %v603_v2, %v775_v27 }
  0xff   :  { %v356_v5 = vpop.f32.mrf.mxu0 }
 0x100   :  { %485 = vst.msk [vmem:[%s962_s5 + $0x80] sm:$0xff] %vm468_vm3, %v448_v3  ;;  %v451_v6 = vmul.f32 0.999995, %v365_v4  ;;  %v357_v7 = vadd.f32 %v775_v27, %v356_v5 }
 0x102   :  { %488 = vst.msk [vmem:[%s962_s5 + $0x98] sm:$0xff] %vm468_vm3, %v451_v6  ;;  %v449_v8 = vmul.f32 0.999995, %v357_v7 }
 0x104   :  { %486 = vst.msk [vmem:[%s962_s5 + $0x88] sm:$0xff] %vm468_vm3, %v449_v8 }

// kernel: vit_forward.16
= control target key start
LH: loop header
LB: loop body
LE: loop exit
PB: predicated region body
PF: predicated region fallthrough
CT: control target
= control target key end

     0   :  { %vm50_vm0 = vcmask 130048   ;;  %vm106_vm1 = vcmask 261120   ;;  %s187_s1 = inlined_call_operand.vmem [shape: bf16[16,32], index: 1, kind: input, shape index: {}]   ;;  %s188_s3 = inlined_call_operand.vmem [shape: f32[1,16], index: 3, kind: input, shape index: {}]   ;;  %s189_s4 = inlined_call_operand.vmem [shape: f32[1,16], index: 4, kind: input, shape index: {}]   ;;  %s190_s0 = inlined_call_operand.vmem [shape: bf16[32,16], index: 0, kind: input, shape index: {}]   ;;  %s191_s2 = inlined_call_operand.vmem [shape: f32[1,32], index: 2, kind: input, shape index: {}]   ;;  %s192_s5 = inlined_call_operand.vmem [shape: f32[32,32], index: 5, kind: output, shape index: {}]  }
   0x1   :  { %v130_v0 = vld [vmem:[%s187_s1] sm:$0xff]   ;;  %v132_v2 = vld [vmem:[%s190_s0 + $0x8] sm:$0xff]  }
   0x2   :  { %v131_v1 = vld [vmem:[%s190_s0] sm:$0xff]   ;;  %124 = vmatprep.subr.bf16.mxu0 %v130_v0 }
   0x3   :  { %125 = vmatpush3.bf16.msra.mxu0 %v130_v0  ;;  %126 = vmatprep.mubr.msk.bf16.mxu0 %vm50_vm0, %v131_v1  ;;  %v115_v3 = vld [vmem:[%s191_s2] ss:$0 sm:$0xff] }
   0x6   :  { %127 = vmatmul.mubr.msk.bf16.vlgmr.msra.gmra.mxu0 %vm50_vm0, %v132_v2 }
  0xc6   :  { %v128_v4 = vpop.f32.mrf.mxu0 }
  0xc7   :  { %v100_v5 = vadd.f32 %v128_v4, %v115_v3 }
  0xc8   :  { %v91_v6 = vpop.f32.mrf.mxu0 }
  0xc9   :  { %109 = vst.msk [vmem:[%s192_s5 + $0x10] sm:$0xff] %vm106_vm1, %v100_v5  ;;  %v92_v7 = vadd.f32 %v115_v3, %v91_v6 }
  0xca   :  { %v129_v8 = vpop.f32.mrf.mxu0 }
  0xcb   :  { %107 = vst.msk [vmem:[%s192_s5] sm:$0xff] %vm106_vm1, %v92_v7  ;;  %v103_v9 = vadd.f32 %v129_v8, %v115_v3 }
  0xcc   :  { %v94_v10 = vpop.f32.mrf.mxu0 }
  0xcd   :  { %110 = vst.msk [vmem:[%s192_s5 + $0x18] sm:$0xff] %vm106_vm1, %v103_v9  ;;  %v95_v11 = vadd.f32 %v115_v3, %v94_v10 }
  0xcf   :  { %108 = vst.msk [vmem:[%s192_s5 + $0x8] sm:$0xff] %vm106_vm1, %v95_v11 }

// kernel: vit_forward.19
= control target key start
LH: loop header
LB: loop body
LE: loop exit
PB: predicated region body
PF: predicated region fallthrough
CT: control target
= control target key end

     0   :  { %vm96_vm0 = vcmask 1040384   ;;  %vm89_vm1 = vcmask 801792   ;;  %vm153_vm2 = vcmask 7168   ;;  %s281_s1 = inlined_call_operand.vmem [shape: bf16[98,1], index: 1, kind: input, shape index: {}]   ;;  %s282_s2 = inlined_call_operand.<no memory space> [shape: f32[1,1], index: 2, kind: input, shape index: {}]   ;;  %s283_s3 = inlined_call_operand.vmem [shape: f32[1,98], index: 3, kind: input, shape index: {}]   ;;  %s284_s4 = inlined_call_operand.vmem [shape: f32[1,98], index: 4, kind: input, shape index: {}]   ;;  %s285_s0 = inlined_call_operand.vmem [shape: bf16[32,98], index: 0, kind: input, shape index: {}]   ;;  %s286_s5 = inlined_call_operand.vmem [shape: f32[32,1], index: 5, kind: output, shape index: {}]  }
   0x1   :  { %v201_v0 = vld [vmem:[%s281_s1 + $0x30] ss:$0 sps:$4 sm:$0x11]   ;;  %v202_v1 = vld [vmem:[%s281_s1 + $0x28] sm:$0xff]   ;;  %v203_v3 = vld [vmem:[%s281_s1 + $0x20] sm:$0xff]  }
   0x2   :  { %200 = vmatprep.subr.msk.bf16.mxu0 %vm96_vm0, %v201_v0  ;;  %v98_v2 = vsel %vm96_vm0, %v201_v0, 0  ;;  %v208_v4 = vld [vmem:[%s285_s0] sm:$0xff]   ;;  %v204_v5 = vld [vmem:[%s281_s1 + $0x18] sm:$0xff]   ;;  %v205_v6 = vld [vmem:[%s281_s1 + $0x10] sm:$0xff]  }
   0x3   :  { %183 = vmatpush3.bf16.msra.mxu0 %v98_v2  ;;  %196 = vmatprep.mubr.msk.bf16.mxu0 %vm89_vm1, %v208_v4  ;;  %v206_v7 = vld [vmem:[%s281_s1 + $0x8] sm:$0xff]   ;;  %v207_v8 = vld [vmem:[%s281_s1] sm:$0xff]  }
   0x4   :  { %184 = vmatprep.subr.bf16.mxu0 %v202_v1  ;;  %v209_v9 = vld [vmem:[%s285_s0 + $0x8] sm:$0xff]  }
   0x7   :  { %185 = vmatpush3.bf16.msra.mxu0 %v202_v1 }
   0x8   :  { %186 = vmatprep.subr.bf16.mxu0 %v203_v3 }
   0xb   :  { %187 = vmatpush3.bf16.msra.mxu0 %v203_v3 }
   0xc   :  { %188 = vmatprep.subr.bf16.mxu0 %v204_v5 }
   0xf   :  { %189 = vmatpush3.bf16.msra.mxu0 %v204_v5 }
  0x10   :  { %190 = vmatprep.subr.bf16.mxu0 %v205_v6 }
  0x13   :  { %191 = vmatpush3.bf16.msra.mxu0 %v205_v6 }
  0x14   :  { %192 = vmatprep.subr.bf16.mxu0 %v206_v7 }
  0x17   :  { %193 = vmatpush3.bf16.msra.mxu0 %v206_v7 }
  0x18   :  { %194 = vmatprep.subr.bf16.mxu0 %v207_v8 }
  0x1b   :  { %195 = vmatpush3.bf16.msra.mxu0 %v207_v8 }
  0x1e   :  { %197 = vmatmul.mubr.msk.bf16.vlgmr.msra.gmra.mxu0 %vm89_vm1, %v209_v9 }
  0xde   :  { %v198_v10 = vpop.f32.mrf.mxu0 }
  0xdf   :  { %v151_v11 = vmul.f32 0.999995, %v198_v10 }
  0xe0   :  { %v134_v12 = vpop.f32.mrf.mxu0 }
  0xe1   :  { %156 = vst.msk [vmem:[%s286_s5 + $0x10] sm:$0xff] %vm153_vm2, %v151_v11  ;;  %v149_v13 = vmul.f32 0.999995, %v134_v12 }
  0xe2   :  { %v199_v14 = vpop.f32.mrf.mxu0 }
  0xe3   :  { %154 = vst.msk [vmem:[%s286_s5] sm:$0xff] %vm153_vm2, %v149_v13  ;;  %v152_v15 = vmul.f32 0.999995, %v199_v14 }
  0xe4   :  { %v137_v16 = vpop.f32.mrf.mxu0 }
  0xe5   :  { %157 = vst.msk [vmem:[%s286_s5 + $0x18] sm:$0xff] %vm153_vm2, %v152_v15  ;;  %v150_v17 = vmul.f32 0.999995, %v137_v16 }
  0xe7   :  { %155 = vst.msk [vmem:[%s286_s5 + $0x8] sm:$0xff] %vm153_vm2, %v150_v17 }

// kernel: vit_forward.18
= control target key start
LH: loop header
LB: loop body
LE: loop exit
PB: predicated region body
PF: predicated region fallthrough
CT: control target
= control target key end

     0   :  { %vm236_vm0 = vcmask 1040384   ;;  %vm187_vm1 = vcmask 801792   ;;  %vm433_vm2 = vcmask 7168   ;;  %s860_s1 = inlined_call_operand.vmem [shape: bf16[98,1], index: 1, kind: input, shape index: {}]   ;;  %s861_s2 = inlined_call_operand.<no memory space> [shape: f32[1,1], index: 2, kind: input, shape index: {}]   ;;  %s862_s3 = inlined_call_operand.vmem [shape: f32[1,98], index: 3, kind: input, shape index: {}]   ;;  %s863_s4 = inlined_call_operand.vmem [shape: f32[1,98], index: 4, kind: input, shape index: {}]   ;;  %s864_s0 = inlined_call_operand.vmem [shape: bf16[256,98], index: 0, kind: input, shape index: {}]   ;;  %s865_s5 = inlined_call_operand.vmem [shape: f32[256,1], index: 5, kind: output, shape index: {}]  }
   0x1   :  { %v594_v0 = vld [vmem:[%s860_s1 + $0x30] ss:$0 sps:$4 sm:$0x11]   ;;  %v595_v1 = vld [vmem:[%s860_s1 + $0x28] sm:$0xff]   ;;  %v596_v3 = vld [vmem:[%s860_s1 + $0x20] sm:$0xff]  }
   0x2   :  { %592 = vmatprep.subr.msk.bf16.mxu0 %vm236_vm0, %v594_v0  ;;  %593 = vmatprep.subr.msk.bf16.mxu1 %vm236_vm0, %v594_v0  ;;  %v238_v2 = vsel %vm236_vm0, %v594_v0, 0  ;;  %v597_v4 = vld [vmem:[%s860_s1 + $0x18] sm:$0xff]   ;;  %v601_v5 = vld [vmem:[%s864_s0] sm:$0xff]   ;;  %v598_v7 = vld [vmem:[%s860_s1 + $0x10] sm:$0xff]  }
   0x3   :  { %533 = vmatpush3.bf16.msra.mxu0 %v238_v2  ;;  %585 = vmatpush3.bf16.msra.mxu1 %v238_v2  ;;  %v602_v6 = vld [vmem:[%s864_s0 + $0x40] sm:$0xff]   ;;  %v599_v8 = vld [vmem:[%s860_s1 + $0x8] sm:$0xff]   ;;  %v605_v12 = vld [vmem:[%s864_s0 + $0x10] sm:$0xff]  }
   0x4   :  { %534 = vmatprep.subr.bf16.mxu0 %v595_v1  ;;  %579 = vmatprep.subr.bf16.mxu1 %v595_v1  ;;  %v600_v9 = vld [vmem:[%s860_s1] sm:$0xff]   ;;  %v603_v10 = vld [vmem:[%s864_s0 + $0x8] sm:$0xff]   ;;  %v606_v13 = vld [vmem:[%s864_s0 + $0x50] sm:$0xff]  }
   0x5   :  { %546 = vmatprep.mubr.msk.bf16.mxu0 %vm187_vm1, %v601_v5  ;;  %562 = vmatprep.mubr.msk.bf16.mxu1 %vm187_vm1, %v602_v6  ;;  %v604_v11 = vld [vmem:[%s864_s0 + $0x48] sm:$0xff]   ;;  %v607_v14 = vld [vmem:[%s864_s0 + $0x18] sm:$0xff]   ;;  %v609_v16 = vld [vmem:[%s864_s0 + $0x20] sm:$0xff]  }
   0x6   :  { %v608_v15 = vld [vmem:[%s864_s0 + $0x58] sm:$0xff]   ;;  %v610_v17 = vld [vmem:[%s864_s0 + $0x60] sm:$0xff]   ;;  %v611_v18 = vld [vmem:[%s864_s0 + $0x28] sm:$0xff]  }
   0x7   :  { %535 = vmatpush3.bf16.msra.mxu0 %v595_v1  ;;  %586 = vmatpush3.bf16.msra.mxu1 %v595_v1  ;;  %v612_v19 = vld [vmem:[%s864_s0 + $0x68] sm:$0xff]   ;;  %v613_v20 = vld [vmem:[%s864_s0 + $0x30] sm:$0xff]   ;;  %v615_v22 = vld [vmem:[%s864_s0 + $0x38] sm:$0xff]  }
   0x8   :  { %536 = vmatprep.subr.bf16.mxu0 %v596_v3  ;;  %580 = vmatprep.subr.bf16.mxu1 %v596_v3  ;;  %v614_v21 = vld [vmem:[%s864_s0 + $0x70] sm:$0xff]   ;;  %v616_v23 = vld [vmem:[%s864_s0 + $0x78] sm:$0xff]  }
   0xb   :  { %537 = vmatpush3.bf16.msra.mxu0 %v596_v3  ;;  %587 = vmatpush3.bf16.msra.mxu1 %v596_v3 }
   0xc   :  { %538 = vmatprep.subr.bf16.mxu0 %v597_v4  ;;  %581 = vmatprep.subr.bf16.mxu1 %v597_v4 }
   0xf   :  { %539 = vmatpush3.bf16.msra.mxu0 %v597_v4  ;;  %588 = vmatpush3.bf16.msra.mxu1 %v597_v4 }
  0x10   :  { %540 = vmatprep.subr.bf16.mxu0 %v598_v7  ;;  %582 = vmatprep.subr.bf16.mxu1 %v598_v7 }
  0x13   :  { %541 = vmatpush3.bf16.msra.mxu0 %v598_v7  ;;  %589 = vmatpush3.bf16.msra.mxu1 %v598_v7 }
  0x14   :  { %542 = vmatprep.subr.bf16.mxu0 %v599_v8  ;;  %583 = vmatprep.subr.bf16.mxu1 %v599_v8 }
  0x17   :  { %543 = vmatpush3.bf16.msra.mxu0 %v599_v8  ;;  %590 = vmatpush3.bf16.msra.mxu1 %v599_v8 }
  0x18   :  { %544 = vmatprep.subr.bf16.mxu0 %v600_v9  ;;  %584 = vmatprep.subr.bf16.mxu1 %v600_v9 }
  0x1b   :  { %545 = vmatpush3.bf16.msra.mxu0 %v600_v9  ;;  %591 = vmatpush3.bf16.msra.mxu1 %v600_v9 }
  0x1e   :  { %547 = vmatmul.mubr.msk.bf16.vlgmr.msra.gmra.mxu0 %vm187_vm1, %v603_v10  ;;  %563 = vmatmul.mubr.msk.bf16.vlgmr.msra.gmra.mxu1 %vm187_vm1, %v604_v11 }
  0x1f   :  { %550 = vmatprep.mubr.msk.bf16.mxu0 %vm187_vm1, %v605_v12  ;;  %566 = vmatprep.mubr.msk.bf16.mxu1 %vm187_vm1, %v606_v13 }
  0x26   :  { %551 = vmatmul.mubr.msk.bf16.gmra.mxu0 %vm187_vm1, %v607_v14  ;;  %567 = vmatmul.mubr.msk.bf16.gmra.mxu1 %vm187_vm1, %v608_v15 }
  0x27   :  { %554 = vmatprep.mubr.msk.bf16.mxu0 %vm187_vm1, %v609_v16  ;;  %570 = vmatprep.mubr.msk.bf16.mxu1 %vm187_vm1, %v610_v17 }
  0x2e   :  { %555 = vmatmul.mubr.msk.bf16.gmra.mxu0 %vm187_vm1, %v611_v18  ;;  %571 = vmatmul.mubr.msk.bf16.gmra.mxu1 %vm187_vm1, %v612_v19 }
  0x2f   :  { %558 = vmatprep.mubr.msk.bf16.mxu0 %vm187_vm1, %v613_v20  ;;  %574 = vmatprep.mubr.msk.bf16.mxu1 %vm187_vm1, %v614_v21 }
  0x36   :  { %559 = vmatmul.mubr.msk.bf16.gmra.mxu0 %vm187_vm1, %v615_v22  ;;  %575 = vmatmul.mubr.msk.bf16.gmra.mxu1 %vm187_vm1, %v616_v23 }
  0xde   :  { %v548_v24 = vpop.f32.mrf.mxu0  ;;  %v564_v25 = vpop.f32.mrf.mxu1 }
  0xdf   :  { %v403_v26 = vmul.f32 0.999995, %v548_v24  ;;  %v419_v27 = vmul.f32 0.999995, %v564_v25 }
  0xe0   :  { %v274_v28 = vpop.f32.mrf.mxu0  ;;  %v338_v29 = vpop.f32.mrf.mxu1 }
  0xe1   :  { %436 = vst.msk [vmem:[%s865_s5 + $0x10] sm:$0xff] %vm433_vm2, %v403_v26  ;;  %452 = vst.msk [vmem:[%s865_s5 + $0x90] sm:$0xff] %vm433_vm2, %v419_v27  ;;  %v401_v30 = vmul.f32 0.999995, %v274_v28  ;;  %v417_v31 = vmul.f32 0.999995, %v338_v29 }
  0xe2   :  { %v549_v32 = vpop.f32.mrf.mxu0  ;;  %v565_v33 = vpop.f32.mrf.mxu1 }
  0xe3   :  { %434 = vst.msk [vmem:[%s865_s5] sm:$0xff] %vm433_vm2, %v401_v30  ;;  %450 = vst.msk [vmem:[%s865_s5 + $0x80] sm:$0xff] %vm433_vm2, %v417_v31  ;;  %v404_v34 = vmul.f32 0.999995, %v549_v32  ;;  %v420_v35 = vmul.f32 0.999995, %v565_v33 }
  0xe4   :  { %v277_v36 = vpop.f32.mrf.mxu0  ;;  %v341_v37 = vpop.f32.mrf.mxu1 }
  0xe5   :  { %437 = vst.msk [vmem:[%s865_s5 + $0x18] sm:$0xff] %vm433_vm2, %v404_v34  ;;  %453 = vst.msk [vmem:[%s865_s5 + $0x98] sm:$0xff] %vm433_vm2, %v420_v35  ;;  %v402_v38 = vmul.f32 0.999995, %v277_v36  ;;  %v418_v39 = vmul.f32 0.999995, %v341_v37 }
  0xe6   :  { %v552_v40 = vpop.f32.mrf.mxu0  ;;  %v568_v41 = vpop.f32.mrf.mxu1 }
  0xe7   :  { %435 = vst.msk [vmem:[%s865_s5 + $0x8] sm:$0xff] %vm433_vm2, %v402_v38  ;;  %451 = vst.msk [vmem:[%s865_s5 + $0x88] sm:$0xff] %vm433_vm2, %v418_v39  ;;  %v407_v42 = vmul.f32 0.999995, %v552_v40  ;;  %v423_v43 = vmul.f32 0.999995, %v568_v41 }
  0xe8   :  { %v290_v44 = vpop.f32.mrf.mxu0  ;;  %v354_v45 = vpop.f32.mrf.mxu1 }
  0xe9   :  { %440 = vst.msk [vmem:[%s865_s5 + $0x30] sm:$0xff] %vm433_vm2, %v407_v42  ;;  %456 = vst.msk [vmem:[%s865_s5 + $0xb0] sm:$0xff] %vm433_vm2, %v423_v43  ;;  %v405_v46 = vmul.f32 0.999995, %v290_v44  ;;  %v421_v47 = vmul.f32 0.999995, %v354_v45 }
  0xea   :  { %v553_v48 = vpop.f32.mrf.mxu0  ;;  %v569_v49 = vpop.f32.mrf.mxu1 }
  0xeb   :  { %438 = vst.msk [vmem:[%s865_s5 + $0x20] sm:$0xff] %vm433_vm2, %v405_v46  ;;  %454 = vst.msk [vmem:[%s865_s5 + $0xa0] sm:$0xff] %vm433_vm2, %v421_v47  ;;  %v408_v50 = vmul.f32 0.999995, %v553_v48  ;;  %v424_v51 = vmul.f32 0.999995, %v569_v49 }
  0xec   :  { %v293_v52 = vpop.f32.mrf.mxu0  ;;  %v357_v53 = vpop.f32.mrf.mxu1 }
  0xed   :  { %441 = vst.msk [vmem:[%s865_s5 + $0x38] sm:$0xff] %vm433_vm2, %v408_v50  ;;  %457 = vst.msk [vmem:[%s865_s5 + $0xb8] sm:$0xff] %vm433_vm2, %v424_v51  ;;  %v406_v54 = vmul.f32 0.999995, %v293_v52  ;;  %v422_v55 = vmul.f32 0.999995, %v357_v53 }
  0xee   :  { %v556_v56 = vpop.f32.mrf.mxu0  ;;  %v572_v57 = vpop.f32.mrf.mxu1 }
  0xef   :  { %439 = vst.msk [vmem:[%s865_s5 + $0x28] sm:$0xff] %vm433_vm2, %v406_v54  ;;  %455 = vst.msk [vmem:[%s865_s5 + $0xa8] sm:$0xff] %vm433_vm2, %v422_v55  ;;  %v411_v58 = vmul.f32 0.999995, %v556_v56  ;;  %v427_v59 = vmul.f32 0.999995, %v572_v57 }
  0xf0   :  { %v306_v60 = vpop.f32.mrf.mxu0  ;;  %v370_v61 = vpop.f32.mrf.mxu1 }
  0xf1   :  { %444 = vst.msk [vmem:[%s865_s5 + $0x50] sm:$0xff] %vm433_vm2, %v411_v58  ;;  %460 = vst.msk [vmem:[%s865_s5 + $0xd0] sm:$0xff] %vm433_vm2, %v427_v59  ;;  %v409_v62 = vmul.f32 0.999995, %v306_v60  ;;  %v425_v63 = vmul.f32 0.999995, %v370_v61 }
  0xf2   :  { %v557_v0 = vpop.f32.mrf.mxu0  ;;  %v573_v1 = vpop.f32.mrf.mxu1 }
  0xf3   :  { %442 = vst.msk [vmem:[%s865_s5 + $0x40] sm:$0xff] %vm433_vm2, %v409_v62  ;;  %458 = vst.msk [vmem:[%s865_s5 + $0xc0] sm:$0xff] %vm433_vm2, %v425_v63  ;;  %v412_v2 = vmul.f32 0.999995, %v557_v0  ;;  %v428_v3 = vmul.f32 0.999995, %v573_v1 }
  0xf4   :  { %v309_v4 = vpop.f32.mrf.mxu0  ;;  %v373_v5 = vpop.f32.mrf.mxu1 }
  0xf5   :  { %445 = vst.msk [vmem:[%s865_s5 + $0x58] sm:$0xff] %vm433_vm2, %v412_v2  ;;  %461 = vst.msk [vmem:[%s865_s5 + $0xd8] sm:$0xff] %vm433_vm2, %v428_v3  ;;  %v410_v6 = vmul.f32 0.999995, %v309_v4  ;;  %v426_v7 = vmul.f32 0.999995, %v373_v5 }
  0xf6   :  { %v560_v8 = vpop.f32.mrf.mxu0  ;;  %v576_v9 = vpop.f32.mrf.mxu1 }
  0xf7   :  { %443 = vst.msk [vmem:[%s865_s5 + $0x48] sm:$0xff] %vm433_vm2, %v410_v6  ;;  %459 = vst.msk [vmem:[%s865_s5 + $0xc8] sm:$0xff] %vm433_vm2, %v426_v7  ;;  %v415_v10 = vmul.f32 0.999995, %v560_v8  ;;  %v431_v11 = vmul.f32 0.999995, %v576_v9 }
  0xf8   :  { %v322_v12 = vpop.f32.mrf.mxu0  ;;  %v386_v13 = vpop.f32.mrf.mxu1 }
  0xf9   :  { %448 = vst.msk [vmem:[%s865_s5 + $0x70] sm:$0xff] %vm433_vm2, %v415_v10  ;;  %464 = vst.msk [vmem:[%s865_s5 + $0xf0] sm:$0xff] %vm433_vm2, %v431_v11  ;;  %v413_v14 = vmul.f32 0.999995, %v322_v12  ;;  %v429_v15 = vmul.f32 0.999995, %v386_v13 }
  0xfa   :  { %v561_v16 = vpop.f32.mrf.mxu0  ;;  %v577_v17 = vpop.f32.mrf.mxu1 }
  0xfb   :  { %446 = vst.msk [vmem:[%s865_s5 + $0x60] sm:$0xff] %vm433_vm2, %v413_v14  ;;  %462 = vst.msk [vmem:[%s865_s5 + $0xe0] sm:$0xff] %vm433_vm2, %v429_v15  ;;  %v416_v18 = vmul.f32 0.999995, %v561_v16  ;;  %v432_v19 = vmul.f32 0.999995, %v577_v17 }
  0xfc   :  { %v325_v20 = vpop.f32.mrf.mxu0  ;;  %v389_v21 = vpop.f32.mrf.mxu1 }
  0xfd   :  { %449 = vst.msk [vmem:[%s865_s5 + $0x78] sm:$0xff] %vm433_vm2, %v416_v18  ;;  %465 = vst.msk [vmem:[%s865_s5 + $0xf8] sm:$0xff] %vm433_vm2, %v432_v19  ;;  %v414_v22 = vmul.f32 0.999995, %v325_v20  ;;  %v430_v23 = vmul.f32 0.999995, %v389_v21 }
  0xff   :  { %447 = vst.msk [vmem:[%s865_s5 + $0x68] sm:$0xff] %vm433_vm2, %v414_v22  ;;  %463 = vst.msk [vmem:[%s865_s5 + $0xe8] sm:$0xff] %vm433_vm2, %v430_v23 }

// kernel: vit_forward.20
= control target key start
LH: loop header
LB: loop body
LE: loop exit
PB: predicated region body
PF: predicated region fallthrough
CT: control target
= control target key end

     0   :  { %s2655_s30 = smov 0   ;;  %s3991_s0 = inlined_call_operand.vmem [shape: f32[2,8,8,64], index: 0, kind: input, shape index: {}]   ;;  %s3992_s1 = inlined_call_operand.vmem [shape: f32[1,8,8,1], index: 1, kind: input, shape index: {}]   ;;  %s3993_s2 = inlined_call_operand.vmem [shape: f32[1,64], index: 2, kind: input, shape index: {}]   ;;  %s3994_s3 = inlined_call_operand.vmem [shape: f32[1,64], index: 3, kind: input, shape index: {}]   ;;  %s3995_s4 = inlined_call_operand.vmem [shape: f32[5,5,64], index: 4, kind: input, shape index: {}]   ;;  %s3996_s5 = inlined_call_operand.vmem [shape: f32[5,5,64], index: 5, kind: input, shape index: {}]   ;;  %s3997_s6 = inlined_call_operand.vmem [shape: f32[5,5,64], index: 6, kind: input, shape index: {}]   ;;  %s3998_s7 = inlined_call_operand.vmem [shape: f32[2,4,4,64], index: 7, kind: output, shape index: {0}]   ;;  %s3999_s8 = inlined_call_operand.vmem [shape: f32[2,4,4,64], index: 8, kind: output, shape index: {1}]   ;;  %s4000_s9 = inlined_call_operand.vmem [shape: f32[2,4,4,64], index: 9, kind: output, shape index: {2}]  }
   0x1 LB: > { %s2411_s10 = sadd.s32 4294967295, %s2602_s30   ;;  %p2415_p0 = scmp.ge.s32.totalorder %s2602_s30, 1  ;;  %s2602_s30 = sphi %s2655_s30, %s20_s30  }
   0x2   : > { %p292_p1 = scmp.lt.s32.totalorder %s2602_s30, 3 }
   0x4   : > { %p293_p2 = pnand %p2415_p0, %p292_p1 }
   0x6   : > { %296 = sbr.rel (%p293_p2) target bundleno = 563 (0x233), region = 48 }
   0xb   : > { %p338_p3 = scmp.lt.s32.totalorder %s2411_s10, 1  ;;  %v2604_v0 = vmov 0   ;;  %vm366_vm0 = vcmask 523264   ;;  %v502_v17 = vld [vmem:[%s3992_s1] sm:$0xff]  ;;  %v504_v33 = vld [vmem:[%s3992_s1 + $0x10] sm:$0xff]  ;;  %v503_v34 = vld [vmem:[%s3992_s1 + $0x8] sm:$0xff] }
   0xc   : > { %2576 = vset.pattern.permute.xlu1 %v2604_v0  ;;  %2577 = vset.pattern.permute.xlu0 %v2604_v0  ;;  %v505_v55 = vld [vmem:[%s3992_s1 + $0x18] sm:$0xff]  ;;  %v506_v56 = vld [vmem:[%s3992_s1 + $0x20] sm:$0xff]  ;;  %v507_v57 = vld [vmem:[%s3992_s1 + $0x28] sm:$0xff]  ;;  %vm2269_vm1 = vcmask 519168  }
   0xd   : > { %s4241_s10 = smov (!%p338_p3, %s2411_s10), 1  ;;  %v508_v58 = vld [vmem:[%s3992_s1 + $0x30] sm:$0xff]  ;;  %v509_v59 = vld [vmem:[%s3992_s1 + $0x38] sm:$0xff] }
   0xe   : > { %s2563_s11 = sshll.u32 %s4241_s10, 6  ;;  %s3956_s18 = sshll.u32 %s4241_s10, 4 }
   0xf   : > { %s342_s14 = scalar_lea.vmem %s3991_s0, %s2563_s11  ;;  %s347_s20 = scalar_lea.vmem %s3998_s7, %s3956_s18 }
  0x10   : > { %v358_v1 = vld [vmem:[%s342_s14] sm:$0xff]  ;;  %v360_v2 = vld [vmem:[%s342_s14 + $0x10] sm:$0xff]  ;;  %v359_v3 = vld [vmem:[%s342_s14 + $0x8] sm:$0xff]  ;;  %s352_s23 = scalar_lea.vmem %s3999_s8, %s3956_s18  ;;  %s357_s26 = scalar_lea.vmem %s4000_s9, %s3956_s18 }
  0x11   : > { %v367_v4 = vsel %vm366_vm0, %v358_v1, 0.0  ;;  %v373_v5 = vsel %vm366_vm0, %v360_v2, 0.0  ;;  %v361_v6 = vld [vmem:[%s342_s14 + $0x18] sm:$0xff]  ;;  %v370_v7 = vsel %vm366_vm0, %v359_v3, 0.0  ;;  %v362_v9 = vld [vmem:[%s342_s14 + $0x20] sm:$0xff]  ;;  %v363_v10 = vld [vmem:[%s342_s14 + $0x28] sm:$0xff] }
  0x12   : > { %368 = vadd.xlane.f32.xlu0 %v367_v4  ;;  %374 = vadd.xlane.f32.xlu1 %v373_v5  ;;  %v376_v8 = vsel %vm366_vm0, %v361_v6, 0.0  ;;  %v379_v11 = vsel %vm366_vm0, %v362_v9, 0.0  ;;  %v382_v12 = vsel %vm366_vm0, %v363_v10, 0.0  ;;  %v364_v13 = vld [vmem:[%s342_s14 + $0x30] sm:$0xff]  ;;  %v2675_v14 = vld [vmem:[%s342_s14 + $0x38] sm:$0xff] }
  0x13   : > { %v385_v15 = vsel %vm366_vm0, %v364_v13, 0.0  ;;  %v388_v16 = vsel %vm366_vm0, %v2675_v14, 0.0 }
  0x16   : > { %371 = vadd.xlane.f32.xlu0 %v370_v7  ;;  %377 = vadd.xlane.f32.xlu1 %v376_v8 }
  0x1a   : > { %380 = vadd.xlane.f32.xlu0 %v379_v11  ;;  %383 = vadd.xlane.f32.xlu1 %v382_v12  ;;  %v2748_v12 = vld [vmem:[%s3993_s2] ss:$0 sm:$0xff] }
  0x1e   : > { %386 = vadd.xlane.f32.xlu0 %v385_v15  ;;  %389 = vadd.xlane.f32.xlu1 %v388_v16 }
  0x2f   : > { %512 = vperm.xlu1 %2576, %v502_v17  }
  0x9b   : > { %v369_v18 = vpop.xlane.xlu0 %368  ;;  %v375_v19 = vpop.xlane.xlu1 %374 }
  0x9c   : > { %v392_v20 = vmul.f32 0.015625, %v369_v18  ;;  %v394_v21 = vmul.f32 0.015625, %v375_v19  ;;  %v2760_v18 = vld [vmem:[%s3995_s4] ss:$0 sm:$0xff] }
  0x9e   : > { %v2683_v22 = vsub.f32 %v358_v1, %v392_v20  ;;  %v2685_v23 = vsub.f32 %v360_v2, %v394_v21  ;;  %v2767_v21 = vld [vmem:[%s3996_s5] ss:$0 sm:$0xff] }
  0x9f   : > { %v372_v24 = vpop.xlane.xlu0 %371  ;;  %v378_v35 = vpop.xlane.xlu1 %377 }
  0xa0   : > { %v393_v25 = vmul.f32 0.015625, %v372_v24  ;;  %v408_v26 = vmul.f32 %v2683_v22, %v2683_v22  ;;  %v410_v27 = vmul.f32 %v2685_v23, %v2685_v23  ;;  %v395_v37 = vmul.f32 0.015625, %v378_v35  ;;  %v2777_v24 = vld [vmem:[%s3995_s4 + $0x1] ss:$0 sm:$0xff] }
  0xa2   : > { %v2691_v28 = vsub.f32 %v359_v3, %v393_v25  ;;  %v416_v29 = vsel %vm366_vm0, %v408_v26, 0.0  ;;  %v422_v30 = vsel %vm366_vm0, %v410_v27, 0.0  ;;  %v2704_v41 = vsub.f32 %v361_v6, %v395_v37  ;;  %v2783_v26 = vld [vmem:[%s3996_s5 + $0x1] ss:$0 sm:$0xff] }
  0xa3   : > { %417 = vadd.xlane.f32.xlu0 %v416_v29  ;;  %v381_v36 = vpop.xlane.xlu0 %380  ;;  %v384_v39 = vpop.xlane.xlu1 %383  ;;  %v2788_v27 = vld [vmem:[%s3997_s6 + $0x1] ss:$0 sm:$0xff] }
  0xa4   : > { %v409_v31 = vmul.f32 %v2691_v28, %v2691_v28  ;;  %v396_v38 = vmul.f32 0.015625, %v381_v36  ;;  %v397_v43 = vmul.f32 0.015625, %v384_v39  ;;  %v411_v47 = vmul.f32 %v2704_v41, %v2704_v41 }
  0xa6   : > { %v419_v32 = vsel %vm366_vm0, %v409_v31, 0.0  ;;  %v2706_v42 = vsub.f32 %v362_v9, %v396_v38  ;;  %v2708_v45 = vsub.f32 %v363_v10, %v397_v43  ;;  %v425_v49 = vsel %vm366_vm0, %v411_v47, 0.0  ;;  %v2810_v31 = vld [vmem:[%s3995_s4 + $0x3] ss:$0 sm:$0xff] }
  0xa7   : > { %423 = vadd.xlane.f32.xlu0 %v422_v30  ;;  %420 = vadd.xlane.f32.xlu1 %v419_v32  ;;  %v387_v40 = vpop.xlane.xlu0 %386  ;;  %v390_v60 = vpop.xlane.xlu1 %389  ;;  %v2805_v30 = vld [vmem:[%s3997_s6 + $0x2] ss:$0 sm:$0xff] }
  0xa8   : > { %v398_v44 = vmul.f32 0.015625, %v387_v40  ;;  %v412_v48 = vmul.f32 %v2706_v42, %v2706_v42  ;;  %v413_v51 = vmul.f32 %v2708_v45, %v2708_v45  ;;  %v399_v61 = vmul.f32 0.015625, %v390_v60 }
  0xaa   : > { %v2710_v46 = vsub.f32 %v364_v13, %v398_v44  ;;  %v428_v50 = vsel %vm366_vm0, %v412_v48, 0.0  ;;  %v431_v53 = vsel %vm366_vm0, %v413_v51, 0.0  ;;  %v2740_v62 = vsub.f32 %v2675_v14, %v399_v61  ;;  %v2754_v14 = vld [vmem:[%s3994_s3] ss:$0 sm:$0xff] }
  0xab   : > { %v513_v1 = vpop.permute.xlu1 %512 }
  0xac   : > { %v414_v52 = vmul.f32 %v2710_v46, %v2710_v46  ;;  %4081 = vst [vmem:[#allocation2_spill] sm:$0xff] %v2740_v62  ;;  %v415_v63 = vmul.f32 %v2740_v62, %v2740_v62 }
  0xae   : > { %v434_v54 = vsel %vm366_vm0, %v414_v52, 0.0  ;;  %v437_v0 = vsel %vm366_vm0, %v415_v63, 0.0 }
  0xb8   : > { %522 = vperm.xlu1 %2576, %v504_v33  }
  0xbd   : > { %517 = vperm.xlu0 %2577, %v503_v34  }
  0xdc   : > { %426 = vadd.xlane.f32.xlu1 %v425_v49  ;;  %429 = vadd.xlane.f32.xlu0 %v428_v50 }
  0xe0   : > { %432 = vadd.xlane.f32.xlu1 %v431_v53  ;;  %435 = vadd.xlane.f32.xlu0 %v434_v54 }
  0xf1   : > { %527 = vperm.xlu1 %2576, %v505_v55  }
  0xf6   : > { %532 = vperm.xlu0 %2577, %v506_v56  }
  0xfa   : > { %537 = vperm.xlu0 %2577, %v507_v57  }
  0xfe   : > { %542 = vperm.xlu0 %2577, %v508_v58  }
 0x102   : > { %547 = vperm.xlu0 %2577, %v509_v59  }
 0x115   : > { %438 = vadd.xlane.f32.xlu1 %v437_v0 }
 0x12c   : > { %v418_v2 = vpop.xlane.xlu0 %417 }
 0x12d   : > { %v440_v3 = vmul.f32 0.015625, %v418_v2 }
 0x12f   : > { %v448_v4 = vadd.f32 1e-05, %v440_v3 }
 0x130   : > { %v421_v5 = vpop.xlane.xlu1 %420  ;;  %v424_v6 = vpop.xlane.xlu0 %423 }
 0x131   : > { %2578 = vrsqrt.f32 %v448_v4  ;;  %v441_v7 = vmul.f32 0.015625, %v421_v5  ;;  %v442_v8 = vmul.f32 0.015625, %v424_v6 }
 0x133   : > { %v449_v9 = vadd.f32 1e-05, %v441_v7  ;;  %v450_v10 = vadd.f32 1e-05, %v442_v8  ;;  %v2858_v8 = vld [vmem:[%s3996_s5 + $0x3] ss:$0 sm:$0xff] }
 0x134   : > { %v523_v44 = vpop.permute.xlu1 %522 }
 0x135   : > { %2580 = vrsqrt.f32 %v449_v9 }
 0x136   : > { %2582 = vrsqrt.f32 %v450_v10 }
 0x13e   : > { %v2579_v11 = vpop.eup %2578 }
 0x13f   : > { %v464_v13 = vmul.f32 %v2579_v11, %v2683_v22  ;;  %v2772_v22 = vld [vmem:[%s3997_s6] ss:$0 sm:$0xff] }
 0x141   : > { %v479_v15 = vmul.f32 %v2748_v12, %v464_v13 }
 0x142   : > { %v2581_v16 = vpop.eup %2580 }
 0x143   : > { %v2583_v17 = vpop.eup %2582  ;;  %v494_v19 = vadd.f32 %v2754_v14, %v479_v15  ;;  %v465_v20 = vmul.f32 %v2581_v16, %v2691_v28  ;;  %v2793_v28 = vld [vmem:[%s3995_s4 + $0x2] ss:$0 sm:$0xff]  ;;  %v2865_v15 = vld [vmem:[%s3997_s6 + $0x3] ss:$0 sm:$0xff] }
 0x144   : > { %v466_v25 = vmul.f32 %v2583_v17, %v2685_v23  ;;  %v2800_v23 = vld [vmem:[%s3996_s5 + $0x2] ss:$0 sm:$0xff] }
 0x145   : > { %v2795_v29 = vmul.f32 %v513_v1, %v494_v19  ;;  %v2814_v33 = vmul.f32 %v2748_v12, %v465_v20 }
 0x146   : > { %v481_v32 = vmul.f32 %v2748_v12, %v466_v25  ;;  %v2870_v25 = vld [vmem:[%s3995_s4 + $0x4] ss:$0 sm:$0xff] }
 0x147   : > { %v563_v34 = vmul.f32 %v2760_v18, %v2795_v29  ;;  %v576_v35 = vmul.f32 %v2767_v21, %v2795_v29  ;;  %v589_v36 = vmul.f32 %v2772_v22, %v2795_v29  ;;  %v602_v37 = vmul.f32 %v2777_v24, %v2795_v29 }
 0x148   : > { %v496_v38 = vadd.f32 %v2754_v14, %v481_v32  ;;  %v627_v39 = vmul.f32 %v2783_v26, %v2795_v29  ;;  %v652_v40 = vmul.f32 %v2788_v27, %v2795_v29  ;;  %v677_v43 = vmul.f32 %v2793_v28, %v2795_v29 }
 0x149   : > { %v610_v47 = vrot.slane %v602_v37, 1  ;;  %v702_v48 = vmul.f32 %v2800_v23, %v2795_v29  ;;  %v727_v49 = vmul.f32 %v2805_v30, %v2795_v29  ;;  %v752_v50 = vmul.f32 %v2810_v31, %v2795_v29  ;;  %v2877_v37 = vld [vmem:[%s3996_s5 + $0x4] ss:$0 sm:$0xff] }
 0x14a   : > { %v2837_v51 = vmul.f32 %v523_v44, %v496_v38  ;;  %v635_v52 = vrot.slane %v627_v39, 1  ;;  %v660_v53 = vrot.slane %v652_v40, 1  ;;  %v685_v54 = vrot.slane %v677_v43, 2  ;;  %4083 = vst [vmem:[#allocation4_spill] sm:$0xff] %v2877_v37 }
 0x14b   : > { %v618_v55 = vadd.f32 %v610_v47, %v563_v34  ;;  %v710_v56 = vrot.slane %v702_v48, 2  ;;  %v735_v57 = vrot.slane %v727_v49, 2  ;;  %v760_v58 = vrot.slane %v752_v50, 3 }
 0x14c   : > { %4082 = vst [vmem:[#allocation3_spill] sm:$0xff] %v2837_v51  ;;  %v565_v59 = vmul.f32 %v2760_v18, %v2837_v51  ;;  %v578_v60 = vmul.f32 %v2767_v21, %v2837_v51  ;;  %v591_v61 = vmul.f32 %v2772_v22, %v2837_v51  ;;  %v604_v63 = vmul.f32 %v2777_v24, %v2837_v51 }
 0x14d   : > { %v629_v0 = vmul.f32 %v2783_v26, %v2837_v51  ;;  %v643_v1 = vadd.f32 %v635_v52, %v576_v35  ;;  %v654_v2 = vmul.f32 %v2788_v27, %v2837_v51  ;;  %v668_v3 = vadd.f32 %v660_v53, %v589_v36 }
 0x14e   : > { %v612_v4 = vrot.slane %v604_v63, 1  ;;  %v679_v5 = vmul.f32 %v2793_v28, %v2837_v51  ;;  %v693_v6 = vadd.f32 %v685_v54, %v618_v55  ;;  %v704_v7 = vmul.f32 %v2800_v23, %v2837_v51  ;;  %v2892_v55 = vld [vmem:[%s3997_s6 + $0x4] ss:$0 sm:$0xff] }
 0x14f   : > { %v637_v9 = vrot.slane %v629_v0, 1  ;;  %v662_v10 = vrot.slane %v654_v2, 1  ;;  %v718_v11 = vadd.f32 %v710_v56, %v643_v1  ;;  %v729_v13 = vmul.f32 %v2805_v30, %v2837_v51  ;;  %4084 = vst [vmem:[#allocation5_spill] sm:$0xff] %v2892_v55 }
 0x150   : > { %v620_v16 = vadd.f32 %v612_v4, %v565_v59  ;;  %v687_v17 = vrot.slane %v679_v5, 2  ;;  %v712_v19 = vrot.slane %v704_v7, 2  ;;  %v743_v20 = vadd.f32 %v735_v57, %v668_v3  ;;  %v2903_v5 = vld [vmem:[%s3995_s4 + $0x8] ss:$0 sm:$0xff] }
 0x151   : > { %v645_v32 = vadd.f32 %v637_v9, %v578_v60  ;;  %v670_v34 = vadd.f32 %v662_v10, %v591_v61  ;;  %v737_v35 = vrot.slane %v729_v13, 2  ;;  %v754_v36 = vmul.f32 %v2810_v31, %v2837_v51  ;;  %v518_v13 = vpop.permute.xlu0 %517 }
 0x152   : > { %v695_v38 = vadd.f32 %v687_v17, %v620_v16  ;;  %v768_v39 = vadd.f32 %v760_v58, %v693_v6  ;;  %v777_v40 = vmul.f32 %v2858_v8, %v2795_v29  ;;  %v779_v43 = vmul.f32 %v2858_v8, %v2837_v51  ;;  %v2908_v6 = vld [vmem:[%s3996_s5 + $0x8] ss:$0 sm:$0xff]  ;;  %v2922_v17 = vld [vmem:[%s3995_s4 + $0x9] ss:$0 sm:$0xff] }
 0x153   : > { %v720_v44 = vadd.f32 %v712_v19, %v645_v32  ;;  %v745_v47 = vadd.f32 %v737_v35, %v670_v34  ;;  %v762_v48 = vrot.slane %v754_v36, 3  ;;  %v802_v49 = vmul.f32 %v2865_v15, %v2795_v29  ;;  %v2917_v16 = vld [vmem:[%s3997_s6 + $0x8] ss:$0 sm:$0xff]  ;;  %v2933_v34 = vld [vmem:[%s3996_s5 + $0x9] ss:$0 sm:$0xff] }
 0x154   : > { %v785_v50 = vrot.slane %v777_v40, 3  ;;  %v787_v52 = vrot.slane %v779_v43, 3  ;;  %v804_v53 = vmul.f32 %v2865_v15, %v2837_v51  ;;  %v827_v54 = vmul.f32 %v2870_v25, %v2795_v29  ;;  %v2938_v35 = vld [vmem:[%s3997_s6 + $0x9] ss:$0 sm:$0xff] }
 0x155   : > { %v770_v56 = vadd.f32 %v762_v48, %v695_v38  ;;  %v810_v57 = vrot.slane %v802_v49, 3  ;;  %v829_v58 = vmul.f32 %v2870_v25, %v2837_v51  ;;  %v852_v59 = vmul.f32 %v2877_v37, %v2795_v29 }
 0x156   : > { %v793_v60 = vadd.f32 %v785_v50, %v718_v11  ;;  %v795_v61 = vadd.f32 %v787_v52, %v720_v44  ;;  %v812_v63 = vrot.slane %v804_v53, 3  ;;  %v835_v0 = vrot.slane %v827_v54, 4 }
 0x157   : > { %v818_v1 = vadd.f32 %v810_v57, %v743_v20  ;;  %v837_v2 = vrot.slane %v829_v58, 4  ;;  %v854_v3 = vmul.f32 %v2877_v37, %v2837_v51  ;;  %v860_v4 = vrot.slane %v852_v59, 4 }
 0x158   : > { %v820_v7 = vadd.f32 %v812_v63, %v745_v47  ;;  %v843_v9 = vadd.f32 %v835_v0, %v768_v39  ;;  %v877_v10 = vmul.f32 %v2892_v55, %v2795_v29  ;;  %v879_v11 = vmul.f32 %v2892_v55, %v2837_v51 }
 0x159   : > { %v2924_v19 = vadd.f32 %v837_v2, %v770_v56  ;;  %v862_v20 = vrot.slane %v854_v3, 4  ;;  %v2926_v32 = vadd.f32 %v860_v4, %v793_v60  ;;  %v495_v29 = vadd.f32 %v2754_v14, %v2814_v33 }
 0x15a   : > { %v885_v36 = vrot.slane %v877_v10, 4  ;;  %v887_v38 = vrot.slane %v879_v11, 4  ;;  %v904_v39 = vmul.f32 %v2903_v5, %v2837_v51  ;;  %v2944_v40 = vmul.f32 %v2908_v6, %v2837_v51 }
 0x15b   : > { %4085 = vst [vmem:[#allocation6_spill] sm:$0xff] %v2924_v19  ;;  %v2946_v33 = vadd.f32 %v862_v20, %v795_v61  ;;  %v2948_v43 = vmul.f32 %v518_v13, %v495_v29  ;;  %v2952_v44 = vmul.f32 %v2917_v16, %v2837_v51  ;;  %v2956_v47 = vmul.f32 %v2922_v17, %v2837_v51 }
 0x15c   : > { %v893_v48 = vadd.f32 %v885_v36, %v818_v1  ;;  %v2958_v49 = vadd.f32 %v887_v38, %v820_v7  ;;  %v2962_v50 = vmul.f32 %v2933_v34, %v2837_v51  ;;  %v2966_v52 = vmul.f32 %v2938_v35, %v2837_v51 }
 0x15d   : > { %4086 = vst [vmem:[#allocation7_spill] sm:$0xff] %v2946_v33  ;;  %v564_v53 = vmul.f32 %v2760_v18, %v2948_v43  ;;  %v577_v54 = vmul.f32 %v2767_v21, %v2948_v43  ;;  %v590_v56 = vmul.f32 %v2772_v22, %v2948_v43  ;;  %v603_v57 = vmul.f32 %v2777_v24, %v2948_v43 }
 0x15e   : > { %4087 = vst [vmem:[#allocation8_spill] sm:$0xff] %v2958_v49  ;;  %v628_v58 = vmul.f32 %v2783_v26, %v2948_v43  ;;  %v653_v59 = vmul.f32 %v2788_v27, %v2948_v43  ;;  %v678_v60 = vmul.f32 %v2793_v28, %v2948_v43  ;;  %v703_v61 = vmul.f32 %v2800_v23, %v2948_v43 }
 0x15f   : > { %v611_v63 = vrot.slane %v603_v57, 1  ;;  %v728_v0 = vmul.f32 %v2805_v30, %v2948_v43  ;;  %v753_v1 = vmul.f32 %v2810_v31, %v2948_v43  ;;  %v778_v2 = vmul.f32 %v2858_v8, %v2948_v43 }
 0x160   : > { %v636_v3 = vrot.slane %v628_v58, 1  ;;  %v661_v4 = vrot.slane %v653_v59, 1  ;;  %v686_v7 = vrot.slane %v678_v60, 2  ;;  %v711_v10 = vrot.slane %v703_v61, 2 }
 0x161   : > { %v619_v11 = vadd.f32 %v611_v63, %v564_v53  ;;  %v736_v13 = vrot.slane %v728_v0, 2  ;;  %v761_v20 = vrot.slane %v753_v1, 3  ;;  %v786_v29 = vrot.slane %v778_v2, 3 }
 0x162   : > { %v644_v36 = vadd.f32 %v636_v3, %v577_v54  ;;  %v669_v38 = vadd.f32 %v661_v4, %v590_v56  ;;  %v803_v57 = vmul.f32 %v2865_v15, %v2948_v43  ;;  %v828_v62 = vmul.f32 %v2870_v25, %v2948_v43 }
 0x163   : > { %v694_v49 = vadd.f32 %v686_v7, %v619_v11  ;;  %v853_v33 = vmul.f32 %v2877_v37, %v2948_v43  ;;  %v878_v58 = vmul.f32 %v2892_v55, %v2948_v43  ;;  %v903_v53 = vmul.f32 %v2903_v5, %v2948_v43 }
 0x164   : > { %v719_v59 = vadd.f32 %v711_v10, %v644_v36  ;;  %v744_v60 = vadd.f32 %v736_v13, %v669_v38  ;;  %v811_v54 = vrot.slane %v803_v57, 3  ;;  %v836_v56 = vrot.slane %v828_v62, 4 }
 0x165   : > { %v427_v61 = vpop.xlane.xlu1 %426  ;;  %v430_v63 = vpop.xlane.xlu0 %429  ;;  %v769_v0 = vadd.f32 %v761_v20, %v694_v49  ;;  %v861_v1 = vrot.slane %v853_v33, 4  ;;  %v886_v2 = vrot.slane %v878_v58, 4  ;;  %v907_v3 = vadd.f32 %v903_v53, %v843_v9 }
 0x166   : > { %v443_v4 = vmul.f32 0.015625, %v427_v61  ;;  %v444_v7 = vmul.f32 0.015625, %v430_v63  ;;  %v794_v11 = vadd.f32 %v786_v29, %v719_v59  ;;  %v819_v19 = vadd.f32 %v811_v54, %v744_v60  ;;  %v3010_v60 = vld [vmem:[%s3995_s4 + $0xa] ss:$0 sm:$0xff] }
 0x167   : > { %v844_v37 = vadd.f32 %v836_v56, %v769_v0  ;;  %v917_v55 = vmul.f32 %v2908_v6, %v2948_v43  ;;  %v931_v10 = vmul.f32 %v2917_v16, %v2948_v43  ;;  %v944_v62 = vmul.f32 %v2922_v17, %v2948_v43  ;;  %v3021_v61 = vld [vmem:[%s3996_s5 + $0xa] ss:$0 sm:$0xff] }
 0x168   : > { %v451_v13 = vadd.f32 1e-05, %v443_v4  ;;  %v452_v36 = vadd.f32 1e-05, %v444_v7  ;;  %v869_v49 = vadd.f32 %v861_v1, %v794_v11  ;;  %v894_v33 = vadd.f32 %v886_v2, %v819_v19  ;;  %v3031_v0 = vld [vmem:[%s3997_s6 + $0xa] ss:$0 sm:$0xff] }
 0x169   : > { %v433_v20 = vpop.xlane.xlu1 %432  ;;  %v436_v9 = vpop.xlane.xlu0 %435  ;;  %v908_v38 = vadd.f32 %v904_v39, %v844_v37  ;;  %v921_v29 = vadd.f32 %v917_v55, %v2926_v32  ;;  %v935_v57 = vadd.f32 %v931_v10, %v893_v48  ;;  %v952_v58 = vrot.slane %v944_v62, 1  ;;  %v3043_v11 = vld [vmem:[%s3996_s5 + $0xb] ss:$0 sm:$0xff] }
 0x16a   : > { %2584 = vrsqrt.f32 %v451_v13  ;;  %v445_v53 = vmul.f32 0.015625, %v433_v20  ;;  %v446_v59 = vmul.f32 0.015625, %v436_v9  ;;  %v922_v54 = vadd.f32 %v2944_v40, %v869_v49 }
 0x16b   : > { %2586 = vrsqrt.f32 %v452_v36  ;;  %v936_v19 = vadd.f32 %v2952_v44, %v894_v33  ;;  %v953_v56 = vrot.slane %v2956_v47, 1  ;;  %v960_v37 = vadd.f32 %v952_v58, %v907_v3  ;;  %v3038_v3 = vld [vmem:[%s3995_s4 + $0xb] ss:$0 sm:$0xff] }
 0x16c   : > { %v453_v39 = vadd.f32 1e-05, %v445_v53  ;;  %v454_v55 = vadd.f32 1e-05, %v446_v59  ;;  %v969_v32 = vmul.f32 %v2933_v34, %v2948_v43  ;;  %v978_v48 = vrot.slane %v2962_v50, 1 }
 0x16d   : > { %v961_v63 = vadd.f32 %v953_v56, %v908_v38  ;;  %v994_v40 = vmul.f32 %v2938_v35, %v2948_v43  ;;  %v1003_v44 = vrot.slane %v2966_v52, 1  ;;  %v1019_v47 = vmul.f32 %v3010_v60, %v2948_v43  ;;  %v3058_v59 = vld [vmem:[%s3997_s6 + $0xb] ss:$0 sm:$0xff] }
 0x16e   : > { %2588 = vrsqrt.f32 %v453_v39  ;;  %v977_v50 = vrot.slane %v969_v32, 1  ;;  %v986_v1 = vadd.f32 %v978_v48, %v922_v54  ;;  %v1020_v2 = vmul.f32 %v3010_v60, %v2837_v51 }
 0x16f   : > { %2590 = vrsqrt.f32 %v454_v55  ;;  %v1002_v52 = vrot.slane %v994_v40, 1  ;;  %v1011_v4 = vadd.f32 %v1003_v44, %v936_v19  ;;  %v1027_v7 = vrot.slane %v1019_v47, 2 }
 0x170   : > { %v985_v10 = vadd.f32 %v977_v50, %v921_v29  ;;  %v1028_v62 = vrot.slane %v1020_v2, 2  ;;  %v1044_v13 = vmul.f32 %v3021_v61, %v2948_v43  ;;  %v1045_v36 = vmul.f32 %v3021_v61, %v2837_v51  ;;  %v3074_v2 = vld [vmem:[%s3996_s5 + $0xc] ss:$0 sm:$0xff] }
 0x171   : > { %v1010_v49 = vadd.f32 %v1002_v52, %v935_v57  ;;  %v1035_v33 = vadd.f32 %v1027_v7, %v960_v37  ;;  %v1069_v20 = vmul.f32 %v3031_v0, %v2948_v43  ;;  %v1070_v9 = vmul.f32 %v3031_v0, %v2837_v51  ;;  %v3067_v37 = vld [vmem:[%s3995_s4 + $0xc] ss:$0 sm:$0xff]  ;;  %v533_v50 = vpop.permute.xlu0 %532 }
 0x172   : > { %v1036_v38 = vadd.f32 %v1028_v62, %v961_v63  ;;  %v1052_v58 = vrot.slane %v1044_v13, 2  ;;  %v1053_v53 = vrot.slane %v1045_v36, 2  ;;  %v1094_v29 = vmul.f32 %v3038_v3, %v2948_v43 }
 0x173   : > { %v1077_v54 = vrot.slane %v1069_v20, 2  ;;  %v1078_v57 = vrot.slane %v1070_v9, 2  ;;  %v1095_v19 = vmul.f32 %v3038_v3, %v2837_v51  ;;  %v1119_v56 = vmul.f32 %v3043_v11, %v2948_v43 }
 0x174   : > { %v1060_v39 = vadd.f32 %v1052_v58, %v985_v10  ;;  %v1061_v55 = vadd.f32 %v1053_v53, %v986_v1  ;;  %v1102_v32 = vrot.slane %v1094_v29, 3  ;;  %v1120_v48 = vmul.f32 %v3043_v11, %v2837_v51 }
 0x175   : > { %v1085_v63 = vadd.f32 %v1077_v54, %v1010_v49  ;;  %v1086_v40 = vadd.f32 %v1078_v57, %v1011_v4  ;;  %v1103_v44 = vrot.slane %v1095_v19, 3  ;;  %v1127_v47 = vrot.slane %v1119_v56, 3  ;;  %v3089_v54 = vld [vmem:[%s3997_s6 + $0xc] ss:$0 sm:$0xff] }
 0x176   : > { %v1110_v52 = vadd.f32 %v1102_v32, %v1035_v33  ;;  %v1128_v7 = vrot.slane %v1120_v48, 3  ;;  %v1144_v10 = vmul.f32 %v3058_v59, %v2948_v43  ;;  %v1145_v1 = vmul.f32 %v3058_v59, %v2837_v51 }
 0x177   : > { %v2585_v62 = vpop.eup %2584  ;;  %v1111_v13 = vadd.f32 %v1103_v44, %v1036_v38  ;;  %v1135_v36 = vadd.f32 %v1127_v47, %v1060_v39  ;;  %v1169_v4 = vmul.f32 %v3067_v37, %v2948_v43  ;;  %v1170_v49 = vmul.f32 %v3067_v37, %v2837_v51 }
 0x178   : > { %v2587_v20 = vpop.eup %2586  ;;  %v467_v9 = vmul.f32 %v2585_v62, %v2704_v41  ;;  %v1136_v33 = vadd.f32 %v1128_v7, %v1061_v55  ;;  %v1152_v58 = vrot.slane %v1144_v10, 3  ;;  %v1153_v53 = vrot.slane %v1145_v1, 3 }
 0x179   : > { %v468_v29 = vmul.f32 %v2587_v20, %v2706_v42  ;;  %v1177_v38 = vrot.slane %v1169_v4, 4  ;;  %v1178_v57 = vrot.slane %v1170_v49, 4  ;;  %v1194_v19 = vmul.f32 %v3074_v2, %v2948_v43 }
 0x17a   : > { %v482_v56 = vmul.f32 %v2748_v12, %v467_v9  ;;  %v3094_v39 = vadd.f32 %v1152_v58, %v1085_v63  ;;  %v3096_v41 = vadd.f32 %v1153_v53, %v1086_v40  ;;  %v1195_v55 = vmul.f32 %v3074_v2, %v2837_v51  ;;  %v538_v63 = vpop.permute.xlu0 %537  ;;  %v3110_v40 = vld [vmem:[%s3995_s4 + $0x10] ss:$0 sm:$0xff] }
 0x17b   : > { %v2589_v42 = vpop.eup %2588  ;;  %v483_v32 = vmul.f32 %v2748_v12, %v468_v29  ;;  %v3101_v48 = vadd.f32 %v1177_v38, %v1110_v52  ;;  %v3103_v44 = vadd.f32 %v1178_v57, %v1111_v13  ;;  %v1202_v47 = vrot.slane %v1194_v19, 4  ;;  %v528_v52 = vpop.permute.xlu1 %527 }
 0x17c   : > { %v2591_v7 = vpop.eup %2590  ;;  %v497_v10 = vadd.f32 %v2754_v14, %v482_v56  ;;  %v469_v1 = vmul.f32 %v2589_v42, %v2708_v45  ;;  %v1203_v62 = vrot.slane %v1195_v55, 4  ;;  %v3114_v4 = vmul.f32 %v3089_v54, %v2948_v43  ;;  %v3281_v43 = vld [vmem:[%s3995_s4 + $0x12] ss:$0 sm:$0xff] }
 0x17d   : > { %v498_v13 = vadd.f32 %v2754_v14, %v483_v32  ;;  %v470_v49 = vmul.f32 %v2591_v7, %v2710_v46  ;;  %v3118_v20 = vadd.f32 %v1202_v47, %v1135_v36  ;;  %v3122_v45 = vmul.f32 %v3089_v54, %v2837_v51  ;;  %v3276_v46 = vld [vmem:[%s3997_s6 + $0x11] ss:$0 sm:$0xff]  ;;  %4099 = vst [vmem:[#allocation16_spill] sm:$0xff] %v3281_v43 }
 0x17e   : > { %v3124_v9 = vmul.f32 %v528_v52, %v497_v10  ;;  %v484_v58 = vmul.f32 %v2748_v12, %v469_v1  ;;  %v3127_v53 = vadd.f32 %v1203_v62, %v1136_v33  ;;  %v3136_v36 = vmul.f32 %v3110_v40, %v2837_v51  ;;  %4098 = vst [vmem:[#allocation15_spill] sm:$0xff] %v3276_v46  ;;  %v3382_v51 = vld [vmem:[%s3997_s6 + $0x14] ss:$0 sm:$0xff] }
 0x17f   : > { %4088 = vst [vmem:[#allocation9_spill] sm:$0xff] %v3118_v20  ;;  %v3130_v29 = vmul.f32 %v533_v50, %v498_v13  ;;  %v485_v38 = vmul.f32 %v2748_v12, %v470_v49  ;;  %4119 = vst [vmem:[#allocation36_spill] sm:$0xff] %v3382_v51 }
 0x180   : > { %4089 = vst [vmem:[#allocation10_spill] sm:$0xff] %v3127_v53  ;;  %v499_v57 = vadd.f32 %v2754_v14, %v484_v58  ;;  %v566_v19 = vmul.f32 %v2760_v18, %v3124_v9  ;;  %v579_v33 = vmul.f32 %v2767_v21, %v3124_v9  ;;  %v592_v50 = vmul.f32 %v2772_v22, %v3124_v9  ;;  %v543_v18 = vpop.permute.xlu0 %542  ;;  %v4091_v58 = vld [vmem:[#allocation4_spill] sm:$0xff] }
 0x181   : > { %v500_v56 = vadd.f32 %v2754_v14, %v485_v38  ;;  %v605_v12 = vmul.f32 %v2777_v24, %v3124_v9  ;;  %v630_v55 = vmul.f32 %v2783_v26, %v3124_v9  ;;  %v655_v42 = vmul.f32 %v2788_v27, %v3124_v9 }
 0x182   : > { %v3152_v32 = vmul.f32 %v538_v63, %v499_v57  ;;  %v680_v21 = vmul.f32 %v2793_v28, %v3124_v9  ;;  %v705_v22 = vmul.f32 %v2800_v23, %v3124_v9  ;;  %v730_v14 = vmul.f32 %v2805_v30, %v3124_v9 }
 0x183   : > { %v3160_v47 = vmul.f32 %v543_v18, %v500_v56  ;;  %v613_v24 = vrot.slane %v605_v12, 1  ;;  %v638_v7 = vrot.slane %v630_v55, 1  ;;  %v663_v26 = vrot.slane %v655_v42, 1  ;;  %v4092_v55 = vld [vmem:[#allocation5_spill] sm:$0xff] }
 0x184   : > { %v688_v10 = vrot.slane %v680_v21, 2  ;;  %v713_v1 = vrot.slane %v705_v22, 2  ;;  %v738_v27 = vrot.slane %v730_v14, 2  ;;  %v755_v63 = vmul.f32 %v2810_v31, %v3124_v9 }
 0x185   : > { %4090 = vst [vmem:[#allocation11_spill] sm:$0xff] %v3160_v47  ;;  %v621_v62 = vadd.f32 %v613_v24, %v566_v19  ;;  %v646_v52 = vadd.f32 %v638_v7, %v579_v33  ;;  %v671_v28 = vadd.f32 %v663_v26, %v592_v50  ;;  %v780_v23 = vmul.f32 %v2858_v8, %v3124_v9 }
 0x186   : > { %v763_v13 = vrot.slane %v755_v63, 3  ;;  %v805_v30 = vmul.f32 %v2865_v15, %v3124_v9  ;;  %v830_v49 = vmul.f32 %v2870_v25, %v3124_v9  ;;  %v855_v38 = vmul.f32 %v4091_v58, %v3124_v9  ;;  %v3296_v58 = vld [vmem:[%s3996_s5 + $0x12] ss:$0 sm:$0xff]  ;;  %v3319_v63 = vld [vmem:[%s3995_s4 + $0x13] ss:$0 sm:$0xff] }
 0x187   : > { %v696_v57 = vadd.f32 %v688_v10, %v621_v62  ;;  %v721_v56 = vadd.f32 %v713_v1, %v646_v52  ;;  %v746_v12 = vadd.f32 %v738_v27, %v671_v28  ;;  %v788_v31 = vrot.slane %v780_v23, 3  ;;  %4102 = vst [vmem:[#allocation19_spill] sm:$0xff] %v3296_v58  ;;  %4107 = vst [vmem:[#allocation24_spill] sm:$0xff] %v3319_v63 }
 0x188   : > { %v813_v19 = vrot.slane %v805_v30, 3  ;;  %v838_v33 = vrot.slane %v830_v49, 4  ;;  %v863_v50 = vrot.slane %v855_v38, 4  ;;  %v880_v8 = vmul.f32 %v4092_v55, %v3124_v9  ;;  %v3256_v55 = vld [vmem:[%s3995_s4 + $0x11] ss:$0 sm:$0xff] }
 0x189   : > { %v771_v42 = vadd.f32 %v763_v13, %v696_v57  ;;  %v796_v18 = vadd.f32 %v788_v31, %v721_v56  ;;  %v3176_v15 = vmul.f32 %v2903_v5, %v3124_v9  ;;  %v3180_v25 = vmul.f32 %v2908_v6, %v3124_v9  ;;  %v3236_v56 = vld [vmem:[%s3996_s5 + $0x10] ss:$0 sm:$0xff]  ;;  %4095 = vst [vmem:[#allocation12_spill] sm:$0xff] %v3256_v55  ;;  %v3301_v49 = vld [vmem:[%s3997_s6 + $0x12] ss:$0 sm:$0xff] }
 0x18a   : > { %v821_v21 = vadd.f32 %v813_v19, %v746_v12  ;;  %v888_v22 = vrot.slane %v880_v8, 4  ;;  %v3184_v14 = vmul.f32 %v2917_v16, %v3124_v9  ;;  %v3188_v24 = vmul.f32 %v2922_v17, %v3124_v9  ;;  %4093 = vst [vmem:[#allocation4_spill] sm:$0xff] %v3236_v56  ;;  %v3241_v12 = vld [vmem:[%s3997_s6 + $0x10] ss:$0 sm:$0xff]  ;;  %v3261_v8 = vld [vmem:[%s3996_s5 + $0x11] ss:$0 sm:$0xff] }
 0x18b   : > { %v3190_v7 = vadd.f32 %v838_v33, %v771_v42  ;;  %v3192_v26 = vadd.f32 %v863_v50, %v796_v18  ;;  %v3196_v10 = vmul.f32 %v2933_v34, %v3124_v9  ;;  %v3200_v1 = vmul.f32 %v2938_v35, %v3124_v9  ;;  %4094 = vst [vmem:[#allocation5_spill] sm:$0xff] %v3241_v12  ;;  %v3324_v42 = vld [vmem:[%s3996_s5 + $0x13] ss:$0 sm:$0xff] }
 0x18c   : > { %v3202_v27 = vadd.f32 %v888_v22, %v821_v21  ;;  %v3207_v62 = vmul.f32 %v3010_v60, %v3124_v9  ;;  %v3211_v52 = vmul.f32 %v3021_v61, %v3124_v9  ;;  %v3217_v13 = vmul.f32 %v3031_v0, %v3124_v9  ;;  %4096 = vst [vmem:[#allocation13_spill] sm:$0xff] %v3261_v8 }
 0x18d   : > { %v3221_v30 = vmul.f32 %v3038_v3, %v3124_v9  ;;  %v3227_v38 = vmul.f32 %v3043_v11, %v3124_v9  ;;  %v3231_v57 = vmul.f32 %v3058_v59, %v3124_v9  ;;  %v3247_v33 = vmul.f32 %v3067_v37, %v3124_v9  ;;  %4103 = vst [vmem:[#allocation20_spill] sm:$0xff] %v3301_v49 }
 0x18e   : > { %v3251_v50 = vmul.f32 %v3074_v2, %v3124_v9  ;;  %v3267_v21 = vmul.f32 %v3089_v54, %v3124_v9  ;;  %v3271_v22 = vmul.f32 %v3110_v40, %v3124_v9  ;;  %v3287_v19 = vmul.f32 %v3236_v56, %v3124_v9  ;;  %4108 = vst [vmem:[#allocation25_spill] sm:$0xff] %v3324_v42 }
 0x18f   : > { %v3291_v31 = vmul.f32 %v3241_v12, %v3124_v9  ;;  %v3306_v18 = vmul.f32 %v3256_v55, %v3124_v9  ;;  %v3310_v23 = vmul.f32 %v3261_v8, %v3124_v9  ;;  %v3314_v28 = vmul.f32 %v3276_v46, %v3124_v9  ;;  %v3370_v12 = vld [vmem:[%s3997_s6 + $0x18] ss:$0 sm:$0xff] }
 0x190   : > { %4097 = vst [vmem:[#allocation14_spill] sm:$0xff] %v3271_v22  ;;  %4100 = vst [vmem:[#allocation17_spill] sm:$0xff] %v3287_v19  ;;  %v3328_v47 = vmul.f32 %v3281_v43, %v3124_v9  ;;  %v3332_v8 = vmul.f32 %v3296_v58, %v3124_v9  ;;  %v3336_v46 = vmul.f32 %v3301_v49, %v3124_v9  ;;  %v3350_v43 = vld [vmem:[%s3995_s4 + $0x14] ss:$0 sm:$0xff]  ;;  %v3365_v49 = vld [vmem:[%s3996_s5 + $0x18] ss:$0 sm:$0xff] }
 0x191   : > { %4101 = vst [vmem:[#allocation18_spill] sm:$0xff] %v3291_v31  ;;  %4104 = vst [vmem:[#allocation21_spill] sm:$0xff] %v3306_v18  ;;  %v3340_v55 = vmul.f32 %v3319_v63, %v3124_v9  ;;  %v3345_v31 = vld [vmem:[%s3997_s6 + $0x13] ss:$0 sm:$0xff]  ;;  %v3355_v58 = vld [vmem:[%s3996_s5 + $0x14] ss:$0 sm:$0xff]  ;;  %v3377_v56 = vmul.f32 %v3324_v42, %v3124_v9  ;;  %v3405_v20 = vmul.f32 %v3350_v43, %v3124_v9 }
 0x192   : > { %4105 = vst [vmem:[#allocation22_spill] sm:$0xff] %v3310_v23  ;;  %4106 = vst [vmem:[#allocation23_spill] sm:$0xff] %v3314_v28  ;;  %v3360_v63 = vld [vmem:[%s3995_s4 + $0x18] ss:$0 sm:$0xff]  ;;  %v3387_v22 = vld [vmem:[%s3995_s4 + $0x19] ss:$0 sm:$0xff]  ;;  %v3401_v18 = vmul.f32 %v3345_v31, %v3124_v9  ;;  %v3409_v53 = vmul.f32 %v3355_v58, %v3124_v9  ;;  %v3423_v19 = vmul.f32 %v3382_v51, %v3124_v9 }
 0x193   : > { %4109 = vst [vmem:[#allocation26_spill] sm:$0xff] %v3332_v8  ;;  %4110 = vst [vmem:[#allocation27_spill] sm:$0xff] %v3336_v46  ;;  %v3396_v42 = vld [vmem:[%s3996_s5 + $0x19] ss:$0 sm:$0xff]  ;;  %v3419_v23 = vld [vmem:[%s3995_s4 + $0x1a] ss:$0 sm:$0xff] }
 0x194   : > { %4111 = vst [vmem:[#allocation28_spill] sm:$0xff] %v3340_v55  ;;  %4112 = vst [vmem:[#allocation29_spill] sm:$0xff] %v3345_v31  ;;  %v3414_v28 = vld [vmem:[%s3997_s6 + $0x19] ss:$0 sm:$0xff]  ;;  %v3435_v31 = vmul.f32 %v3370_v12, %v3124_v9  ;;  %v3445_v51 = vld [vmem:[%s3997_s6 + $0x1a] ss:$0 sm:$0xff]  ;;  %v3467_v46 = vmul.f32 %v3396_v42, %v3124_v9 }
 0x195   : > { %4113 = vst [vmem:[#allocation30_spill] sm:$0xff] %v3350_v43  ;;  %4114 = vst [vmem:[#allocation31_spill] sm:$0xff] %v3355_v58  ;;  %v3427_v43 = vmul.f32 %v3360_v63, %v3124_v9  ;;  %v3431_v58 = vmul.f32 %v3365_v49, %v3124_v9  ;;  %v3485_v55 = vld [vmem:[%s3995_s4 + $0x1c] ss:$0 sm:$0xff] }
 0x196   : > { %4115 = vst [vmem:[#allocation32_spill] sm:$0xff] %v3360_v63  ;;  %4116 = vst [vmem:[#allocation33_spill] sm:$0xff] %v3365_v49  ;;  %v3457_v49 = vmul.f32 %v3387_v22, %v3124_v9  ;;  %v3462_v63 = vld [vmem:[%s3996_s5 + $0x1b] ss:$0 sm:$0xff] }
 0x197   : > { %4117 = vst [vmem:[#allocation34_spill] sm:$0xff] %v3370_v12  ;;  %4118 = vst [vmem:[#allocation35_spill] sm:$0xff] %v3377_v56  ;;  %v3440_v56 = vld [vmem:[%s3996_s5 + $0x1a] ss:$0 sm:$0xff]  ;;  %v3471_v12 = vmul.f32 %v3414_v28, %v3124_v9 }
 0x198   : > { %4120 = vst [vmem:[#allocation37_spill] sm:$0xff] %v3387_v22  ;;  %4121 = vst [vmem:[#allocation38_spill] sm:$0xff] %v3396_v42  ;;  %v3508_v42 = vld [vmem:[%s3997_s6 + $0x1c] ss:$0 sm:$0xff] }
 0x199   : > { %4122 = vst [vmem:[#allocation39_spill] sm:$0xff] %v3401_v18  ;;  %4123 = vst [vmem:[#allocation40_spill] sm:$0xff] %v3405_v20  ;;  %v4145_v18 = vld [vmem:[#allocation7_spill] sm:$0xff] }
 0x19a   : > { %4124 = vst [vmem:[#allocation41_spill] sm:$0xff] %v3409_v53  ;;  %4125 = vst [vmem:[#allocation42_spill] sm:$0xff] %v3414_v28  ;;  %v3490_v28 = vmul.f32 %v3440_v56, %v3124_v9  ;;  %v3535_v53 = vmul.f32 %v3508_v42, %v3124_v9 }
 0x19b   : > { %4126 = vst [vmem:[#allocation43_spill] sm:$0xff] %v3419_v23  ;;  %4127 = vst [vmem:[#allocation44_spill] sm:$0xff] %v3423_v19  ;;  %v3503_v19 = vld [vmem:[%s3996_s5 + $0x1c] ss:$0 sm:$0xff] }
 0x19c   : > { %4128 = vst [vmem:[#allocation45_spill] sm:$0xff] %v3427_v43  ;;  %4129 = vst [vmem:[#allocation46_spill] sm:$0xff] %v3431_v58  ;;  %v3450_v43 = vld [vmem:[%s3995_s4 + $0x1b] ss:$0 sm:$0xff] }
 0x19d   : > { %4130 = vst [vmem:[#allocation47_spill] sm:$0xff] %v3435_v31  ;;  %4131 = vst [vmem:[#allocation48_spill] sm:$0xff] %v3440_v56  ;;  %v3475_v31 = vmul.f32 %v3419_v23, %v3124_v9  ;;  %v3480_v58 = vld [vmem:[%s3997_s6 + $0x1b] ss:$0 sm:$0xff]  ;;  %v3494_v23 = vmul.f32 %v3445_v51, %v3124_v9  ;;  %v3498_v22 = vmul.f32 %v3450_v43, %v3124_v9 }
 0x19e   : > { %4132 = vst [vmem:[#allocation49_spill] sm:$0xff] %v3445_v51  ;;  %4133 = vst [vmem:[#allocation50_spill] sm:$0xff] %v3450_v43  ;;  %v3515_v43 = vmul.f32 %v3462_v63, %v3124_v9  ;;  %v3522_v8 = vmul.f32 %v3480_v58, %v3124_v9  ;;  %v3531_v51 = vmul.f32 %v3503_v19, %v3124_v9  ;;  %v439_v20 = vpop.xlane.xlu1 %438 }
 0x19f   : > { %4134 = vst [vmem:[#allocation51_spill] sm:$0xff] %v3457_v49  ;;  %4135 = vst [vmem:[#allocation52_spill] sm:$0xff] %v3462_v63  ;;  %v3527_v49 = vmul.f32 %v3485_v55, %v3124_v9  ;;  %v4144_v63 = vld [vmem:[#allocation6_spill] sm:$0xff]  ;;  %v447_v9 = vmul.f32 0.015625, %v439_v20 }
 0x1a0   : > { %4136 = vst [vmem:[#allocation53_spill] sm:$0xff] %v3480_v58  ;;  %4137 = vst [vmem:[#allocation54_spill] sm:$0xff] %v3485_v55  ;;  %v906_v58 = vmul.f32 %v2903_v5, %v3130_v29  ;;  %v909_v56 = vadd.f32 %v3176_v15, %v4144_v63  ;;  %v920_v55 = vmul.f32 %v2908_v6, %v3130_v29 }
 0x1a1   : > { %4138 = vst [vmem:[#allocation55_spill] sm:$0xff] %v3494_v23  ;;  %4139 = vst [vmem:[#allocation56_spill] sm:$0xff] %v3498_v22  ;;  %v934_v15 = vmul.f32 %v2917_v16, %v3130_v29  ;;  %v455_v63 = vadd.f32 1e-05, %v447_v9  ;;  %v4146_v23 = vld [vmem:[#allocation8_spill] sm:$0xff]  ;;  %v4147_v22 = vrot.slane %v3188_v24, 1  ;;  %v997_v16 = vmul.f32 %v2938_v35, %v3130_v29 }
 0x1a2   : > { %4140 = vst [vmem:[#allocation57_spill] sm:$0xff] %v3503_v19  ;;  %4141 = vst [vmem:[#allocation58_spill] sm:$0xff] %v3508_v42  ;;  %v910_v42 = vadd.f32 %v906_v58, %v3190_v7  ;;  %v924_v5 = vadd.f32 %v920_v55, %v3192_v26  ;;  %v937_v6 = vadd.f32 %v3184_v14, %v4146_v23  ;;  %v4148_v26 = vrot.slane %v3196_v10, 1 }
 0x1a3   : > { %4142 = vst [vmem:[#allocation59_spill] sm:$0xff] %v3515_v43  ;;  %4143 = vst [vmem:[#allocation60_spill] sm:$0xff] %v3522_v8  ;;  %v1861_v43 = vrot.slane %v3527_v49, 4  ;;  %v923_v8 = vadd.f32 %v3180_v25, %v4145_v18  ;;  %v947_v19 = vmul.f32 %v2922_v17, %v3130_v29  ;;  %v962_v20 = vadd.f32 %v4147_v22, %v909_v56 }
 0x1a4   : > { %v938_v7 = vadd.f32 %v934_v15, %v3202_v27  ;;  %v972_v25 = vmul.f32 %v2933_v34, %v3130_v29  ;;  %2592 = vrsqrt.f32 %v455_v63  ;;  %v4149_v14 = vrot.slane %v3200_v1, 1 }
 0x1a5   : > { %v987_v58 = vadd.f32 %v4148_v26, %v923_v8  ;;  %v955_v55 = vrot.slane %v947_v19, 1  ;;  %v1022_v17 = vmul.f32 %v3010_v60, %v3130_v29  ;;  %v1005_v56 = vrot.slane %v997_v16, 1 }
 0x1a6   : > { %v1012_v23 = vadd.f32 %v4149_v14, %v937_v6  ;;  %v980_v24 = vrot.slane %v972_v25, 1  ;;  %v4150_v27 = vrot.slane %v3207_v62, 2  ;;  %v1047_v34 = vmul.f32 %v3021_v61, %v3130_v29 }
 0x1a7   : > { %v963_v10 = vadd.f32 %v955_v55, %v910_v42  ;;  %v1030_v8 = vrot.slane %v1022_v17, 2  ;;  %v4151_v35 = vrot.slane %v3211_v52, 2  ;;  %v1072_v1 = vmul.f32 %v3031_v0, %v3130_v29 }
 0x1a8   : > { %v1037_v18 = vadd.f32 %v4150_v27, %v962_v20  ;;  %v988_v19 = vadd.f32 %v980_v24, %v924_v5  ;;  %v1013_v9 = vadd.f32 %v1005_v56, %v938_v7  ;;  %v1055_v15 = vrot.slane %v1047_v34, 2 }
 0x1a9   : > { %v1062_v22 = vadd.f32 %v4151_v35, %v987_v58  ;;  %v4152_v60 = vrot.slane %v3217_v13, 2  ;;  %v1038_v6 = vadd.f32 %v1030_v8, %v963_v10  ;;  %v1080_v62 = vrot.slane %v1072_v1, 2 }
 0x1aa   : > { %v1097_v20 = vmul.f32 %v3038_v3, %v3130_v29  ;;  %v4153_v61 = vrot.slane %v3221_v30, 3  ;;  %v1063_v25 = vadd.f32 %v1055_v15, %v988_v19  ;;  %v1122_v52 = vmul.f32 %v3043_v11, %v3130_v29  ;;  %v4161_v19 = vld [vmem:[#allocation14_spill] sm:$0xff]  ;;  %v4162_v15 = vld [vmem:[#allocation3_spill] sm:$0xff] }
 0x1ab   : > { %v1087_v63 = vadd.f32 %v4152_v60, %v1012_v23  ;;  %v4154_v0 = vrot.slane %v3227_v38, 3  ;;  %v1147_v7 = vmul.f32 %v3058_v59, %v3130_v29  ;;  %v1088_v13 = vadd.f32 %v1080_v62, %v1013_v9 }
 0x1ac   : > { %v1112_v42 = vadd.f32 %v4153_v61, %v1037_v18  ;;  %v1105_v26 = vrot.slane %v1097_v20, 3  ;;  %v4155_v58 = vrot.slane %v3231_v57, 3  ;;  %v1172_v3 = vmul.f32 %v3067_v37, %v3130_v29  ;;  %v4165_v20 = vld [vmem:[#allocation17_spill] sm:$0xff] }
 0x1ad   : > { %v1137_v5 = vadd.f32 %v4154_v0, %v1062_v22  ;;  %v1130_v30 = vrot.slane %v1122_v52, 3  ;;  %v1155_v55 = vrot.slane %v1147_v7, 3  ;;  %v4156_v14 = vrot.slane %v3247_v33, 4  ;;  %v4168_v52 = vld [vmem:[#allocation5_spill] sm:$0xff] }
 0x1ae   : > { %v1162_v16 = vadd.f32 %v4155_v58, %v1087_v63  ;;  %v1197_v11 = vmul.f32 %v3074_v2, %v3130_v29  ;;  %v1113_v38 = vadd.f32 %v1105_v26, %v1038_v6  ;;  %v1180_v17 = vrot.slane %v1172_v3, 4  ;;  %v4169_v26 = vld [vmem:[#allocation18_spill] sm:$0xff] }
 0x1af   : > { %v1187_v23 = vadd.f32 %v4156_v14, %v1112_v42  ;;  %v4157_v59 = vrot.slane %v3251_v50, 4  ;;  %v1222_v57 = vmul.f32 %v3089_v54, %v3130_v29  ;;  %v1138_v56 = vadd.f32 %v1130_v30, %v1063_v25  ;;  %v4167_v42 = vld [vmem:[#allocation9_spill] sm:$0xff] }
 0x1b0   : > { %v1163_v27 = vadd.f32 %v1155_v55, %v1088_v13  ;;  %v1205_v18 = vrot.slane %v1197_v11, 4  ;;  %v4158_v37 = vrot.slane %v3114_v4, 4  ;;  %v1188_v33 = vadd.f32 %v1180_v17, %v1113_v38  ;;  %v4170_v55 = vld [vmem:[#allocation12_spill] sm:$0xff] }
 0x1b1   : > { %v1212_v24 = vadd.f32 %v4157_v59, %v1137_v5  ;;  %v1230_v10 = vrot.slane %v1222_v57, 4  ;;  %v4159_v2 = vrot.slane %v3122_v45, 4  ;;  %v4160_v35 = vrot.slane %v3267_v21, 4  ;;  %v4163_v45 = vld [vmem:[#allocation4_spill] sm:$0xff]  ;;  %v2593_v60 = vpop.eup %2592  ;;  %v4171_v59 = vld [vmem:[#allocation21_spill] sm:$0xff] }
 0x1b2   : > { %v1235_v34 = vadd.f32 %v4158_v37, %v3094_v39  ;;  %v1213_v22 = vadd.f32 %v1205_v18, %v1138_v56  ;;  %v1247_v54 = vmul.f32 %v3110_v40, %v3130_v29  ;;  %v1248_v1 = vmul.f32 %v3110_v40, %v3152_v32  ;;  %v4164_v40 = vld [vmem:[#allocation10_spill] sm:$0xff] }
 0x1b3   : > { %v1236_v8 = vadd.f32 %v4159_v2, %v3096_v41  ;;  %v1237_v50 = vadd.f32 %v4160_v35, %v1162_v16  ;;  %v1249_v4 = vadd.f32 %v3136_v36, %v3101_v48  ;;  %v1238_v39 = vadd.f32 %v1230_v10, %v1163_v27  ;;  %v4166_v48 = vld [vmem:[#allocation2_spill] sm:$0xff]  ;;  %v548_v10 = vpop.permute.xlu0 %547 }
 0x1b4   : > { %v1250_v9 = vadd.f32 %v4161_v19, %v3103_v44  ;;  %v1259_v41 = vmul.f32 %v4163_v45, %v4162_v15  ;;  %v1261_v21 = vmul.f32 %v4163_v45, %v3130_v29  ;;  %v1251_v63 = vadd.f32 %v1247_v54, %v1187_v23  ;;  %v2594_v16 = vld [vmem:[%s3993_s2] ss:$0 sm:$0xff] }
 0x1b5   : > { %v1252_v6 = vadd.f32 %v1248_v1, %v1188_v33  ;;  %v1262_v62 = vmul.f32 %v4163_v45, %v3152_v32  ;;  %v1264_v61 = vadd.f32 %v4165_v20, %v4164_v40  ;;  %v471_v36 = vmul.f32 %v2593_v60, %v4166_v48  ;;  %v2595_v56 = vld [vmem:[%s3994_s3] ss:$0 sm:$0xff]  ;;  %v4176_v60 = vld [vmem:[#allocation15_spill] sm:$0xff] }
 0x1b6   : > { %v1263_v25 = vadd.f32 %v1259_v41, %v4167_v42  ;;  %v1265_v44 = vadd.f32 %v1261_v21, %v1212_v24  ;;  %v1273_v0 = vmul.f32 %v4168_v52, %v4162_v15  ;;  %v1275_v7 = vmul.f32 %v4168_v52, %v3130_v29 }
 0x1b7   : > { %v1266_v5 = vadd.f32 %v1262_v62, %v1213_v22  ;;  %v1276_v13 = vmul.f32 %v4168_v52, %v3152_v32  ;;  %v1278_v58 = vadd.f32 %v4169_v26, %v1236_v8  ;;  %v486_v3 = vmul.f32 %v2594_v16, %v471_v36  ;;  %v4177_v36 = vld [vmem:[#allocation23_spill] sm:$0xff] }
 0x1b8   : > { %v1277_v30 = vadd.f32 %v1273_v0, %v1235_v34  ;;  %v1286_v14 = vmul.f32 %v4170_v55, %v4162_v15  ;;  %v1288_v23 = vmul.f32 %v4170_v55, %v3130_v29  ;;  %v1279_v11 = vadd.f32 %v1275_v7, %v1237_v50  ;;  %v4173_v34 = vld [vmem:[#allocation13_spill] sm:$0xff]  ;;  %v4174_v50 = vld [vmem:[#allocation22_spill] sm:$0xff] }
 0x1b9   : > { %v1280_v38 = vadd.f32 %v1276_v13, %v1238_v39  ;;  %v1289_v17 = vmul.f32 %v4170_v55, %v3152_v32  ;;  %v4172_v24 = vrot.slane %v4171_v59, 1  ;;  %v501_v27 = vadd.f32 %v2595_v56, %v486_v3 }
 0x1ba   : > { %v1294_v18 = vrot.slane %v1286_v14, 1  ;;  %v1296_v37 = vrot.slane %v1288_v23, 1  ;;  %v1311_v33 = vmul.f32 %v4173_v34, %v4162_v15  ;;  %v1313_v8 = vmul.f32 %v4173_v34, %v3130_v29 }
 0x1bb   : > { %v1303_v57 = vadd.f32 %v4172_v24, %v1250_v9  ;;  %v1297_v2 = vrot.slane %v1289_v17, 1  ;;  %v1314_v35 = vmul.f32 %v4173_v34, %v3152_v32  ;;  %v4175_v22 = vrot.slane %v4174_v50, 1  ;;  %v4182_v34 = vld [vmem:[#allocation26_spill] sm:$0xff] }
 0x1bc   : > { %v3657_v1 = vmul.f32 %v548_v10, %v501_v27  ;;  %v1302_v39 = vadd.f32 %v1294_v18, %v1249_v4  ;;  %v1304_v19 = vadd.f32 %v1296_v37, %v1251_v63  ;;  %v1319_v9 = vrot.slane %v1311_v33, 1  ;;  %v4184_v33 = vld [vmem:[#allocation20_spill] sm:$0xff] }
 0x1bd   : > { %v1328_v54 = vadd.f32 %v4175_v22, %v1264_v61  ;;  %v1305_v45 = vadd.f32 %v1297_v2, %v1252_v6  ;;  %v1321_v41 = vrot.slane %v1313_v8, 1  ;;  %v1322_v21 = vrot.slane %v1314_v35, 1  ;;  %v4179_v6 = vld [vmem:[#allocation16_spill] sm:$0xff]  ;;  %v4185_v22 = vld [vmem:[#allocation27_spill] sm:$0xff] }
 0x1be   : > { %v1336_v62 = vmul.f32 %v4176_v60, %v4162_v15  ;;  %v1327_v40 = vadd.f32 %v1319_v9, %v1263_v25  ;;  %v1338_v20 = vmul.f32 %v4176_v60, %v3130_v29  ;;  %v1339_v48 = vmul.f32 %v4176_v60, %v3152_v32  ;;  %v4187_v9 = vld [vmem:[#allocation24_spill] sm:$0xff] }
 0x1bf   : > { %v4178_v61 = vrot.slane %v4177_v36, 1  ;;  %v1329_v52 = vadd.f32 %v1321_v41, %v1265_v44  ;;  %v1330_v4 = vadd.f32 %v1322_v21, %v1266_v5  ;;  %v1361_v0 = vmul.f32 %v4179_v6, %v4162_v15  ;;  %v4181_v44 = vld [vmem:[#allocation19_spill] sm:$0xff] }
 0x1c0   : > { %v1344_v63 = vrot.slane %v1336_v62, 1  ;;  %v1346_v7 = vrot.slane %v1338_v20, 1  ;;  %v1347_v13 = vrot.slane %v1339_v48, 1  ;;  %v1363_v25 = vmul.f32 %v4179_v6, %v3130_v29 }
 0x1c1   : > { %v1353_v42 = vadd.f32 %v4178_v61, %v1278_v58  ;;  %v1364_v26 = vmul.f32 %v4179_v6, %v3152_v32  ;;  %v1369_v3 = vrot.slane %v1361_v0, 2  ;;  %v4180_v55 = vrot.slane %v3328_v47, 2  ;;  %v4190_v0 = vld [vmem:[#allocation25_spill] sm:$0xff] }
 0x1c2   : > { %v1352_v16 = vadd.f32 %v1344_v63, %v1277_v30  ;;  %v1386_v5 = vmul.f32 %v4181_v44, %v4162_v15  ;;  %v1354_v58 = vadd.f32 %v1346_v7, %v1279_v11  ;;  %v1355_v23 = vadd.f32 %v1347_v13, %v1280_v38  ;;  %v4188_v63 = vld [vmem:[#allocation28_spill] sm:$0xff] }
 0x1c3   : > { %v1378_v14 = vadd.f32 %v4180_v55, %v1303_v57  ;;  %v1371_v17 = vrot.slane %v1363_v25, 2  ;;  %v1372_v59 = vrot.slane %v1364_v26, 2  ;;  %v1377_v24 = vadd.f32 %v1369_v3, %v1302_v39  ;;  %v4191_v55 = vld [vmem:[#allocation35_spill] sm:$0xff] }
 0x1c4   : > { %v1388_v56 = vmul.f32 %v4181_v44, %v3130_v29  ;;  %v1389_v27 = vmul.f32 %v4181_v44, %v3152_v32  ;;  %v1394_v18 = vrot.slane %v1386_v5, 2  ;;  %v4183_v47 = vrot.slane %v4182_v34, 2 }
 0x1c5   : > { %v1379_v30 = vadd.f32 %v1371_v17, %v1304_v19  ;;  %v1380_v37 = vadd.f32 %v1372_v59, %v1305_v45  ;;  %v1411_v10 = vmul.f32 %v4184_v33, %v4162_v15  ;;  %v1413_v8 = vmul.f32 %v4184_v33, %v3130_v29 }
 0x1c6   : > { %v1403_v57 = vadd.f32 %v4183_v47, %v1328_v54  ;;  %v1396_v11 = vrot.slane %v1388_v56, 2  ;;  %v1397_v38 = vrot.slane %v1389_v27, 2  ;;  %v1402_v2 = vadd.f32 %v1394_v18, %v1327_v40  ;;  %v4194_v18 = vld [vmem:[#allocation39_spill] sm:$0xff] }
 0x1c7   : > { %v1414_v35 = vmul.f32 %v4184_v33, %v3152_v32  ;;  %v1419_v50 = vrot.slane %v1411_v10, 2  ;;  %v4186_v39 = vrot.slane %v4185_v22, 2  ;;  %v1436_v45 = vmul.f32 %v4187_v9, %v4162_v15 }
 0x1c8   : > { %v1404_v54 = vadd.f32 %v1396_v11, %v1329_v52  ;;  %v1405_v41 = vadd.f32 %v1397_v38, %v1330_v4  ;;  %v1421_v21 = vrot.slane %v1413_v8, 2  ;;  %v1438_v60 = vmul.f32 %v4187_v9, %v3130_v29 }
 0x1c9   : > { %v1428_v19 = vadd.f32 %v4186_v39, %v1353_v42  ;;  %v1422_v62 = vrot.slane %v1414_v35, 2  ;;  %v1427_v40 = vadd.f32 %v1419_v50, %v1352_v16  ;;  %v1439_v20 = vmul.f32 %v4187_v9, %v3152_v32  ;;  %v4197_v39 = vld [vmem:[#allocation40_spill] sm:$0xff] }
 0x1ca   : > { %v1444_v48 = vrot.slane %v1436_v45, 3  ;;  %v1429_v36 = vadd.f32 %v1421_v21, %v1354_v58  ;;  %v1446_v61 = vrot.slane %v1438_v60, 3  ;;  %v4189_v6 = vrot.slane %v4188_v63, 3  ;;  %v4199_v60 = vld [vmem:[#allocation31_spill] sm:$0xff] }
 0x1cb   : > { %v1461_v7 = vmul.f32 %v4190_v0, %v4162_v15  ;;  %v1430_v52 = vadd.f32 %v1422_v62, %v1355_v23  ;;  %v1447_v4 = vrot.slane %v1439_v20, 3  ;;  %v1463_v25 = vmul.f32 %v4190_v0, %v3130_v29 }
 0x1cc   : > { %v1453_v42 = vadd.f32 %v4189_v6, %v1378_v14  ;;  %v1452_v13 = vadd.f32 %v1444_v48, %v1377_v24  ;;  %v1454_v26 = vadd.f32 %v1446_v61, %v1379_v30  ;;  %v1464_v16 = vmul.f32 %v4190_v0, %v3152_v32  ;;  %v4193_v14 = vld [vmem:[#allocation29_spill] sm:$0xff] }
 0x1cd   : > { %v1469_v3 = vrot.slane %v1461_v7, 3  ;;  %v4192_v44 = vrot.slane %v4191_v55, 3  ;;  %v1455_v58 = vadd.f32 %v1447_v4, %v1380_v37  ;;  %v1471_v17 = vrot.slane %v1463_v25, 3  ;;  %v4196_v37 = vld [vmem:[#allocation30_spill] sm:$0xff]  ;;  %v4200_v61 = vld [vmem:[#allocation41_spill] sm:$0xff]  ;;  %v4203_v55 = vld [vmem:[#allocation44_spill] sm:$0xff] }
 0x1ce   : > { %v1486_v59 = vmul.f32 %v4193_v14, %v4162_v15  ;;  %v1488_v23 = vmul.f32 %v4193_v14, %v3130_v29  ;;  %v1472_v24 = vrot.slane %v1464_v16, 3  ;;  %v1489_v27 = vmul.f32 %v4193_v14, %v3152_v32 }
 0x1cf   : > { %v1478_v5 = vadd.f32 %v4192_v44, %v1403_v57  ;;  %v1477_v56 = vadd.f32 %v1469_v3, %v1402_v2  ;;  %v4195_v30 = vrot.slane %v4194_v18, 3  ;;  %v1479_v47 = vadd.f32 %v1471_v17, %v1404_v54 }
 0x1d0   : > { %v1494_v33 = vrot.slane %v1486_v59, 3  ;;  %v1496_v10 = vrot.slane %v1488_v23, 3  ;;  %v1511_v57 = vmul.f32 %v4196_v37, %v4162_v15  ;;  %v1480_v11 = vadd.f32 %v1472_v24, %v1405_v41 }
 0x1d1   : > { %v1503_v34 = vadd.f32 %v4195_v30, %v1428_v19  ;;  %v1497_v38 = vrot.slane %v1489_v27, 3  ;;  %v1513_v8 = vmul.f32 %v4196_v37, %v3130_v29  ;;  %v1514_v2 = vmul.f32 %v4196_v37, %v3152_v32  ;;  %v4206_v27 = vld [vmem:[#allocation11_spill] sm:$0xff]  ;;  %v4207_v30 = vld [vmem:[#allocation45_spill] sm:$0xff] }
 0x1d2   : > { %v1502_v35 = vadd.f32 %v1494_v33, %v1427_v40  ;;  %v1504_v50 = vadd.f32 %v1496_v10, %v1429_v36  ;;  %v1519_v22 = vrot.slane %v1511_v57, 4  ;;  %v4198_v9 = vrot.slane %v4197_v39, 4  ;;  %v4210_v39 = vld [vmem:[#allocation34_spill] sm:$0xff] }
 0x1d3   : > { %v1505_v45 = vadd.f32 %v1497_v38, %v1430_v52  ;;  %v1521_v54 = vrot.slane %v1513_v8, 4  ;;  %v1522_v21 = vrot.slane %v1514_v2, 4  ;;  %v1536_v62 = vmul.f32 %v4199_v60, %v4162_v15  ;;  %v4209_v2 = vld [vmem:[#allocation46_spill] sm:$0xff] }
 0x1d4   : > { %v1528_v19 = vadd.f32 %v4198_v9, %v1453_v42  ;;  %v1527_v41 = vadd.f32 %v1519_v22, %v1452_v13  ;;  %v1538_v20 = vmul.f32 %v4199_v60, %v3130_v29  ;;  %v1539_v48 = vmul.f32 %v4199_v60, %v3152_v32  ;;  %v4202_v42 = vld [vmem:[#allocation36_spill] sm:$0xff] }
 0x1d5   : > { %v4201_v40 = vrot.slane %v4200_v61, 4  ;;  %v1529_v63 = vadd.f32 %v1521_v54, %v1454_v26  ;;  %v1530_v6 = vadd.f32 %v1522_v21, %v1455_v58  ;;  %v1544_v0 = vrot.slane %v1536_v62, 4  ;;  %v4205_v26 = vld [vmem:[#allocation32_spill] sm:$0xff]  ;;  %v4211_v21 = vld [vmem:[#allocation47_spill] sm:$0xff] }
 0x1d6   : > { %v1561_v7 = vmul.f32 %v4202_v42, %v4162_v15  ;;  %v1546_v52 = vrot.slane %v1538_v20, 4  ;;  %v1547_v4 = vrot.slane %v1539_v48, 4  ;;  %v1563_v13 = vmul.f32 %v4202_v42, %v3130_v29  ;;  %v4212_v20 = vld [vmem:[#allocation37_spill] sm:$0xff] }
 0x1d7   : > { %v1553_v36 = vadd.f32 %v4201_v40, %v1478_v5  ;;  %v1564_v25 = vmul.f32 %v4202_v42, %v3152_v32  ;;  %v1552_v16 = vadd.f32 %v1544_v0, %v1477_v56  ;;  %v4204_v44 = vrot.slane %v4203_v55, 4  ;;  %v4215_v42 = vld [vmem:[#allocation38_spill] sm:$0xff] }
 0x1d8   : > { %v1569_v3 = vrot.slane %v1561_v7, 4  ;;  %v1588_v5 = vmul.f32 %v4205_v26, %v3130_v29  ;;  %v1554_v58 = vadd.f32 %v1546_v52, %v1479_v47  ;;  %v1555_v14 = vadd.f32 %v1547_v4, %v1480_v11 }
 0x1d9   : > { %v1578_v17 = vadd.f32 %v4204_v44, %v1503_v34  ;;  %v1571_v59 = vrot.slane %v1563_v13, 4  ;;  %v1572_v15 = vrot.slane %v1564_v25, 4  ;;  %v1589_v24 = vmul.f32 %v4205_v26, %v3152_v32  ;;  %v4208_v34 = vld [vmem:[#allocation33_spill] sm:$0xff] }
 0x1da   : > { %v1577_v23 = vadd.f32 %v1569_v3, %v1502_v35  ;;  %v1590_v18 = vmul.f32 %v4205_v26, %v4206_v27  ;;  %v1591_v56 = vadd.f32 %v4207_v30, %v1527_v41  ;;  %v1592_v37 = vadd.f32 %v1588_v5, %v1528_v19 }
 0x1db   : > { %v1579_v33 = vadd.f32 %v1571_v59, %v1504_v50  ;;  %v1580_v10 = vadd.f32 %v1572_v15, %v1505_v45  ;;  %v1602_v57 = vmul.f32 %v4208_v34, %v3130_v29  ;;  %v1593_v38 = vadd.f32 %v1589_v24, %v1529_v63  ;;  %v4213_v63 = vld [vmem:[#allocation51_spill] sm:$0xff] }
 0x1dc   : > { %v1594_v47 = vadd.f32 %v1590_v18, %v1530_v6  ;;  %v1603_v11 = vmul.f32 %v4208_v34, %v3152_v32  ;;  %v1604_v8 = vmul.f32 %v4208_v34, %v4206_v27  ;;  %v1605_v35 = vadd.f32 %v4209_v2, %v1552_v16 }
 0x1dd   : > { %v1606_v22 = vadd.f32 %v1602_v57, %v1553_v36  ;;  %v1616_v9 = vmul.f32 %v4210_v39, %v3130_v29  ;;  %v1617_v50 = vmul.f32 %v4210_v39, %v3152_v32  ;;  %v1618_v54 = vmul.f32 %v4210_v39, %v4206_v27 }
 0x1de   : > { %v1607_v19 = vadd.f32 %v1603_v11, %v1554_v58  ;;  %v1608_v45 = vadd.f32 %v1604_v8, %v1555_v14  ;;  %v1619_v60 = vadd.f32 %v4211_v21, %v1577_v23  ;;  %v1629_v48 = vmul.f32 %v4212_v20, %v3130_v29 }
 0x1df   : > { %v1620_v62 = vadd.f32 %v1616_v9, %v1578_v17  ;;  %v1621_v41 = vadd.f32 %v1617_v50, %v1579_v33  ;;  %v1630_v61 = vmul.f32 %v4212_v20, %v3152_v32  ;;  %v1622_v40 = vadd.f32 %v1618_v54, %v1580_v10  ;;  %v4217_v17 = vld [vmem:[#allocation42_spill] sm:$0xff] }
 0x1e0   : > { %v1631_v36 = vmul.f32 %v4212_v20, %v4206_v27  ;;  %v4214_v6 = vrot.slane %v4213_v63, 1  ;;  %v1654_v7 = vmul.f32 %v4215_v42, %v3130_v29  ;;  %v1637_v52 = vrot.slane %v1629_v48, 1 }
 0x1e1   : > { %v1638_v4 = vrot.slane %v1630_v61, 1  ;;  %v1655_v13 = vmul.f32 %v4215_v42, %v3152_v32  ;;  %v1656_v25 = vmul.f32 %v4215_v42, %v4206_v27  ;;  %v4216_v55 = vrot.slane %v3467_v46, 1  ;;  %v4223_v61 = vld [vmem:[#allocation49_spill] sm:$0xff] }
 0x1e2   : > { %v1644_v0 = vadd.f32 %v4214_v6, %v1591_v56  ;;  %v1639_v16 = vrot.slane %v1631_v36, 1  ;;  %v1662_v3 = vrot.slane %v1654_v7, 1  ;;  %v1679_v26 = vmul.f32 %v4217_v17, %v3130_v29 }
 0x1e3   : > { %v1669_v44 = vadd.f32 %v4216_v55, %v1605_v35  ;;  %v1645_v5 = vadd.f32 %v1637_v52, %v1592_v37  ;;  %v1646_v58 = vadd.f32 %v1638_v4, %v1593_v38  ;;  %v1663_v14 = vrot.slane %v1655_v13, 1  ;;  %v4219_v37 = vld [vmem:[#allocation43_spill] sm:$0xff] }
 0x1e4   : > { %v1664_v59 = vrot.slane %v1656_v25, 1  ;;  %v1647_v15 = vadd.f32 %v1639_v16, %v1594_v47  ;;  %v1670_v23 = vadd.f32 %v1662_v3, %v1606_v22  ;;  %v1680_v24 = vmul.f32 %v4217_v17, %v3152_v32  ;;  %v4221_v22 = vld [vmem:[#allocation48_spill] sm:$0xff]  ;;  %v4224_v52 = vld [vmem:[#allocation55_spill] sm:$0xff]  ;;  %v4226_v16 = vld [vmem:[#allocation50_spill] sm:$0xff] }
 0x1e5   : > { %v1681_v18 = vmul.f32 %v4217_v17, %v4206_v27  ;;  %v1671_v30 = vadd.f32 %v1663_v14, %v1607_v19  ;;  %v1687_v33 = vrot.slane %v1679_v26, 1  ;;  %v4218_v46 = vrot.slane %v3471_v12, 1 }
 0x1e6   : > { %v1672_v56 = vadd.f32 %v1664_v59, %v1608_v45  ;;  %v1688_v34 = vrot.slane %v1680_v24, 1  ;;  %v1704_v38 = vmul.f32 %v4219_v37, %v3130_v29  ;;  %v1705_v47 = vmul.f32 %v4219_v37, %v3152_v32  ;;  %v4227_v59 = vld [vmem:[#allocation56_spill] sm:$0xff] }
 0x1e7   : > { %v1694_v10 = vadd.f32 %v4218_v46, %v1619_v60  ;;  %v1689_v57 = vrot.slane %v1681_v18, 1  ;;  %v1695_v11 = vadd.f32 %v1687_v33, %v1620_v62  ;;  %v1706_v8 = vmul.f32 %v4219_v37, %v4206_v27  ;;  %v4229_v24 = vld [vmem:[#allocation52_spill] sm:$0xff] }
 0x1e8   : > { %v4220_v2 = vrot.slane %v3475_v31, 2  ;;  %v1729_v39 = vmul.f32 %v4221_v22, %v3130_v29  ;;  %v1696_v12 = vadd.f32 %v1688_v34, %v1621_v41  ;;  %v1712_v50 = vrot.slane %v1704_v38, 2 }
 0x1e9   : > { %v1697_v9 = vadd.f32 %v1689_v57, %v1622_v40  ;;  %v1713_v19 = vrot.slane %v1705_v47, 2  ;;  %v1714_v45 = vrot.slane %v1706_v8, 2  ;;  %v1730_v54 = vmul.f32 %v4221_v22, %v3152_v32 }
 0x1ea   : > { %v1719_v35 = vadd.f32 %v4220_v2, %v1644_v0  ;;  %v1731_v21 = vmul.f32 %v4221_v22, %v4206_v27  ;;  %v1737_v60 = vrot.slane %v1729_v39, 2  ;;  %v1720_v62 = vadd.f32 %v1712_v50, %v1645_v5 }
 0x1eb   : > { %v1721_v20 = vadd.f32 %v1713_v19, %v1646_v58  ;;  %v4222_v31 = vrot.slane %v3490_v28, 2  ;;  %v1754_v36 = vmul.f32 %v4223_v61, %v3130_v29  ;;  %v1722_v41 = vadd.f32 %v1714_v45, %v1647_v15 }
 0x1ec   : > { %v1738_v40 = vrot.slane %v1730_v54, 2  ;;  %v1739_v63 = vrot.slane %v1731_v21, 2  ;;  %v1745_v6 = vadd.f32 %v1737_v60, %v1670_v23  ;;  %v1755_v0 = vmul.f32 %v4223_v61, %v3152_v32  ;;  %v4233_v54 = vld [vmem:[#allocation60_spill] sm:$0xff] }
 0x1ed   : > { %v1744_v48 = vadd.f32 %v4222_v31, %v1669_v44  ;;  %v1756_v42 = vmul.f32 %v4223_v61, %v4206_v27  ;;  %v1762_v7 = vrot.slane %v1754_v36, 2  ;;  %v4225_v4 = vrot.slane %v4224_v52, 2  ;;  %v4236_v52 = vld [vmem:[#allocation57_spill] sm:$0xff] }
 0x1ee   : > { %v1746_v25 = vadd.f32 %v1738_v40, %v1671_v30  ;;  %v1747_v28 = vadd.f32 %v1739_v63, %v1672_v56  ;;  %v1779_v3 = vmul.f32 %v4226_v16, %v3130_v29  ;;  %v1780_v55 = vmul.f32 %v4226_v16, %v3152_v32 }
 0x1ef   : > { %v1769_v13 = vadd.f32 %v4225_v4, %v1694_v10  ;;  %v1763_v44 = vrot.slane %v1755_v0, 2  ;;  %v1764_v17 = vrot.slane %v1756_v42, 2  ;;  %v1770_v26 = vadd.f32 %v1762_v7, %v1695_v11  ;;  %v4230_v11 = vld [vmem:[#allocation59_spill] sm:$0xff] }
 0x1f0   : > { %v1781_v5 = vmul.f32 %v4226_v16, %v4206_v27  ;;  %v1787_v58 = vrot.slane %v1779_v3, 3  ;;  %v1788_v14 = vrot.slane %v1780_v55, 3  ;;  %v4228_v15 = vrot.slane %v4227_v59, 3  ;;  %v2532_v3 = vld [vmem:[%s3995_s4 + $0x20] ss:$0 sm:$0xff] }
 0x1f1   : > { %v1804_v18 = vmul.f32 %v4229_v24, %v3130_v29  ;;  %v1771_v30 = vadd.f32 %v1763_v44, %v1696_v12  ;;  %v1772_v56 = vadd.f32 %v1764_v17, %v1697_v9  ;;  %v1805_v46 = vmul.f32 %v4229_v24, %v3152_v32  ;;  %v4238_v17 = vld [vmem:[#allocation58_spill] sm:$0xff] }
 0x1f2   : > { %v1794_v23 = vadd.f32 %v4228_v15, %v1719_v35  ;;  %v1789_v33 = vrot.slane %v1781_v5, 3  ;;  %v1795_v10 = vadd.f32 %v1787_v58, %v1720_v62  ;;  %v1796_v34 = vadd.f32 %v1788_v14, %v1721_v20  ;;  %v4232_v35 = vld [vmem:[#allocation53_spill] sm:$0xff]  ;;  %v4235_v62 = vld [vmem:[#allocation54_spill] sm:$0xff] }
 0x1f3   : > { %v1806_v57 = vmul.f32 %v4229_v24, %v4206_v27  ;;  %v1812_v37 = vrot.slane %v1804_v18, 3  ;;  %v1813_v47 = vrot.slane %v1805_v46, 3  ;;  %v4231_v8 = vrot.slane %v4230_v11, 3  ;;  %v2534_v15 = vld [vmem:[%s3996_s5 + $0x20] ss:$0 sm:$0xff] }
 0x1f4   : > { %v1797_v38 = vadd.f32 %v1789_v33, %v1722_v41  ;;  %v1829_v22 = vmul.f32 %v4232_v35, %v3130_v29  ;;  %v1830_v9 = vmul.f32 %v4232_v35, %v3152_v32  ;;  %v1831_v50 = vmul.f32 %v4232_v35, %v4206_v27  ;;  %v2538_v35 = vld [vmem:[%s3995_s4 + $0x21] ss:$0 sm:$0xff] }
 0x1f5   : > { %v1819_v2 = vadd.f32 %v4231_v8, %v1744_v48  ;;  %v1814_v39 = vrot.slane %v1806_v57, 3  ;;  %v1820_v12 = vadd.f32 %v1812_v37, %v1745_v6  ;;  %v1821_v19 = vadd.f32 %v1813_v47, %v1746_v25  ;;  %v2536_v47 = vld [vmem:[%s3997_s6 + $0x20] ss:$0 sm:$0xff] }
 0x1f6   : > { %v1837_v45 = vrot.slane %v1829_v22, 3  ;;  %v4234_v21 = vrot.slane %v4233_v54, 3  ;;  %v1854_v20 = vmul.f32 %v4235_v62, %v3130_v29  ;;  %v1838_v48 = vrot.slane %v1830_v9, 3 }
 0x1f7   : > { %v1822_v31 = vadd.f32 %v1814_v39, %v1747_v28  ;;  %v1839_v61 = vrot.slane %v1831_v50, 3  ;;  %v1855_v36 = vmul.f32 %v4235_v62, %v3152_v32  ;;  %v1856_v40 = vmul.f32 %v4235_v62, %v4206_v27 }
 0x1f8   : > { %v1844_v60 = vadd.f32 %v4234_v21, %v1769_v13  ;;  %v1845_v41 = vadd.f32 %v1837_v45, %v1770_v26  ;;  %v1862_v63 = vrot.slane %v1854_v20, 4  ;;  %v1869_v6 = vadd.f32 %v1861_v43, %v1794_v23 }
 0x1f9   : > { %v1846_v0 = vadd.f32 %v1838_v48, %v1771_v30  ;;  %v1847_v42 = vadd.f32 %v1839_v61, %v1772_v56  ;;  %v1863_v7 = vrot.slane %v1855_v36, 4  ;;  %v1879_v4 = vmul.f32 %v4236_v52, %v3130_v29 }
 0x1fa   : > { %v1864_v13 = vrot.slane %v1856_v40, 4  ;;  %v1870_v25 = vadd.f32 %v1862_v63, %v1795_v10  ;;  %v1880_v28 = vmul.f32 %v4236_v52, %v3152_v32  ;;  %v1881_v16 = vmul.f32 %v4236_v52, %v4206_v27 }
 0x1fb   : > { %v1871_v49 = vadd.f32 %v1863_v7, %v1796_v34  ;;  %v1887_v43 = vrot.slane %v1879_v4, 4  ;;  %v4237_v55 = vrot.slane %v3531_v51, 4  ;;  %v1904_v26 = vmul.f32 %v4238_v17, %v3130_v29 }
 0x1fc   : > { %v1872_v5 = vadd.f32 %v1864_v13, %v1797_v38  ;;  %v1888_v58 = vrot.slane %v1880_v28, 4  ;;  %v1889_v14 = vrot.slane %v1881_v16, 4  ;;  %v1905_v59 = vmul.f32 %v4238_v17, %v3152_v32  ;;  %v2542_v13 = vld [vmem:[%s3997_s6 + $0x21] ss:$0 sm:$0xff] }
 0x1fd   : > { %v1894_v44 = vadd.f32 %v4237_v55, %v1819_v2  ;;  %v1895_v23 = vadd.f32 %v1887_v43, %v1820_v12  ;;  %v1906_v24 = vmul.f32 %v4238_v17, %v4206_v27  ;;  %v1912_v18 = vrot.slane %v1904_v26, 4 }
 0x1fe   : > { %v4239_v51 = vrot.slane %v3535_v53, 4  ;;  %v1896_v56 = vadd.f32 %v1888_v58, %v1821_v19  ;;  %v1897_v33 = vadd.f32 %v1889_v14, %v1822_v31  ;;  %v1913_v46 = vrot.slane %v1905_v59, 4  ;;  %v2540_v31 = vld [vmem:[%s3996_s5 + $0x21] ss:$0 sm:$0xff]  ;;  %v2544_v14 = vld [vmem:[%s3995_s4 + $0x22] ss:$0 sm:$0xff] }
 0x1ff   : > { %v1929_v10 = vmul.f32 %v2532_v3, %v3130_v29  ;;  %v1914_v34 = vrot.slane %v1906_v24, 4  ;;  %v1920_v57 = vadd.f32 %v1912_v18, %v1845_v41  ;;  %v1930_v37 = vmul.f32 %v2532_v3, %v3152_v32 }
 0x200   : > { %v1919_v30 = vadd.f32 %v4239_v51, %v1844_v60  ;;  %v1931_v38 = vmul.f32 %v2532_v3, %v4206_v27  ;;  %v1921_v11 = vadd.f32 %v1913_v46, %v1846_v0  ;;  %v1932_v8 = vmul.f32 %v2532_v3, %v3657_v1 }
 0x201   : > { %v1933_v53 = vadd.f32 %v1929_v10, %v1869_v6  ;;  %v1943_v2 = vmul.f32 %v2534_v15, %v3130_v29  ;;  %v1922_v22 = vadd.f32 %v1914_v34, %v1847_v42  ;;  %v1934_v39 = vadd.f32 %v1930_v37, %v1870_v25 }
 0x202   : > { %v1935_v12 = vadd.f32 %v1931_v38, %v1871_v49  ;;  %v1944_v9 = vmul.f32 %v2534_v15, %v3152_v32  ;;  %v1936_v50 = vadd.f32 %v1932_v8, %v1872_v5  ;;  %v1945_v19 = vmul.f32 %v2534_v15, %v4206_v27 }
 0x203   : > { %v1946_v45 = vmul.f32 %v2534_v15, %v3657_v1  ;;  %v1947_v54 = vadd.f32 %v1943_v2, %v1894_v44  ;;  %v1957_v60 = vmul.f32 %v2536_v47, %v3130_v29  ;;  %v1958_v62 = vmul.f32 %v2536_v47, %v3152_v32 }
 0x204   : > { %v1948_v21 = vadd.f32 %v1944_v9, %v1895_v23  ;;  %v1959_v20 = vmul.f32 %v2536_v47, %v4206_v27  ;;  %v1949_v48 = vadd.f32 %v1945_v19, %v1896_v56  ;;  %v1960_v36 = vmul.f32 %v2536_v47, %v3657_v1 }
 0x205   : > { %v1950_v61 = vadd.f32 %v1946_v45, %v1897_v33  ;;  %v1970_v41 = vmul.f32 %v2538_v35, %v3130_v29  ;;  %v1961_v40 = vadd.f32 %v1957_v60, %v1919_v30  ;;  %v1962_v63 = vadd.f32 %v1958_v62, %v1920_v57  ;;  %v2546_v57 = vld [vmem:[%s3996_s5 + $0x22] ss:$0 sm:$0xff] }
 0x206   : > { %v1963_v6 = vadd.f32 %v1959_v20, %v1921_v11  ;;  %v1971_v0 = vmul.f32 %v2538_v35, %v3152_v32  ;;  %v1964_v42 = vadd.f32 %v1960_v36, %v1922_v22  ;;  %v1972_v7 = vmul.f32 %v2538_v35, %v4206_v27 }
 0x207   : > { %v1973_v52 = vmul.f32 %v2538_v35, %v3657_v1  ;;  %v1978_v4 = vrot.slane %v1970_v41, 1  ;;  %v1995_v28 = vmul.f32 %v2540_v31, %v3130_v29  ;;  %v1996_v16 = vmul.f32 %v2540_v31, %v3152_v32 }
 0x208   : > { %v1979_v25 = vrot.slane %v1971_v0, 1  ;;  %v1997_v3 = vmul.f32 %v2540_v31, %v4206_v27  ;;  %v1980_v49 = vrot.slane %v1972_v7, 1  ;;  %v1998_v44 = vmul.f32 %v2540_v31, %v3657_v1 }
 0x209   : > { %v1981_v43 = vrot.slane %v1973_v52, 1  ;;  %v1986_v55 = vadd.f32 %v1978_v4, %v1933_v53  ;;  %v2003_v26 = vrot.slane %v1995_v28, 1  ;;  %v2004_v5 = vrot.slane %v1996_v16, 1 }
 0x20a   : > { %v1987_v17 = vadd.f32 %v1979_v25, %v1934_v39  ;;  %v2005_v58 = vrot.slane %v1997_v3, 1  ;;  %v1988_v59 = vadd.f32 %v1980_v49, %v1935_v12  ;;  %v2006_v23 = vrot.slane %v1998_v44, 1  ;;  %v2552_v49 = vld [vmem:[%s3996_s5 + $0x23] ss:$0 sm:$0xff] }
 0x20b   : > { %v1989_v15 = vadd.f32 %v1981_v43, %v1936_v50  ;;  %v2020_v24 = vmul.f32 %v2542_v13, %v3130_v29  ;;  %v2011_v18 = vadd.f32 %v2003_v26, %v1947_v54  ;;  %v2012_v51 = vadd.f32 %v2004_v5, %v1948_v21  ;;  %v2548_v50 = vld [vmem:[%s3997_s6 + $0x22] ss:$0 sm:$0xff] }
 0x20c   : > { %v2013_v30 = vadd.f32 %v2005_v58, %v1949_v48  ;;  %v2021_v56 = vmul.f32 %v2542_v13, %v3152_v32  ;;  %v2014_v33 = vadd.f32 %v2006_v23, %v1950_v61  ;;  %v2022_v46 = vmul.f32 %v2542_v13, %v4206_v27 }
 0x20d   : > { %v2023_v10 = vmul.f32 %v2542_v13, %v3657_v1  ;;  %v2028_v34 = vrot.slane %v2020_v24, 1  ;;  %v2045_v38 = vmul.f32 %v2544_v14, %v3130_v29  ;;  %v2046_v47 = vmul.f32 %v2544_v14, %v3152_v32 }
 0x20e   : > { %v2029_v37 = vrot.slane %v2021_v56, 1  ;;  %v2047_v11 = vmul.f32 %v2544_v14, %v4206_v27  ;;  %v2030_v8 = vrot.slane %v2022_v46, 1  ;;  %v2048_v35 = vmul.f32 %v2544_v14, %v3657_v1 }
 0x20f   : > { %v2031_v53 = vrot.slane %v2023_v10, 1  ;;  %v2036_v2 = vadd.f32 %v2028_v34, %v1961_v40  ;;  %v2053_v39 = vrot.slane %v2045_v38, 2  ;;  %v2054_v12 = vrot.slane %v2046_v47, 2  ;;  %v2550_v40 = vld [vmem:[%s3995_s4 + $0x23] ss:$0 sm:$0xff] }
 0x210   : > { %v2037_v22 = vadd.f32 %v2029_v37, %v1962_v63  ;;  %v2055_v9 = vrot.slane %v2047_v11, 2  ;;  %v2038_v19 = vadd.f32 %v2030_v8, %v1963_v6  ;;  %v2056_v54 = vrot.slane %v2048_v35, 2  ;;  %v2556_v8 = vld [vmem:[%s3995_s4 + $0x24] ss:$0 sm:$0xff] }
 0x211   : > { %v2039_v45 = vadd.f32 %v2031_v53, %v1964_v42  ;;  %v2070_v21 = vmul.f32 %v2546_v57, %v3130_v29  ;;  %v2061_v60 = vadd.f32 %v2053_v39, %v1986_v55  ;;  %v2062_v62 = vadd.f32 %v2054_v12, %v1987_v17 }
 0x212   : > { %v2063_v20 = vadd.f32 %v2055_v9, %v1988_v59  ;;  %v2071_v31 = vmul.f32 %v2546_v57, %v3152_v32  ;;  %v2064_v48 = vadd.f32 %v2056_v54, %v1989_v15  ;;  %v2072_v61 = vmul.f32 %v2546_v57, %v4206_v27 }
 0x213   : > { %v2073_v36 = vmul.f32 %v2546_v57, %v3657_v1  ;;  %v2078_v41 = vrot.slane %v2070_v21, 2  ;;  %v2095_v6 = vmul.f32 %v2548_v50, %v3130_v29  ;;  %v2096_v0 = vmul.f32 %v2548_v50, %v3152_v32 }
 0x214   : > { %v2079_v63 = vrot.slane %v2071_v31, 2  ;;  %v2097_v42 = vmul.f32 %v2548_v50, %v4206_v27  ;;  %v2080_v7 = vrot.slane %v2072_v61, 2  ;;  %v2098_v13 = vmul.f32 %v2548_v50, %v3657_v1 }
 0x215   : > { %v2081_v52 = vrot.slane %v2073_v36, 2  ;;  %v2086_v4 = vadd.f32 %v2078_v41, %v2011_v18  ;;  %v2103_v28 = vrot.slane %v2095_v6, 2  ;;  %v2104_v16 = vrot.slane %v2096_v0, 2  ;;  %v2554_v18 = vld [vmem:[%s3997_s6 + $0x23] ss:$0 sm:$0xff] }
 0x216   : > { %v2087_v25 = vadd.f32 %v2079_v63, %v2012_v51  ;;  %v2105_v3 = vrot.slane %v2097_v42, 2  ;;  %v2088_v43 = vadd.f32 %v2080_v7, %v2013_v30  ;;  %v2106_v44 = vrot.slane %v2098_v13, 2  ;;  %v2560_v7 = vld [vmem:[%s3997_s6 + $0x24] ss:$0 sm:$0xff] }
 0x217   : > { %v2089_v55 = vadd.f32 %v2081_v52, %v2014_v33  ;;  %v2120_v17 = vmul.f32 %v2550_v40, %v3130_v29  ;;  %v2111_v26 = vadd.f32 %v2103_v28, %v2036_v2  ;;  %v2112_v5 = vadd.f32 %v2104_v16, %v2037_v22 }
 0x218   : > { %v2113_v58 = vadd.f32 %v2105_v3, %v2038_v19  ;;  %v2121_v14 = vmul.f32 %v2550_v40, %v3152_v32  ;;  %v2114_v59 = vadd.f32 %v2106_v44, %v2039_v45  ;;  %v2122_v15 = vmul.f32 %v2550_v40, %v4206_v27 }
 0x219   : > { %v2123_v23 = vmul.f32 %v2550_v40, %v3657_v1  ;;  %v2128_v24 = vrot.slane %v2120_v17, 3  ;;  %v2145_v30 = vmul.f32 %v2552_v49, %v3130_v29  ;;  %v2146_v56 = vmul.f32 %v2552_v49, %v3152_v32 }
 0x21a   : > { %v2129_v51 = vrot.slane %v2121_v14, 3  ;;  %v2147_v33 = vmul.f32 %v2552_v49, %v4206_v27  ;;  %v2130_v46 = vrot.slane %v2122_v15, 3  ;;  %v2148_v57 = vmul.f32 %v2552_v49, %v3657_v1 }
 0x21b   : > { %v2131_v10 = vrot.slane %v2123_v23, 3  ;;  %v2136_v34 = vadd.f32 %v2128_v24, %v2061_v60  ;;  %v2153_v38 = vrot.slane %v2145_v30, 3  ;;  %v2154_v47 = vrot.slane %v2146_v56, 3  ;;  %v2558_v60 = vld [vmem:[%s3996_s5 + $0x24] ss:$0 sm:$0xff] }
 0x21c   : > { %v2137_v37 = vadd.f32 %v2129_v51, %v2062_v62  ;;  %v2155_v11 = vrot.slane %v2147_v33, 3  ;;  %v2138_v53 = vadd.f32 %v2130_v46, %v2063_v20  ;;  %v2156_v35 = vrot.slane %v2148_v57, 3 }
 0x21d   : > { %v2139_v2 = vadd.f32 %v2131_v10, %v2064_v48  ;;  %v2170_v22 = vmul.f32 %v2554_v18, %v3130_v29  ;;  %v2161_v39 = vadd.f32 %v2153_v38, %v2086_v4  ;;  %v2162_v12 = vadd.f32 %v2154_v47, %v2087_v25 }
 0x21e   : > { %v2163_v9 = vadd.f32 %v2155_v11, %v2088_v43  ;;  %v2171_v50 = vmul.f32 %v2554_v18, %v3152_v32  ;;  %v2164_v19 = vadd.f32 %v2156_v35, %v2089_v55  ;;  %v2172_v45 = vmul.f32 %v2554_v18, %v4206_v27 }
 0x21f   : > { %v2173_v54 = vmul.f32 %v2554_v18, %v3657_v1  ;;  %v2178_v21 = vrot.slane %v2170_v22, 3  ;;  %v2195_v20 = vmul.f32 %v2556_v8, %v3130_v29  ;;  %v2196_v31 = vmul.f32 %v2556_v8, %v3152_v32 }
 0x220   : > { %v2179_v62 = vrot.slane %v2171_v50, 3  ;;  %v2197_v48 = vmul.f32 %v2556_v8, %v4206_v27  ;;  %v2180_v61 = vrot.slane %v2172_v45, 3  ;;  %v2198_v40 = vmul.f32 %v2556_v8, %v3657_v1 }
 0x221   : > { %v2181_v36 = vrot.slane %v2173_v54, 3  ;;  %v2186_v41 = vadd.f32 %v2178_v21, %v2111_v26  ;;  %v2203_v6 = vrot.slane %v2195_v20, 4  ;;  %v2204_v0 = vrot.slane %v2196_v31, 4 }
 0x222   : > { %v2187_v63 = vadd.f32 %v2179_v62, %v2112_v5  ;;  %v2205_v42 = vrot.slane %v2197_v48, 4  ;;  %v2188_v52 = vadd.f32 %v2180_v61, %v2113_v58  ;;  %v2206_v13 = vrot.slane %v2198_v40, 4 }
 0x223   : > { %v2189_v4 = vadd.f32 %v2181_v36, %v2114_v59  ;;  %v2220_v25 = vmul.f32 %v2558_v60, %v3130_v29  ;;  %v2211_v28 = vadd.f32 %v2203_v6, %v2136_v34  ;;  %v2212_v16 = vadd.f32 %v2204_v0, %v2137_v37 }
 0x224   : > { %v2213_v3 = vadd.f32 %v2205_v42, %v2138_v53  ;;  %v2221_v49 = vmul.f32 %v2558_v60, %v3152_v32  ;;  %v2214_v43 = vadd.f32 %v2206_v13, %v2139_v2  ;;  %v2222_v55 = vmul.f32 %v2558_v60, %v4206_v27 }
 0x225   : > { %v2223_v44 = vmul.f32 %v2558_v60, %v3657_v1  ;;  %v2228_v17 = vrot.slane %v2220_v25, 4  ;;  %v2245_v5 = vmul.f32 %v2560_v7, %v3130_v29  ;;  %v2246_v58 = vmul.f32 %v2560_v7, %v3152_v32 }
 0x226   : > { %v2229_v26 = vrot.slane %v2221_v49, 4  ;;  %v2247_v14 = vmul.f32 %v2560_v7, %v4206_v27  ;;  %v2230_v59 = vrot.slane %v2222_v55, 4  ;;  %v2248_v24 = vmul.f32 %v2560_v7, %v3657_v1 }
 0x227   : > { %v2231_v15 = vrot.slane %v2223_v44, 4  ;;  %v2236_v23 = vadd.f32 %v2228_v17, %v2161_v39  ;;  %v2253_v51 = vrot.slane %v2245_v5, 4  ;;  %v2254_v30 = vrot.slane %v2246_v58, 4 }
 0x228   : > { %v2237_v18 = vadd.f32 %v2229_v26, %v2162_v12  ;;  %v2255_v56 = vrot.slane %v2247_v14, 4  ;;  %v2238_v29 = vadd.f32 %v2230_v59, %v2163_v9  ;;  %v2256_v46 = vrot.slane %v2248_v24, 4 }
 0x229   : > { %v2239_v33 = vadd.f32 %v2231_v15, %v2164_v19  ;;  %v2265_v32 = vmul.f32 0.999995, %v2211_v28  ;;  %v2261_v27 = vadd.f32 %v2253_v51, %v2186_v41  ;;  %v2262_v10 = vadd.f32 %v2254_v30, %v2187_v63 }
 0x22a   : > { %v2263_v1 = vadd.f32 %v2255_v56, %v2188_v52  ;;  %v2266_v34 = vmul.f32 0.999995, %v2212_v16  ;;  %v2264_v57 = vadd.f32 %v2256_v46, %v2189_v4  ;;  %v2267_v37 = vmul.f32 0.999995, %v2213_v3 }
 0x22b   : > { %v2268_v38 = vmul.f32 0.999995, %v2214_v43  ;;  %2270 = vst.msk [vmem:[%s347_s20] sm:$0xf] %vm2269_vm1, %v2265_v32  ;;  %v2274_v47 = vmul.f32 0.999995, %v2236_v23 }
 0x22c   : > { %2271 = vst.msk [vmem:[%s347_s20 + $0x4] sm:$0xf] %vm2269_vm1, %v2266_v34  ;;  %v2275_v11 = vmul.f32 0.999995, %v2237_v18  ;;  %v2276_v8 = vmul.f32 0.999995, %v2238_v29 }
 0x22d   : > { %v2277_v53 = vmul.f32 0.999995, %v2239_v33  ;;  %2272 = vst.msk [vmem:[%s347_s20 + $0x8] sm:$0xf] %vm2269_vm1, %v2267_v37  ;;  %2273 = vst.msk [vmem:[%s347_s20 + $0xc] sm:$0xf] %vm2269_vm1, %v2268_v38 }
 0x22e   : > { %2278 = vst.msk [vmem:[%s352_s23] sm:$0xf] %vm2269_vm1, %v2274_v47  ;;  %v2282_v2 = vmul.f32 0.999995, %v2261_v27  ;;  %v2283_v35 = vmul.f32 0.999995, %v2262_v10 }
 0x22f   : > { %v2284_v22 = vmul.f32 0.999995, %v2263_v1  ;;  %2279 = vst.msk [vmem:[%s352_s23 + $0x4] sm:$0xf] %vm2269_vm1, %v2275_v11  ;;  %2280 = vst.msk [vmem:[%s352_s23 + $0x8] sm:$0xf] %vm2269_vm1, %v2276_v8 }
 0x230   : > { %2281 = vst.msk [vmem:[%s352_s23 + $0xc] sm:$0xf] %vm2269_vm1, %v2277_v53  ;;  %v2285_v39 = vmul.f32 0.999995, %v2264_v57  ;;  %2286 = vst.msk [vmem:[%s357_s26] sm:$0xf] %vm2269_vm1, %v2282_v2 }
 0x231   : > { %2287 = vst.msk [vmem:[%s357_s26 + $0x4] sm:$0xf] %vm2269_vm1, %v2283_v35  ;;  %2288 = vst.msk [vmem:[%s357_s26 + $0x8] sm:$0xf] %vm2269_vm1, %v2284_v22 }
 0x232   : > { %2289 = vst.msk [vmem:[%s357_s26 + $0xc] sm:$0xf] %vm2269_vm1, %v2285_v39 }
 0x233 PF: > { %s20_s30 = sadd.s32 1, %s2602_s30  }
 0x234   : > { %p17_p4 = scmp.ge.s32.totalorder %s20_s30, 4  }
 0x236   :  { %19 = sbr.rel (!%p17_p4) target bundleno = 1 (0x1), region = 114 }

// kernel: vit_forward.22
= control target key start
LH: loop header
LB: loop body
LE: loop exit
PB: predicated region body
PF: predicated region fallthrough
CT: control target
= control target key end

     0   :  { %vm25_vm0 = vcmask 523264   ;;  %s337_s0 = inlined_call_operand.vmem [shape: f32[32,64], index: 0, kind: input, shape index: {}]   ;;  %s338_s1 = inlined_call_operand.vmem [shape: bf16[64,64], index: 1, kind: input, shape index: {}]   ;;  %s339_s3 = inlined_call_operand.vmem [shape: f32[1,64], index: 3, kind: input, shape index: {}]   ;;  %s340_s4 = inlined_call_operand.vmem [shape: f32[1,64], index: 4, kind: input, shape index: {}]   ;;  %s341_s2 = inlined_call_operand.vmem [shape: f32[1,64], index: 2, kind: input, shape index: {}]   ;;  %s342_s5 = inlined_call_operand.vmem [shape: f32[32,64], index: 5, kind: output, shape index: {}]  }
   0x1   :  { %v21_v0 = vld [vmem:[%s337_s0] sm:$0xff]  ;;  %v23_v1 = vld [vmem:[%s337_s0 + $0x10] sm:$0xff]  ;;  %v22_v2 = vld [vmem:[%s337_s0 + $0x8] sm:$0xff] }
   0x2   :  { %v26_v3 = vsel %vm25_vm0, %v21_v0, 0.0  ;;  %v32_v4 = vsel %vm25_vm0, %v23_v1, 0.0  ;;  %v24_v5 = vld [vmem:[%s337_s0 + $0x18] sm:$0xff]  ;;  %v29_v6 = vsel %vm25_vm0, %v22_v2, 0.0  ;;  %v237_v29 = vld [vmem:[%s338_s1 + $0x10] sm:$0xff]   ;;  %v238_v30 = vld [vmem:[%s338_s1 + $0x8] sm:$0xff]  }
   0x3   :  { %27 = vadd.xlane.f32.xlu0 %v26_v3  ;;  %33 = vadd.xlane.f32.xlu1 %v32_v4  ;;  %v35_v7 = vsel %vm25_vm0, %v24_v5, 0.0  ;;  %v236_v28 = vld [vmem:[%s338_s1 + $0x18] sm:$0xff]   ;;  %v239_v31 = vld [vmem:[%s338_s1] sm:$0xff]  }
   0x4   :  { %224 = vmatprep.subr.bf16.mxu0 %v236_v28  ;;  %v209_v46 = vld [vmem:[%s339_s3] ss:$0 sm:$0xff] }
   0x5   :  { %225 = vmatpush3.bf16.msra.mxu0 %v236_v28  ;;  %v210_v51 = vld [vmem:[%s340_s4] ss:$0 sm:$0xff] }
   0x6   :  { %226 = vmatprep.subr.bf16.mxu0 %v237_v29 }
   0x7   :  { %30 = vadd.xlane.f32.xlu0 %v29_v6  ;;  %36 = vadd.xlane.f32.xlu1 %v35_v7 }
   0x9   :  { %227 = vmatpush3.bf16.msra.mxu0 %v237_v29 }
   0xa   :  { %228 = vmatprep.subr.bf16.mxu0 %v238_v30 }
   0xd   :  { %229 = vmatpush3.bf16.msra.mxu0 %v238_v30 }
   0xe   :  { %230 = vmatprep.subr.bf16.mxu0 %v239_v31 }
  0x11   :  { %231 = vmatpush3.bf16.msra.mxu0 %v239_v31 }
  0x8c   :  { %v28_v8 = vpop.xlane.xlu0 %27  ;;  %v34_v9 = vpop.xlane.xlu1 %33 }
  0x8d   :  { %v39_v10 = vmul.f32 0.015625, %v28_v8  ;;  %v41_v11 = vmul.f32 0.015625, %v34_v9 }
  0x8f   :  { %v43_v12 = vsub.f32 %v21_v0, %v39_v10  ;;  %v45_v13 = vsub.f32 %v23_v1, %v41_v11  ;;  %v211_v0 = vld [vmem:[%s341_s2] ss:$0 sm:$0xff] }
  0x90   :  { %v31_v14 = vpop.xlane.xlu0 %30  ;;  %v37_v15 = vpop.xlane.xlu1 %36 }
  0x91   :  { %v40_v16 = vmul.f32 0.015625, %v31_v14  ;;  %v42_v17 = vmul.f32 0.015625, %v37_v15  ;;  %v47_v18 = vmul.f32 %v43_v12, %v43_v12  ;;  %v49_v19 = vmul.f32 %v45_v13, %v45_v13 }
  0x93   :  { %v44_v20 = vsub.f32 %v22_v2, %v40_v16  ;;  %v46_v21 = vsub.f32 %v24_v5, %v42_v17  ;;  %v51_v22 = vsel %vm25_vm0, %v47_v18, 0.0  ;;  %v57_v23 = vsel %vm25_vm0, %v49_v19, 0.0 }
  0x94   :  { %52 = vadd.xlane.f32.xlu0 %v51_v22 }
  0x95   :  { %v48_v24 = vmul.f32 %v44_v20, %v44_v20  ;;  %v50_v25 = vmul.f32 %v46_v21, %v46_v21 }
  0x97   :  { %v54_v26 = vsel %vm25_vm0, %v48_v24, 0.0  ;;  %v60_v27 = vsel %vm25_vm0, %v50_v25, 0.0 }
  0x98   :  { %58 = vadd.xlane.f32.xlu0 %v57_v23  ;;  %55 = vadd.xlane.f32.xlu1 %v54_v26 }
  0x9c   :  { %61 = vadd.xlane.f32.xlu1 %v60_v27 }
 0x11d   :  { %v53_v32 = vpop.xlane.xlu0 %52 }
 0x11e   :  { %v63_v33 = vmul.f32 0.015625, %v53_v32 }
 0x120   :  { %v67_v34 = vadd.f32 1e-05, %v63_v33 }
 0x121   :  { %v56_v35 = vpop.xlane.xlu1 %55  ;;  %v59_v36 = vpop.xlane.xlu0 %58 }
 0x122   :  { %240 = vrsqrt.f32 %v67_v34  ;;  %v64_v37 = vmul.f32 0.015625, %v56_v35  ;;  %v65_v38 = vmul.f32 0.015625, %v59_v36 }
 0x124   :  { %v68_v39 = vadd.f32 1e-05, %v64_v37  ;;  %v69_v40 = vadd.f32 1e-05, %v65_v38 }
 0x125   :  { %v62_v41 = vpop.xlane.xlu1 %61 }
 0x126   :  { %242 = vrsqrt.f32 %v68_v39  ;;  %v66_v42 = vmul.f32 0.015625, %v62_v41 }
 0x127   :  { %244 = vrsqrt.f32 %v69_v40 }
 0x128   :  { %v70_v43 = vadd.f32 1e-05, %v66_v42 }
 0x12a   :  { %246 = vrsqrt.f32 %v70_v43 }
 0x12f   :  { %v241_v44 = vpop.eup %240 }
 0x130   :  { %v75_v45 = vmul.f32 %v241_v44, %v43_v12 }
 0x132   :  { %v86_v50 = vmul.f32 %v209_v46, %v75_v45 }
 0x133   :  { %v243_v47 = vpop.eup %242 }
 0x134   :  { %v245_v48 = vpop.eup %244  ;;  %v76_v49 = vmul.f32 %v243_v47, %v44_v20  ;;  %v97_v55 = vadd.f32 %v210_v51, %v86_v50 }
 0x135   :  { %v77_v52 = vmul.f32 %v245_v48, %v45_v13 }
 0x136   :  { %v87_v53 = vmul.f32 %v209_v46, %v76_v49 }
 0x137   :  { %v247_v54 = vpop.eup %246  ;;  %v88_v58 = vmul.f32 %v209_v46, %v77_v52 }
 0x138   :  { %v98_v56 = vadd.f32 %v210_v51, %v87_v53  ;;  %v78_v57 = vmul.f32 %v247_v54, %v46_v21 }
 0x139   :  { %v99_v61 = vadd.f32 %v210_v51, %v88_v58 }
 0x13a   :  { %v101_v59 = vpack.c.bf16 %v98_v56, %v97_v55  ;;  %v89_v60 = vmul.f32 %v209_v46, %v78_v57 }
 0x13c   :  { %232 = vmatprep.mubr.msk.bf16.mxu0 %vm25_vm0, %v101_v59  ;;  %v100_v62 = vadd.f32 %v210_v51, %v89_v60 }
 0x13e   :  { %v102_v63 = vpack.c.bf16 %v100_v62, %v99_v61 }
 0x140   :  { %233 = vmatmul.mubr.msk.bf16.vlgmr.msra.gmra.mxu0 %vm25_vm0, %v102_v63 }
 0x200   :  { %v234_v1 = vpop.f32.mrf.mxu0 }
 0x201   :  { %v191_v2 = vadd.f32 %v234_v1, %v211_v0 }
 0x202   :  { %v182_v3 = vpop.f32.mrf.mxu0 }
 0x203   :  { %v199_v4 = vmax.f32 %v191_v2, 0.0  ;;  %v183_v5 = vadd.f32 %v211_v0, %v182_v3 }
 0x204   :  { %v235_v6 = vpop.f32.mrf.mxu0 }
 0x205   :  { %203 = vst.msk [vmem:[%s342_s5 + $0x10] sm:$0xff] %vm25_vm0, %v199_v4  ;;  %v197_v7 = vmax.f32 %v183_v5, 0.0  ;;  %v194_v8 = vadd.f32 %v235_v6, %v211_v0 }
 0x206   :  { %v185_v9 = vpop.f32.mrf.mxu0 }
 0x207   :  { %201 = vst.msk [vmem:[%s342_s5] sm:$0xff] %vm25_vm0, %v197_v7  ;;  %v200_v10 = vmax.f32 %v194_v8, 0.0  ;;  %v186_v11 = vadd.f32 %v211_v0, %v185_v9 }
 0x209   :  { %204 = vst.msk [vmem:[%s342_s5 + $0x18] sm:$0xff] %vm25_vm0, %v200_v10  ;;  %v198_v12 = vmax.f32 %v186_v11, 0.0 }
 0x20b   :  { %202 = vst.msk [vmem:[%s342_s5 + $0x8] sm:$0xff] %vm25_vm0, %v198_v12 }

// kernel: vit_forward.23
= control target key start
LH: loop header
LB: loop body
LE: loop exit
PB: predicated region body
PF: predicated region fallthrough
CT: control target
= control target key end

     0   :  { %vm74_vm0 = vcmask 523264   ;;  %s240_s1 = inlined_call_operand.vmem [shape: bf16[64,64], index: 1, kind: input, shape index: {}]   ;;  %s241_s3 = inlined_call_operand.vmem [shape: f32[1,64], index: 3, kind: input, shape index: {}]   ;;  %s242_s4 = inlined_call_operand.vmem [shape: f32[1,64], index: 4, kind: input, shape index: {}]   ;;  %s243_s0 = inlined_call_operand.vmem [shape: bf16[32,64], index: 0, kind: input, shape index: {}]   ;;  %s244_s2 = inlined_call_operand.vmem [shape: f32[1,64], index: 2, kind: input, shape index: {}]   ;;  %s245_s5 = inlined_call_operand.vmem [shape: f32[32,64], index: 5, kind: output, shape index: {}]  }
   0x1   :  { %v165_v0 = vld [vmem:[%s240_s1 + $0x18] sm:$0xff]   ;;  %v166_v1 = vld [vmem:[%s240_s1 + $0x10] sm:$0xff]   ;;  %v167_v2 = vld [vmem:[%s240_s1 + $0x8] sm:$0xff]  }
   0x2   :  { %153 = vmatprep.subr.bf16.mxu0 %v165_v0  ;;  %v169_v3 = vld [vmem:[%s243_s0] sm:$0xff]   ;;  %v170_v5 = vld [vmem:[%s243_s0 + $0x8] sm:$0xff]  }
   0x3   :  { %154 = vmatpush3.bf16.msra.mxu0 %v165_v0  ;;  %161 = vmatprep.mubr.msk.bf16.mxu0 %vm74_vm0, %v169_v3  ;;  %v168_v4 = vld [vmem:[%s240_s1] sm:$0xff]  }
   0x4   :  { %155 = vmatprep.subr.bf16.mxu0 %v166_v1  ;;  %v138_v6 = vld [vmem:[%s244_s2] ss:$0 sm:$0xff] }
   0x7   :  { %156 = vmatpush3.bf16.msra.mxu0 %v166_v1 }
   0x8   :  { %157 = vmatprep.subr.bf16.mxu0 %v167_v2 }
   0xb   :  { %158 = vmatpush3.bf16.msra.mxu0 %v167_v2 }
   0xc   :  { %159 = vmatprep.subr.bf16.mxu0 %v168_v4 }
   0xf   :  { %160 = vmatpush3.bf16.msra.mxu0 %v168_v4 }
  0x12   :  { %162 = vmatmul.mubr.msk.bf16.vlgmr.msra.gmra.mxu0 %vm74_vm0, %v170_v5 }
  0xd2   :  { %v163_v7 = vpop.f32.mrf.mxu0 }
  0xd3   :  { %v124_v8 = vadd.f32 %v163_v7, %v138_v6 }
  0xd4   :  { %v115_v9 = vpop.f32.mrf.mxu0 }
  0xd5   :  { %132 = vst.msk [vmem:[%s245_s5 + $0x10] sm:$0xff] %vm74_vm0, %v124_v8  ;;  %v116_v10 = vadd.f32 %v138_v6, %v115_v9 }
  0xd6   :  { %v164_v11 = vpop.f32.mrf.mxu0 }
  0xd7   :  { %130 = vst.msk [vmem:[%s245_s5] sm:$0xff] %vm74_vm0, %v116_v10  ;;  %v127_v12 = vadd.f32 %v164_v11, %v138_v6 }
  0xd8   :  { %v118_v13 = vpop.f32.mrf.mxu0 }
  0xd9   :  { %133 = vst.msk [vmem:[%s245_s5 + $0x18] sm:$0xff] %vm74_vm0, %v127_v12  ;;  %v119_v14 = vadd.f32 %v138_v6, %v118_v13 }
  0xdb   :  { %131 = vst.msk [vmem:[%s245_s5 + $0x8] sm:$0xff] %vm74_vm0, %v119_v14 }

// kernel: vit_forward.21
= control target key start
LH: loop header
LB: loop body
LE: loop exit
PB: predicated region body
PF: predicated region fallthrough
CT: control target
= control target key end

     0   :  { %s2556_s12 = smov 0   ;;  %s3022_s0 = inlined_call_operand.vmem [shape: bf16[32,4,16], index: 0, kind: input, shape index: {}]   ;;  %s3023_s1 = inlined_call_operand.vmem [shape: bf16[32,16,8], index: 1, kind: input, shape index: {}]   ;;  %s3024_s2 = inlined_call_operand.vmem [shape: bf16[32,8,16], index: 2, kind: input, shape index: {}]   ;;  %s3025_s3 = inlined_call_operand.vmem [shape: f32[32,4,16], index: 3, kind: output, shape index: {}]  }
   0x1 LB: > { %s2115_s13 = sadd.s32 4294967295, %s2532_s12   ;;  %p2119_p0 = scmp.ge.s32.totalorder %s2532_s12, 1  ;;  %s2532_s12 = sphi %s2556_s12, %s13_s12  }
   0x2   : > { %p161_p1 = scmp.lt.s32.totalorder %s2532_s12, 3 }
   0x4   : > { %p162_p2 = pnand %p2119_p0, %p161_p1 }
   0x5   : > { %s2120_s14 = sshll.u32 (!%p162_p2), %s2115_s13, 4 }
   0x6   : > { %165 = sbr.rel (%p162_p2) target bundleno = 786 (0x312), region = 32  ;;  %p197_p3 = scmp.lt.s32.totalorder (!%p162_p2), %s2120_s14, 31 }
   0xb   : > { %v2534_v0 = vmov 0.0   ;;  %vm2535_vm0 = vmmov 0   ;;  %s3027_s14 = smov (!%p197_p3, %s2120_s14), 31  ;;  %vm276_vm1 = vcmask 130048   ;;  %vm1071_vm2 = vcmask 60416  }
   0xc   : > { %2244 = vmatprep.subr.bf16.mxu0 %v2534_v0  ;;  %2250 = vmatprep.subr.bf16.mxu1 %v2534_v0  ;;  %s2179_s15 = sshll.u32 %s3027_s14, 3  ;;  %s2121_s16 = sshll.u32 %s3027_s14, 1  ;;  %vm1284_vm3 = vcmask 1043456   ;;  %vm1280_vm4 = vcmask 64512   ;;  %vm2018_vm5 = vcmask 125952  }
   0xd   : > { %2246 = vmatprep.mubr.msk.bf16.mxu0 %vm2535_vm0, %v2534_v0  ;;  %2252 = vmatprep.mubr.msk.bf16.mxu1 %vm2535_vm0, %v2534_v0  ;;  %s2577_s19 = scalar_lea.vmem %s3023_s1, %s2179_s15  ;;  %s2582_s22 = scalar_lea.vmem %s3022_s0, %s2121_s16 }
   0xe   : > { %v2446_v1 = vld [vmem:[%s2577_s19] sm:$0xff]   ;;  %v2447_v2 = vld [vmem:[%s2577_s19 + $0x8] sm:$0xff]   ;;  %v2448_v5 = vld [vmem:[%s2577_s19 + $0x10] sm:$0xff]   ;;  %s2126_s23 = sshll.u32 %s3027_s14, 2 }
   0xf   : > { %2245 = vmatpush3.bf16.msra.mxu0 %v2446_v1  ;;  %v222_v3 = vld [vmem:[%s2582_s22] sm:$0x3]  ;;  %v223_v4 = vld [vmem:[%s2582_s22 + $0x2] sm:$0x3]  ;;  %2251 = vmatpush3.bf16.msra.mxu1 %v2447_v2  ;;  %v2449_v6 = vld [vmem:[%s2577_s19 + $0x18] sm:$0xff]   ;;  %s2792_s26 = scalar_lea.vmem %s3024_s2, %s2126_s23  ;;  %s2985_s29 = scalar_lea.vmem %s3025_s3, %s2126_s23 }
  0x10   : > { %2256 = vmatprep.subr.bf16.mxu0 %v2534_v0  ;;  %2262 = vmatprep.subr.bf16.mxu1 %v2534_v0  ;;  %v224_v7 = vld [vmem:[%s2582_s22 + $0x4] sm:$0x3]  ;;  %v225_v8 = vld [vmem:[%s2582_s22 + $0x6] sm:$0x3]  ;;  %v2451_v10 = vld [vmem:[%s2577_s19 + $0x28] sm:$0xff]  }
  0x11   : > { %v2450_v9 = vld [vmem:[%s2577_s19 + $0x20] sm:$0xff]   ;;  %v226_v11 = vld [vmem:[%s2582_s22 + $0x8] sm:$0x3]  ;;  %v227_v12 = vld [vmem:[%s2582_s22 + $0xa] sm:$0x3] }
  0x12   : > { %2247 = vmatmul.mubr.msk.bf16.vlgmr.msra.gmra.mxu0 %vm276_vm1, %v222_v3  ;;  %2253 = vmatmul.mubr.msk.bf16.vlgmr.msra.gmra.mxu1 %vm276_vm1, %v223_v4  ;;  %v2452_v13 = vld [vmem:[%s2577_s19 + $0x30] sm:$0xff]   ;;  %v2453_v14 = vld [vmem:[%s2577_s19 + $0x38] sm:$0xff]   ;;  %v228_v15 = vld [vmem:[%s2582_s22 + $0xc] sm:$0x3] }
  0x13   : > { %2257 = vmatpush3.bf16.msra.mxu0 %v2448_v5  ;;  %2263 = vmatpush3.bf16.msra.mxu1 %v2449_v6  ;;  %v2454_v16 = vld [vmem:[%s2577_s19 + $0x40] sm:$0xff]   ;;  %v229_v17 = vld [vmem:[%s2582_s22 + $0xe] sm:$0x3]  ;;  %v230_v19 = vld [vmem:[%s2582_s22 + $0x10] sm:$0x3] }
  0x14   : > { %2258 = vmatprep.mubr.msk.bf16.mxu0 %vm2535_vm0, %v2534_v0  ;;  %2264 = vmatprep.mubr.msk.bf16.mxu1 %vm2535_vm0, %v2534_v0  ;;  %v2455_v18 = vld [vmem:[%s2577_s19 + $0x48] sm:$0xff]   ;;  %v2456_v20 = vld [vmem:[%s2577_s19 + $0x50] sm:$0xff]   ;;  %v2457_v22 = vld [vmem:[%s2577_s19 + $0x58] sm:$0xff]  }
  0x15   : > { %2268 = vmatprep.subr.bf16.mxu0 %v2534_v0  ;;  %2274 = vmatprep.subr.bf16.mxu1 %v2534_v0  ;;  %v231_v21 = vld [vmem:[%s2582_s22 + $0x12] sm:$0x3]  ;;  %v232_v23 = vld [vmem:[%s2582_s22 + $0x14] sm:$0x3]  ;;  %v2458_v24 = vld [vmem:[%s2577_s19 + $0x60] sm:$0xff]  }
  0x16   : > { %v233_v25 = vld [vmem:[%s2582_s22 + $0x16] sm:$0x3]  ;;  %v2459_v26 = vld [vmem:[%s2577_s19 + $0x68] sm:$0xff]   ;;  %v234_v27 = vld [vmem:[%s2582_s22 + $0x18] sm:$0x3] }
  0x17   : > { %v2460_v28 = vld [vmem:[%s2577_s19 + $0x70] sm:$0xff]   ;;  %v235_v29 = vld [vmem:[%s2582_s22 + $0x1a] sm:$0x3]  ;;  %v236_v31 = vld [vmem:[%s2582_s22 + $0x1c] sm:$0x3] }
  0x18   : > { %v2461_v30 = vld [vmem:[%s2577_s19 + $0x78] sm:$0xff]  }
  0x19   : > { %v237_v32 = vld [vmem:[%s2582_s22 + $0x1e] sm:$0x3] }
  0x1a   : > { %2259 = vmatmul.mubr.msk.bf16.vlgmr.msra.gmra.mxu0 %vm276_vm1, %v224_v7  ;;  %2265 = vmatmul.mubr.msk.bf16.vlgmr.msra.gmra.mxu1 %vm276_vm1, %v225_v8 }
  0x1b   : > { %2269 = vmatpush3.bf16.msra.mxu0 %v2450_v9  ;;  %2275 = vmatpush3.bf16.msra.mxu1 %v2451_v10 }
  0x1c   : > { %2270 = vmatprep.mubr.msk.bf16.mxu0 %vm2535_vm0, %v2534_v0  ;;  %2276 = vmatprep.mubr.msk.bf16.mxu1 %vm2535_vm0, %v2534_v0 }
  0x1d   : > { %2280 = vmatprep.subr.bf16.mxu0 %v2534_v0  ;;  %2286 = vmatprep.subr.bf16.mxu1 %v2534_v0 }
  0x22   : > { %2271 = vmatmul.mubr.msk.bf16.vlgmr.msra.gmra.mxu0 %vm276_vm1, %v226_v11  ;;  %2277 = vmatmul.mubr.msk.bf16.vlgmr.msra.gmra.mxu1 %vm276_vm1, %v227_v12 }
  0x23   : > { %2281 = vmatpush3.bf16.msra.mxu0 %v2452_v13  ;;  %2287 = vmatpush3.bf16.msra.mxu1 %v2453_v14 }
  0x24   : > { %2282 = vmatprep.mubr.msk.bf16.mxu0 %vm2535_vm0, %v2534_v0  ;;  %2288 = vmatprep.mubr.msk.bf16.mxu1 %vm2535_vm0, %v2534_v0 }
  0x25   : > { %2292 = vmatprep.subr.bf16.mxu0 %v2534_v0  ;;  %2298 = vmatprep.subr.bf16.mxu1 %v2534_v0 }
  0x2a   : > { %2283 = vmatmul.mubr.msk.bf16.vlgmr.msra.gmra.mxu0 %vm276_vm1, %v228_v15  ;;  %2289 = vmatmul.mubr.msk.bf16.vlgmr.msra.gmra.mxu1 %vm276_vm1, %v229_v17 }
  0x2b   : > { %2293 = vmatpush3.bf16.msra.mxu0 %v2454_v16  ;;  %2299 = vmatpush3.bf16.msra.mxu1 %v2455_v18 }
  0x2c   : > { %2294 = vmatprep.mubr.msk.bf16.mxu0 %vm2535_vm0, %v2534_v0  ;;  %2300 = vmatprep.mubr.msk.bf16.mxu1 %vm2535_vm0, %v2534_v0 }
  0x2d   : > { %2304 = vmatprep.subr.bf16.mxu0 %v2534_v0  ;;  %2310 = vmatprep.subr.bf16.mxu1 %v2534_v0 }
  0x32   : > { %2295 = vmatmul.mubr.msk.bf16.vlgmr.msra.gmra.mxu0 %vm276_vm1, %v230_v19  ;;  %2301 = vmatmul.mubr.msk.bf16.vlgmr.msra.gmra.mxu1 %vm276_vm1, %v231_v21 }
  0x33   : > { %2305 = vmatpush3.bf16.msra.mxu0 %v2456_v20  ;;  %2311 = vmatpush3.bf16.msra.mxu1 %v2457_v22 }
  0x34   : > { %2306 = vmatprep.mubr.msk.bf16.mxu0 %vm2535_vm0, %v2534_v0  ;;  %2312 = vmatprep.mubr.msk.bf16.mxu1 %vm2535_vm0, %v2534_v0 }
  0x35   : > { %2316 = vmatprep.subr.bf16.mxu0 %v2534_v0  ;;  %2322 = vmatprep.subr.bf16.mxu1 %v2534_v0 }
  0x3a   : > { %2307 = vmatmul.mubr.msk.bf16.vlgmr.msra.gmra.mxu0 %vm276_vm1, %v232_v23  ;;  %2313 = vmatmul.mubr.msk.bf16.vlgmr.msra.gmra.mxu1 %vm276_vm1, %v233_v25 }
  0x3b   : > { %2317 = vmatpush3.bf16.msra.mxu0 %v2458_v24  ;;  %2323 = vmatpush3.bf16.msra.mxu1 %v2459_v26 }
  0x3c   : > { %2318 = vmatprep.mubr.msk.bf16.mxu0 %vm2535_vm0, %v2534_v0  ;;  %2324 = vmatprep.mubr.msk.bf16.mxu1 %vm2535_vm0, %v2534_v0 }
  0x3d   : > { %2328 = vmatprep.subr.bf16.mxu0 %v2534_v0  ;;  %2334 = vmatprep.subr.bf16.mxu1 %v2534_v0 }
  0x42   : > { %2319 = vmatmul.mubr.msk.bf16.vlgmr.msra.gmra.mxu0 %vm276_vm1, %v234_v27  ;;  %2325 = vmatmul.mubr.msk.bf16.vlgmr.msra.gmra.mxu1 %vm276_vm1, %v235_v29 }
  0x43   : > { %2329 = vmatpush3.bf16.msra.mxu0 %v2460_v28  ;;  %2335 = vmatpush3.bf16.msra.mxu1 %v2461_v30 }
  0x44   : > { %2330 = vmatprep.mubr.msk.bf16.mxu0 %vm2535_vm0, %v2534_v0  ;;  %2336 = vmatprep.mubr.msk.bf16.mxu1 %vm2535_vm0, %v2534_v0 }
  0x45   : > { %2340 = vmatprep.subr.bf16.mxu0 %v2534_v0  ;;  %2346 = vmatprep.subr.bf16.mxu1 %v2534_v0 }
  0x4a   : > { %2331 = vmatmul.mubr.msk.bf16.vlgmr.msra.gmra.mxu0 %vm276_vm1, %v236_v31  ;;  %2337 = vmatmul.mubr.msk.bf16.vlgmr.msra.gmra.mxu1 %vm276_vm1, %v237_v32 }
  0x4b   : > { %2342 = vmatprep.mubr.msk.bf16.mxu0 %vm2535_vm0, %v2534_v0  ;;  %2348 = vmatprep.mubr.msk.bf16.mxu1 %vm2535_vm0, %v2534_v0 }
  0xd2   : > { %v314_v33 = vpop.f32.mrf.mxu0  ;;  %v363_v35 = vpop.f32.mrf.mxu1 }
  0xd3   : > { %v2680_v34 = vmul.f32 0.125, %v314_v33  ;;  %v2682_v36 = vmul.f32 0.125, %v363_v35 }
  0xd4   : > { %v2248_v37 = vpop.f32.mrf.mxu0  ;;  %v2254_v38 = vpop.f32.mrf.mxu1 }
  0xd5   : > { %v1072_v39 = vsel %vm1071_vm2, %v2680_v34, -inf  ;;  %v1075_v42 = vsel %vm1071_vm2, %v2682_v36, -inf }
  0xd6   : > { %1073 = vmax.xlane.f32.xlu0 %v1072_v39  ;;  %v317_v40 = vpop.f32.mrf.mxu0  ;;  %v366_v41 = vpop.f32.mrf.mxu1 }
  0xd8   : > { %v2249_v43 = vpop.f32.mrf.mxu0  ;;  %v2255_v44 = vpop.f32.mrf.mxu1 }
  0xda   : > { %1076 = vmax.xlane.f32.xlu0 %v1075_v42  ;;  %v412_v45 = vpop.f32.mrf.mxu0  ;;  %v461_v46 = vpop.f32.mrf.mxu1 }
  0xdb   : > { %v2688_v47 = vmul.f32 0.125, %v412_v45  ;;  %v2690_v48 = vmul.f32 0.125, %v461_v46 }
  0xdc   : > { %v2260_v49 = vpop.f32.mrf.mxu0  ;;  %v2266_v50 = vpop.f32.mrf.mxu1 }
  0xdd   : > { %v1078_v51 = vsel %vm1071_vm2, %v2688_v47, -inf  ;;  %v1081_v54 = vsel %vm1071_vm2, %v2690_v48, -inf }
  0xde   : > { %1079 = vmax.xlane.f32.xlu1 %v1078_v51  ;;  %v415_v52 = vpop.f32.mrf.mxu0  ;;  %v464_v53 = vpop.f32.mrf.mxu1 }
  0xe0   : > { %v2261_v55 = vpop.f32.mrf.mxu0  ;;  %v2267_v56 = vpop.f32.mrf.mxu1 }
  0xe2   : > { %1082 = vmax.xlane.f32.xlu1 %v1081_v54  ;;  %v510_v57 = vpop.f32.mrf.mxu0  ;;  %v559_v58 = vpop.f32.mrf.mxu1 }
  0xe3   : > { %v2696_v59 = vmul.f32 0.125, %v510_v57  ;;  %v2698_v60 = vmul.f32 0.125, %v559_v58 }
  0xe4   : > { %v2272_v61 = vpop.f32.mrf.mxu0  ;;  %v2278_v62 = vpop.f32.mrf.mxu1 }
  0xe5   : > { %v1084_v63 = vsel %vm1071_vm2, %v2696_v59, -inf  ;;  %v1087_v1 = vsel %vm1071_vm2, %v2698_v60, -inf }
  0xe6   : > { %1085 = vmax.xlane.f32.xlu0 %v1084_v63  ;;  %v513_v2 = vpop.f32.mrf.mxu0  ;;  %v562_v3 = vpop.f32.mrf.mxu1  ;;  %1088 = vmax.xlane.f32.xlu1 %v1087_v1 }
  0xe8   : > { %v2273_v4 = vpop.f32.mrf.mxu0  ;;  %v2279_v5 = vpop.f32.mrf.mxu1 }
  0xea   : > { %v608_v6 = vpop.f32.mrf.mxu0  ;;  %v657_v8 = vpop.f32.mrf.mxu1 }
  0xeb   : > { %v2704_v7 = vmul.f32 0.125, %v608_v6  ;;  %v2706_v9 = vmul.f32 0.125, %v657_v8 }
  0xec   : > { %v2284_v10 = vpop.f32.mrf.mxu0  ;;  %v2290_v11 = vpop.f32.mrf.mxu1 }
  0xed   : > { %v1090_v12 = vsel %vm1071_vm2, %v2704_v7, -inf  ;;  %v1093_v13 = vsel %vm1071_vm2, %v2706_v9, -inf }
  0xee   : > { %1091 = vmax.xlane.f32.xlu0 %v1090_v12  ;;  %v611_v14 = vpop.f32.mrf.mxu0  ;;  %v660_v15 = vpop.f32.mrf.mxu1  ;;  %1094 = vmax.xlane.f32.xlu1 %v1093_v13 }
  0xf0   : > { %v2285_v16 = vpop.f32.mrf.mxu0  ;;  %v2291_v17 = vpop.f32.mrf.mxu1 }
  0xf2   : > { %v706_v18 = vpop.f32.mrf.mxu0  ;;  %v755_v20 = vpop.f32.mrf.mxu1 }
  0xf3   : > { %v2712_v19 = vmul.f32 0.125, %v706_v18  ;;  %v2714_v21 = vmul.f32 0.125, %v755_v20 }
  0xf4   : > { %v2296_v22 = vpop.f32.mrf.mxu0  ;;  %v2302_v23 = vpop.f32.mrf.mxu1 }
  0xf5   : > { %v1096_v24 = vsel %vm1071_vm2, %v2712_v19, -inf  ;;  %v1099_v25 = vsel %vm1071_vm2, %v2714_v21, -inf }
  0xf6   : > { %1097 = vmax.xlane.f32.xlu0 %v1096_v24  ;;  %v709_v26 = vpop.f32.mrf.mxu0  ;;  %v758_v27 = vpop.f32.mrf.mxu1  ;;  %1100 = vmax.xlane.f32.xlu1 %v1099_v25 }
  0xf8   : > { %v2297_v28 = vpop.f32.mrf.mxu0  ;;  %v2303_v29 = vpop.f32.mrf.mxu1 }
  0xfa   : > { %v804_v30 = vpop.f32.mrf.mxu0  ;;  %v853_v32 = vpop.f32.mrf.mxu1 }
  0xfb   : > { %v2720_v31 = vmul.f32 0.125, %v804_v30  ;;  %v2722_v33 = vmul.f32 0.125, %v853_v32 }
  0xfc   : > { %v2308_v35 = vpop.f32.mrf.mxu0  ;;  %v2314_v37 = vpop.f32.mrf.mxu1 }
  0xfd   : > { %v1102_v38 = vsel %vm1071_vm2, %v2720_v31, -inf  ;;  %v1105_v39 = vsel %vm1071_vm2, %v2722_v33, -inf }
  0xfe   : > { %1103 = vmax.xlane.f32.xlu0 %v1102_v38  ;;  %v807_v40 = vpop.f32.mrf.mxu0  ;;  %v856_v41 = vpop.f32.mrf.mxu1  ;;  %1106 = vmax.xlane.f32.xlu1 %v1105_v39 }
 0x100   : > { %v2309_v42 = vpop.f32.mrf.mxu0  ;;  %v2315_v43 = vpop.f32.mrf.mxu1 }
 0x102   : > { %v902_v44 = vpop.f32.mrf.mxu0  ;;  %v951_v46 = vpop.f32.mrf.mxu1 }
 0x103   : > { %v2728_v45 = vmul.f32 0.125, %v902_v44  ;;  %v2730_v49 = vmul.f32 0.125, %v951_v46 }
 0x104   : > { %v2320_v50 = vpop.f32.mrf.mxu0  ;;  %v2326_v51 = vpop.f32.mrf.mxu1 }
 0x105   : > { %v1108_v52 = vsel %vm1071_vm2, %v2728_v45, -inf  ;;  %v1111_v53 = vsel %vm1071_vm2, %v2730_v49, -inf }
 0x106   : > { %1109 = vmax.xlane.f32.xlu0 %v1108_v52  ;;  %v905_v54 = vpop.f32.mrf.mxu0  ;;  %v954_v55 = vpop.f32.mrf.mxu1  ;;  %1112 = vmax.xlane.f32.xlu1 %v1111_v53 }
 0x108   : > { %v2321_v56 = vpop.f32.mrf.mxu0  ;;  %v2327_v57 = vpop.f32.mrf.mxu1 }
 0x10a   : > { %v1000_v58 = vpop.f32.mrf.mxu0  ;;  %v1049_v62 = vpop.f32.mrf.mxu1 }
 0x10b   : > { %v2736_v61 = vmul.f32 0.125, %v1000_v58  ;;  %v2738_v63 = vmul.f32 0.125, %v1049_v62 }
 0x10c   : > { %v2332_v1 = vpop.f32.mrf.mxu0  ;;  %v2338_v2 = vpop.f32.mrf.mxu1 }
 0x10d   : > { %v1114_v3 = vsel %vm1071_vm2, %v2736_v61, -inf  ;;  %v1117_v4 = vsel %vm1071_vm2, %v2738_v63, -inf  ;;  %v1264_v2 = vld [vmem:[%s2792_s26] sm:$0xf] }
 0x10e   : > { %1115 = vmax.xlane.f32.xlu0 %v1114_v3  ;;  %v1003_v5 = vpop.f32.mrf.mxu0  ;;  %v1052_v6 = vpop.f32.mrf.mxu1  ;;  %1118 = vmax.xlane.f32.xlu1 %v1117_v4  ;;  %v1286_v3 = vsel %vm1284_vm3, %v1264_v2, 0  ;;  %v1265_v4 = vld [vmem:[%s2792_s26 + $0x4] sm:$0xf] }
 0x10f   : > { %2341 = vmatpush3.bf16.msra.mxu0 %v1286_v3  ;;  %v1332_v5 = vsel %vm1284_vm3, %v1265_v4, 0  ;;  %v1278_v3 = vld [vmem:[%s2792_s26 + $0x38] sm:$0xf]  ;;  %v1279_v4 = vld [vmem:[%s2792_s26 + $0x3c] sm:$0xf] }
 0x110   : > { %v2333_v8 = vpop.f32.mrf.mxu0  ;;  %v2339_v10 = vpop.f32.mrf.mxu1  ;;  %2347 = vmatpush3.bf16.msra.mxu1 %v1332_v5  ;;  %2352 = vmatprep.subr.bf16.mxu0 %v2534_v0  ;;  %v2889_v5 = vsel %vm1284_vm3, %v1278_v3, 0 }
 0x111   : > { %2358 = vmatprep.subr.bf16.mxu1 %v2534_v0 }
 0x15f   : > { %v1074_v11 = vpop.xlane.xlu0 %1073 }
 0x160   : > { %v1120_v12 = vsub.f32 %v2680_v34, %v1074_v11 }
 0x162   : > { %v1136_v13 = vmul.f32 1.442695, %v1120_v12 }
 0x163   : > { %v1077_v14 = vpop.xlane.xlu0 %1076 }
 0x164   : > { %2462 = vpow2.f32 %v1136_v13  ;;  %v1121_v15 = vsub.f32 %v2682_v36, %v1077_v14 }
 0x166   : > { %v1138_v16 = vmul.f32 1.442695, %v1121_v15 }
 0x167   : > { %v1080_v17 = vpop.xlane.xlu1 %1079 }
 0x168   : > { %2464 = vpow2.f32 %v1138_v16  ;;  %v1122_v18 = vsub.f32 %v2688_v47, %v1080_v17 }
 0x16a   : > { %v1140_v20 = vmul.f32 1.442695, %v1122_v18  ;;  %v1267_v18 = vld [vmem:[%s2792_s26 + $0xc] sm:$0xf] }
 0x16b   : > { %v1083_v22 = vpop.xlane.xlu1 %1082 }
 0x16c   : > { %2466 = vpow2.f32 %v1140_v20  ;;  %v1123_v23 = vsub.f32 %v2690_v48, %v1083_v22  ;;  %v1266_v20 = vld [vmem:[%s2792_s26 + $0x8] sm:$0xf] }
 0x16e   : > { %v1142_v24 = vmul.f32 1.442695, %v1123_v23 }
 0x16f   : > { %v1086_v25 = vpop.xlane.xlu0 %1085  ;;  %v1089_v26 = vpop.xlane.xlu1 %1088 }
 0x170   : > { %2468 = vpow2.f32 %v1142_v24  ;;  %v1124_v34 = vsub.f32 %v2696_v59, %v1086_v25  ;;  %v1125_v36 = vsub.f32 %v2698_v60, %v1089_v26 }
 0x171   : > { %v2749_v27 = vpop.eup %2462 }
 0x172   : > { %v1144_v28 = vmul.f32 1.442695, %v1124_v34  ;;  %v1168_v29 = vsel %vm1071_vm2, %v2749_v27, 0.0  ;;  %v1146_v47 = vmul.f32 1.442695, %v1125_v36 }
 0x173   : > { %1169 = vadd.xlane.f32.xlu0 %v1168_v29 }
 0x174   : > { %2470 = vpow2.f32 %v1144_v28 }
 0x175   : > { %v2754_v30 = vpop.eup %2464  ;;  %2472 = vpow2.f32 %v1146_v47 }
 0x176   : > { %v1171_v48 = vsel %vm1071_vm2, %v2754_v30, 0.0 }
 0x177   : > { %1172 = vadd.xlane.f32.xlu1 %v1171_v48  ;;  %v1092_v32 = vpop.xlane.xlu0 %1091  ;;  %v1095_v59 = vpop.xlane.xlu1 %1094  ;;  %v1269_v48 = vld [vmem:[%s2792_s26 + $0x14] sm:$0xf] }
 0x178   : > { %v1126_v35 = vsub.f32 %v2704_v7, %v1092_v32  ;;  %v1127_v60 = vsub.f32 %v2706_v9, %v1095_v59 }
 0x179   : > { %v2759_v37 = vpop.eup %2466 }
 0x17a   : > { %v1148_v38 = vmul.f32 1.442695, %v1126_v35  ;;  %v1174_v39 = vsel %vm1071_vm2, %v2759_v37, 0.0  ;;  %v1150_v40 = vmul.f32 1.442695, %v1127_v60 }
 0x17b   : > { %1175 = vadd.xlane.f32.xlu0 %v1174_v39  ;;  %v1271_v39 = vld [vmem:[%s2792_s26 + $0x1c] sm:$0xf] }
 0x17c   : > { %2474 = vpow2.f32 %v1148_v38 }
 0x17d   : > { %v2764_v41 = vpop.eup %2468  ;;  %2476 = vpow2.f32 %v1150_v40  ;;  %v1270_v40 = vld [vmem:[%s2792_s26 + $0x18] sm:$0xf] }
 0x17e   : > { %v1177_v42 = vsel %vm1071_vm2, %v2764_v41, 0.0 }
 0x17f   : > { %1178 = vadd.xlane.f32.xlu1 %v1177_v42  ;;  %v1098_v43 = vpop.xlane.xlu0 %1097  ;;  %v1101_v7 = vpop.xlane.xlu1 %1100  ;;  %v2849_v42 = vsel %vm1284_vm3, %v1271_v39, 0 }
 0x180   : > { %v1128_v44 = vsub.f32 %v2712_v19, %v1098_v43  ;;  %v1129_v9 = vsub.f32 %v2714_v21, %v1101_v7  ;;  %v2852_v43 = vsel %vm1284_vm3, %v1270_v40, 0 }
 0x181   : > { %v2769_v46 = vpop.eup %2470 }
 0x182   : > { %v2772_v50 = vpop.eup %2472  ;;  %v1152_v51 = vmul.f32 1.442695, %v1128_v44  ;;  %v1180_v52 = vsel %vm1071_vm2, %v2769_v46, 0.0  ;;  %v1154_v53 = vmul.f32 1.442695, %v1129_v9 }
 0x183   : > { %v1183_v54 = vsel %vm1071_vm2, %v2772_v50, 0.0  ;;  %1181 = vadd.xlane.f32.xlu0 %v1180_v52  ;;  %v1273_v52 = vld [vmem:[%s2792_s26 + $0x24] sm:$0xf] }
 0x184   : > { %2478 = vpow2.f32 %v1152_v51  ;;  %1184 = vadd.xlane.f32.xlu1 %v1183_v54  ;;  %v2865_v54 = vsel %vm1284_vm3, %v1273_v52, 0 }
 0x185   : > { %2480 = vpow2.f32 %v1154_v53  ;;  %v1272_v53 = vld [vmem:[%s2792_s26 + $0x20] sm:$0xf] }
 0x187   : > { %v1104_v19 = vpop.xlane.xlu0 %1103  ;;  %v1107_v55 = vpop.xlane.xlu1 %1106 }
 0x188   : > { %v1130_v56 = vsub.f32 %v2720_v31, %v1104_v19  ;;  %v1131_v57 = vsub.f32 %v2722_v33, %v1107_v55  ;;  %v2868_v19 = vsel %vm1284_vm3, %v1272_v53, 0  ;;  %v1275_v55 = vld [vmem:[%s2792_s26 + $0x2c] sm:$0xf] }
 0x189   : > { %v2779_v21 = vpop.eup %2474 }
 0x18a   : > { %v2783_v58 = vpop.eup %2476  ;;  %v1156_v62 = vmul.f32 1.442695, %v1130_v56  ;;  %v1186_v1 = vsel %vm1071_vm2, %v2779_v21, 0.0  ;;  %v1158_v31 = vmul.f32 1.442695, %v1131_v57  ;;  %v2873_v57 = vsel %vm1284_vm3, %v1275_v55, 0 }
 0x18b   : > { %v1189_v33 = vsel %vm1071_vm2, %v2783_v58, 0.0  ;;  %1187 = vadd.xlane.f32.xlu0 %v1186_v1  ;;  %v1274_v56 = vld [vmem:[%s2792_s26 + $0x28] sm:$0xf]  ;;  %v1276_v1 = vld [vmem:[%s2792_s26 + $0x30] sm:$0xf] }
 0x18c   : > { %2482 = vpow2.f32 %v1156_v62  ;;  %1190 = vadd.xlane.f32.xlu1 %v1189_v33  ;;  %v2876_v62 = vsel %vm1284_vm3, %v1274_v56, 0  ;;  %v2881_v33 = vsel %vm1284_vm3, %v1276_v1, 0 }
 0x18d   : > { %2484 = vpow2.f32 %v1158_v31  ;;  %v1277_v31 = vld [vmem:[%s2792_s26 + $0x34] sm:$0xf] }
 0x18e   : > { %v2884_v2 = vsel %vm1284_vm3, %v1277_v31, 0 }
 0x18f   : > { %v1110_v6 = vpop.xlane.xlu0 %1109  ;;  %v1113_v8 = vpop.xlane.xlu1 %1112 }
 0x190   : > { %v1132_v10 = vsub.f32 %v2728_v45, %v1110_v6  ;;  %v1133_v12 = vsub.f32 %v2730_v49, %v1113_v8  ;;  %v2814_v45 = vsel %vm1284_vm3, %v1267_v18, 0  ;;  %v2818_v49 = vsel %vm1284_vm3, %v1266_v20, 0 }
 0x191   : > { %v2803_v11 = vpop.eup %2478  ;;  %v2892_v6 = vsel %vm1284_vm3, %v1279_v4, 0 }
 0x192   : > { %v2806_v13 = vpop.eup %2480  ;;  %v1160_v14 = vmul.f32 1.442695, %v1132_v10  ;;  %v1192_v15 = vsel %vm1071_vm2, %v2803_v11, 0.0  ;;  %v1162_v16 = vmul.f32 1.442695, %v1133_v12 }
 0x193   : > { %v1195_v17 = vsel %vm1071_vm2, %v2806_v13, 0.0  ;;  %1193 = vadd.xlane.f32.xlu0 %v1192_v15 }
 0x194   : > { %2486 = vpow2.f32 %v1160_v14  ;;  %1196 = vadd.xlane.f32.xlu1 %v1195_v17 }
 0x195   : > { %2488 = vpow2.f32 %v1162_v16 }
 0x197   : > { %v1116_v22 = vpop.xlane.xlu0 %1115  ;;  %v1119_v23 = vpop.xlane.xlu1 %1118 }
 0x198   : > { %v1134_v24 = vsub.f32 %v2736_v61, %v1116_v22  ;;  %v1135_v26 = vsub.f32 %v2738_v63, %v1119_v23  ;;  %v2832_v61 = vsel %vm1284_vm3, %v1269_v48, 0  ;;  %v1268_v63 = vld [vmem:[%s2792_s26 + $0x10] sm:$0xf] }
 0x199   : > { %v2821_v25 = vpop.eup %2482  ;;  %v2836_v32 = vsel %vm1284_vm3, %v1268_v63, 0 }
 0x19a   : > { %v2824_v34 = vpop.eup %2484  ;;  %v1164_v36 = vmul.f32 1.442695, %v1134_v24  ;;  %v1198_v28 = vsel %vm1071_vm2, %v2821_v25, 0.0  ;;  %v1166_v29 = vmul.f32 1.442695, %v1135_v26 }
 0x19b   : > { %v1201_v47 = vsel %vm1071_vm2, %v2824_v34, 0.0  ;;  %1199 = vadd.xlane.f32.xlu0 %v1198_v28 }
 0x19c   : > { %2490 = vpow2.f32 %v1164_v36  ;;  %1202 = vadd.xlane.f32.xlu1 %v1201_v47 }
 0x19d   : > { %2492 = vpow2.f32 %v1166_v29 }
 0x1a1   : > { %v2838_v59 = vpop.eup %2486 }
 0x1a2   : > { %v2840_v35 = vpop.eup %2488  ;;  %v1204_v60 = vsel %vm1071_vm2, %v2838_v59, 0.0 }
 0x1a3   : > { %v1207_v38 = vsel %vm1071_vm2, %v2840_v35, 0.0  ;;  %1205 = vadd.xlane.f32.xlu0 %v1204_v60 }
 0x1a4   : > { %1208 = vadd.xlane.f32.xlu1 %v1207_v38 }
 0x1a9   : > { %v2854_v7 = vpop.eup %2490 }
 0x1aa   : > { %v2856_v44 = vpop.eup %2492  ;;  %v1210_v9 = vsel %vm1071_vm2, %v2854_v7, 0.0 }
 0x1ab   : > { %v1213_v51 = vsel %vm1071_vm2, %v2856_v44, 0.0  ;;  %1211 = vadd.xlane.f32.xlu0 %v1210_v9 }
 0x1ac   : > { %1214 = vadd.xlane.f32.xlu1 %v1213_v51 }
 0x1fc   : > { %v1170_v8 = vpop.xlane.xlu0 %1169 }
 0x1fd   : > { %2494 = vrcp.f32 %v1170_v8 }
 0x200   : > { %v1173_v10 = vpop.xlane.xlu1 %1172 }
 0x201   : > { %2496 = vrcp.f32 %v1173_v10 }
 0x204   : > { %v1176_v12 = vpop.xlane.xlu0 %1175 }
 0x205   : > { %2498 = vrcp.f32 %v1176_v12 }
 0x208   : > { %v1179_v14 = vpop.xlane.xlu1 %1178 }
 0x209   : > { %2500 = vrcp.f32 %v1179_v14 }
 0x20a   : > { %v2495_v15 = vpop.eup %2494 }
 0x20b   : > { %v1217_v16 = vmul.f32 %v2495_v15, %v2749_v27 }
 0x20c   : > { %v1182_v17 = vpop.xlane.xlu0 %1181 }
 0x20d   : > { %v1185_v18 = vpop.xlane.xlu1 %1184  ;;  %2502 = vrcp.f32 %v1182_v17  ;;  %v1248_v20 = vpack.c.bf16 %v1217_v16, %v1217_v16 }
 0x20e   : > { %v2497_v22 = vpop.eup %2496  ;;  %2504 = vrcp.f32 %v1185_v18 }
 0x20f   : > { %2343 = vmatmul.mubr.msk.bf16.vlgmr.msra.gmra.mxu0 %vm1280_vm4, %v1248_v20  ;;  %v1219_v23 = vmul.f32 %v2497_v22, %v2754_v30 }
 0x210   : > { %2353 = vmatpush3.bf16.msra.mxu0 %v2818_v49  ;;  %2354 = vmatprep.mubr.msk.bf16.mxu0 %vm2535_vm0, %v2534_v0 }
 0x211   : > { %v1249_v24 = vpack.c.bf16 %v1219_v23, %v1219_v23  ;;  %2364 = vmatprep.subr.bf16.mxu0 %v2534_v0 }
 0x212   : > { %v2499_v27 = vpop.eup %2498 }
 0x213   : > { %2349 = vmatmul.mubr.msk.bf16.vlgmr.msra.gmra.mxu1 %vm1280_vm4, %v1249_v24  ;;  %v1221_v26 = vmul.f32 %v2499_v27, %v2759_v37 }
 0x214   : > { %2359 = vmatpush3.bf16.msra.mxu1 %v2814_v45  ;;  %v1188_v36 = vpop.xlane.xlu0 %1187  ;;  %2360 = vmatprep.mubr.msk.bf16.mxu1 %vm2535_vm0, %v2534_v0 }
 0x215   : > { %v1191_v30 = vpop.xlane.xlu1 %1190  ;;  %2506 = vrcp.f32 %v1188_v36  ;;  %v1250_v49 = vpack.c.bf16 %v1221_v26, %v1221_v26  ;;  %2370 = vmatprep.subr.bf16.mxu1 %v2534_v0 }
 0x216   : > { %v2501_v28 = vpop.eup %2500  ;;  %2508 = vrcp.f32 %v1191_v30 }
 0x217   : > { %2355 = vmatmul.mubr.msk.bf16.vlgmr.msra.gmra.mxu0 %vm1280_vm4, %v1250_v49  ;;  %v1223_v29 = vmul.f32 %v2501_v28, %v2764_v41 }
 0x218   : > { %2365 = vmatpush3.bf16.msra.mxu0 %v2836_v32  ;;  %2366 = vmatprep.mubr.msk.bf16.mxu0 %vm2535_vm0, %v2534_v0 }
 0x219   : > { %v1251_v37 = vpack.c.bf16 %v1223_v29, %v1223_v29  ;;  %2376 = vmatprep.subr.bf16.mxu0 %v2534_v0 }
 0x21a   : > { %v2503_v45 = vpop.eup %2502 }
 0x21b   : > { %v2505_v47 = vpop.eup %2504  ;;  %2361 = vmatmul.mubr.msk.bf16.vlgmr.msra.gmra.mxu1 %vm1280_vm4, %v1251_v37  ;;  %v1225_v48 = vmul.f32 %v2503_v45, %v2769_v46 }
 0x21c   : > { %2371 = vmatpush3.bf16.msra.mxu1 %v2832_v61  ;;  %v1194_v63 = vpop.xlane.xlu0 %1193  ;;  %2372 = vmatprep.mubr.msk.bf16.mxu1 %vm2535_vm0, %v2534_v0  ;;  %v1227_v60 = vmul.f32 %v2505_v47, %v2772_v50 }
 0x21d   : > { %v1197_v41 = vpop.xlane.xlu1 %1196  ;;  %2510 = vrcp.f32 %v1194_v63  ;;  %v1252_v32 = vpack.c.bf16 %v1225_v48, %v1225_v48  ;;  %2382 = vmatprep.subr.bf16.mxu1 %v2534_v0 }
 0x21e   : > { %2512 = vrcp.f32 %v1197_v41  ;;  %v1253_v46 = vpack.c.bf16 %v1227_v60, %v1227_v60 }
 0x21f   : > { %2367 = vmatmul.mubr.msk.bf16.vlgmr.msra.gmra.mxu0 %vm1280_vm4, %v1252_v32 }
 0x220   : > { %2377 = vmatpush3.bf16.msra.mxu0 %v2852_v43  ;;  %2378 = vmatprep.mubr.msk.bf16.mxu0 %vm2535_vm0, %v2534_v0 }
 0x221   : > { %2388 = vmatprep.subr.bf16.mxu0 %v2534_v0 }
 0x222   : > { %v2507_v61 = vpop.eup %2506 }
 0x223   : > { %v2509_v38 = vpop.eup %2508  ;;  %2373 = vmatmul.mubr.msk.bf16.vlgmr.msra.gmra.mxu1 %vm1280_vm4, %v1253_v46  ;;  %v1229_v39 = vmul.f32 %v2507_v61, %v2779_v21 }
 0x224   : > { %2383 = vmatpush3.bf16.msra.mxu1 %v2849_v42  ;;  %v1200_v50 = vpop.xlane.xlu0 %1199  ;;  %2384 = vmatprep.mubr.msk.bf16.mxu1 %vm2535_vm0, %v2534_v0  ;;  %v1231_v9 = vmul.f32 %v2509_v38, %v2783_v58 }
 0x225   : > { %v1203_v40 = vpop.xlane.xlu1 %1202  ;;  %2514 = vrcp.f32 %v1200_v50  ;;  %v1254_v43 = vpack.c.bf16 %v1229_v39, %v1229_v39  ;;  %2394 = vmatprep.subr.bf16.mxu1 %v2534_v0 }
 0x226   : > { %2516 = vrcp.f32 %v1203_v40  ;;  %v1255_v21 = vpack.c.bf16 %v1231_v9, %v1231_v9 }
 0x227   : > { %2379 = vmatmul.mubr.msk.bf16.vlgmr.msra.gmra.mxu0 %vm1280_vm4, %v1254_v43 }
 0x228   : > { %2389 = vmatpush3.bf16.msra.mxu0 %v2868_v19  ;;  %2390 = vmatprep.mubr.msk.bf16.mxu0 %vm2535_vm0, %v2534_v0 }
 0x229   : > { %2400 = vmatprep.subr.bf16.mxu0 %v2534_v0 }
 0x22a   : > { %v2511_v42 = vpop.eup %2510 }
 0x22b   : > { %v2513_v51 = vpop.eup %2512  ;;  %2385 = vmatmul.mubr.msk.bf16.vlgmr.msra.gmra.mxu1 %vm1280_vm4, %v1255_v21  ;;  %v1233_v52 = vmul.f32 %v2511_v42, %v2803_v11 }
 0x22c   : > { %2395 = vmatpush3.bf16.msra.mxu1 %v2865_v54  ;;  %v1206_v58 = vpop.xlane.xlu0 %1205  ;;  %2396 = vmatprep.mubr.msk.bf16.mxu1 %vm2535_vm0, %v2534_v0  ;;  %v1235_v55 = vmul.f32 %v2513_v51, %v2806_v13 }
 0x22d   : > { %v1209_v53 = vpop.xlane.xlu1 %1208  ;;  %2518 = vrcp.f32 %v1206_v58  ;;  %v1256_v19 = vpack.c.bf16 %v1233_v52, %v1233_v52  ;;  %2406 = vmatprep.subr.bf16.mxu1 %v2534_v0 }
 0x22e   : > { %2520 = vrcp.f32 %v1209_v53  ;;  %v1257_v11 = vpack.c.bf16 %v1235_v55, %v1235_v55 }
 0x22f   : > { %2391 = vmatmul.mubr.msk.bf16.vlgmr.msra.gmra.mxu0 %vm1280_vm4, %v1256_v19 }
 0x230   : > { %2401 = vmatpush3.bf16.msra.mxu0 %v2876_v62  ;;  %2402 = vmatprep.mubr.msk.bf16.mxu0 %vm2535_vm0, %v2534_v0 }
 0x231   : > { %2412 = vmatprep.subr.bf16.mxu0 %v2534_v0 }
 0x232   : > { %v2515_v54 = vpop.eup %2514 }
 0x233   : > { %v2517_v56 = vpop.eup %2516  ;;  %2397 = vmatmul.mubr.msk.bf16.vlgmr.msra.gmra.mxu1 %vm1280_vm4, %v1257_v11  ;;  %v1237_v1 = vmul.f32 %v2515_v54, %v2821_v25 }
 0x234   : > { %2407 = vmatpush3.bf16.msra.mxu1 %v2873_v57  ;;  %v1212_v13 = vpop.xlane.xlu0 %1211  ;;  %2408 = vmatprep.mubr.msk.bf16.mxu1 %vm2535_vm0, %v2534_v0  ;;  %v1239_v3 = vmul.f32 %v2517_v56, %v2824_v34 }
 0x235   : > { %v1215_v31 = vpop.xlane.xlu1 %1214  ;;  %2522 = vrcp.f32 %v1212_v13  ;;  %v1258_v62 = vpack.c.bf16 %v1237_v1, %v1237_v1  ;;  %2418 = vmatprep.subr.bf16.mxu1 %v2534_v0 }
 0x236   : > { %2524 = vrcp.f32 %v1215_v31  ;;  %v1259_v25 = vpack.c.bf16 %v1239_v3, %v1239_v3 }
 0x237   : > { %2403 = vmatmul.mubr.msk.bf16.vlgmr.msra.gmra.mxu0 %vm1280_vm4, %v1258_v62 }
 0x238   : > { %2413 = vmatpush3.bf16.msra.mxu0 %v2881_v33  ;;  %2414 = vmatprep.mubr.msk.bf16.mxu0 %vm2535_vm0, %v2534_v0 }
 0x239   : > { %2424 = vmatprep.subr.bf16.mxu0 %v2534_v0 }
 0x23a   : > { %v2519_v57 = vpop.eup %2518 }
 0x23b   : > { %v2521_v4 = vpop.eup %2520  ;;  %2409 = vmatmul.mubr.msk.bf16.vlgmr.msra.gmra.mxu1 %vm1280_vm4, %v1259_v25  ;;  %v1241_v8 = vmul.f32 %v2519_v57, %v2838_v59 }
 0x23c   : > { %2419 = vmatpush3.bf16.msra.mxu1 %v2884_v2  ;;  %2420 = vmatprep.mubr.msk.bf16.mxu1 %vm2535_vm0, %v2534_v0  ;;  %v1243_v33 = vmul.f32 %v2521_v4, %v2840_v35 }
 0x23d   : > { %v1260_v34 = vpack.c.bf16 %v1241_v8, %v1241_v8  ;;  %2430 = vmatprep.subr.bf16.mxu1 %v2534_v0 }
 0x23e   : > { %v1261_v10 = vpack.c.bf16 %v1243_v33, %v1243_v33 }
 0x23f   : > { %2415 = vmatmul.mubr.msk.bf16.vlgmr.msra.gmra.mxu0 %vm1280_vm4, %v1260_v34 }
 0x240   : > { %2425 = vmatpush3.bf16.msra.mxu0 %v2889_v5  ;;  %2426 = vmatprep.mubr.msk.bf16.mxu0 %vm2535_vm0, %v2534_v0 }
 0x242   : > { %v2523_v59 = vpop.eup %2522 }
 0x243   : > { %v2525_v12 = vpop.eup %2524  ;;  %2421 = vmatmul.mubr.msk.bf16.vlgmr.msra.gmra.mxu1 %vm1280_vm4, %v1261_v10  ;;  %v1245_v2 = vmul.f32 %v2523_v59, %v2854_v7 }
 0x244   : > { %2431 = vmatpush3.bf16.msra.mxu1 %v2892_v6  ;;  %2432 = vmatprep.mubr.msk.bf16.mxu1 %vm2535_vm0, %v2534_v0  ;;  %v1247_v14 = vmul.f32 %v2525_v12, %v2856_v44 }
 0x245   : > { %v1262_v35 = vpack.c.bf16 %v1245_v2, %v1245_v2 }
 0x246   : > { %v1263_v5 = vpack.c.bf16 %v1247_v14, %v1247_v14 }
 0x247   : > { %2427 = vmatmul.mubr.msk.bf16.vlgmr.msra.gmra.mxu0 %vm1280_vm4, %v1262_v35 }
 0x24b   : > { %2433 = vmatmul.mubr.msk.bf16.vlgmr.msra.gmra.mxu1 %vm1280_vm4, %v1263_v5 }
 0x2cf   : > { %v1322_v0 = vpop.f32.mrf.mxu0 }
 0x2d0   : > { %2019 = vst.msk [vmem:[%s2985_s29] sm:$0xf] %vm2018_vm5, %v1322_v0 }
 0x2d1   : > { %v2344_v7 = vpop.f32.mrf.mxu0 }
 0x2d3   : > { %v1325_v44 = vpop.f32.mrf.mxu0  ;;  %v1368_v6 = vpop.f32.mrf.mxu1 }
 0x2d4   : > { %2020 = vst.msk [vmem:[%s2985_s29 + $0x4] sm:$0xf] %vm2018_vm5, %v1368_v6 }
 0x2d5   : > { %v2345_v15 = vpop.f32.mrf.mxu0  ;;  %v2350_v16 = vpop.f32.mrf.mxu1 }
 0x2d7   : > { %v1371_v17 = vpop.f32.mrf.mxu1  ;;  %v1414_v18 = vpop.f32.mrf.mxu0 }
 0x2d8   : > { %2021 = vst.msk [vmem:[%s2985_s29 + $0x8] sm:$0xf] %vm2018_vm5, %v1414_v18 }
 0x2d9   : > { %v2351_v20 = vpop.f32.mrf.mxu1  ;;  %v2356_v22 = vpop.f32.mrf.mxu0 }
 0x2db   : > { %v1417_v23 = vpop.f32.mrf.mxu0  ;;  %v1460_v24 = vpop.f32.mrf.mxu1 }
 0x2dc   : > { %2022 = vst.msk [vmem:[%s2985_s29 + $0xc] sm:$0xf] %vm2018_vm5, %v1460_v24 }
 0x2dd   : > { %v2357_v27 = vpop.f32.mrf.mxu0  ;;  %v2362_v26 = vpop.f32.mrf.mxu1 }
 0x2df   : > { %v1463_v36 = vpop.f32.mrf.mxu1  ;;  %v1506_v30 = vpop.f32.mrf.mxu0 }
 0x2e0   : > { %2023 = vst.msk [vmem:[%s2985_s29 + $0x10] sm:$0xf] %vm2018_vm5, %v1506_v30 }
 0x2e1   : > { %v2363_v49 = vpop.f32.mrf.mxu1  ;;  %v2368_v28 = vpop.f32.mrf.mxu0 }
 0x2e3   : > { %v1509_v29 = vpop.f32.mrf.mxu0  ;;  %v1552_v37 = vpop.f32.mrf.mxu1 }
 0x2e4   : > { %2024 = vst.msk [vmem:[%s2985_s29 + $0x14] sm:$0xf] %vm2018_vm5, %v1552_v37 }
 0x2e5   : > { %v2369_v45 = vpop.f32.mrf.mxu0  ;;  %v2374_v47 = vpop.f32.mrf.mxu1 }
 0x2e7   : > { %v1555_v48 = vpop.f32.mrf.mxu1  ;;  %v1598_v63 = vpop.f32.mrf.mxu0 }
 0x2e8   : > { %2025 = vst.msk [vmem:[%s2985_s29 + $0x18] sm:$0xf] %vm2018_vm5, %v1598_v63 }
 0x2e9   : > { %v2375_v41 = vpop.f32.mrf.mxu1  ;;  %v2380_v32 = vpop.f32.mrf.mxu0 }
 0x2eb   : > { %v1601_v60 = vpop.f32.mrf.mxu0  ;;  %v1644_v46 = vpop.f32.mrf.mxu1 }
 0x2ec   : > { %2026 = vst.msk [vmem:[%s2985_s29 + $0x1c] sm:$0xf] %vm2018_vm5, %v1644_v46 }
 0x2ed   : > { %v2381_v61 = vpop.f32.mrf.mxu0  ;;  %v2386_v38 = vpop.f32.mrf.mxu1 }
 0x2ef   : > { %v1647_v39 = vpop.f32.mrf.mxu1  ;;  %v1690_v50 = vpop.f32.mrf.mxu0 }
 0x2f0   : > { %2027 = vst.msk [vmem:[%s2985_s29 + $0x20] sm:$0xf] %vm2018_vm5, %v1690_v50 }
 0x2f1   : > { %v2387_v40 = vpop.f32.mrf.mxu1  ;;  %v2392_v43 = vpop.f32.mrf.mxu0 }
 0x2f3   : > { %v1693_v9 = vpop.f32.mrf.mxu0  ;;  %v1736_v21 = vpop.f32.mrf.mxu1 }
 0x2f4   : > { %2028 = vst.msk [vmem:[%s2985_s29 + $0x24] sm:$0xf] %vm2018_vm5, %v1736_v21 }
 0x2f5   : > { %v2393_v42 = vpop.f32.mrf.mxu0  ;;  %v2398_v51 = vpop.f32.mrf.mxu1 }
 0x2f7   : > { %v1739_v52 = vpop.f32.mrf.mxu1  ;;  %v1782_v58 = vpop.f32.mrf.mxu0 }
 0x2f8   : > { %2029 = vst.msk [vmem:[%s2985_s29 + $0x28] sm:$0xf] %vm2018_vm5, %v1782_v58 }
 0x2f9   : > { %v2399_v53 = vpop.f32.mrf.mxu1  ;;  %v2404_v19 = vpop.f32.mrf.mxu0 }
 0x2fb   : > { %v1785_v55 = vpop.f32.mrf.mxu0  ;;  %v1828_v11 = vpop.f32.mrf.mxu1 }
 0x2fc   : > { %2030 = vst.msk [vmem:[%s2985_s29 + $0x2c] sm:$0xf] %vm2018_vm5, %v1828_v11 }
 0x2fd   : > { %v2405_v54 = vpop.f32.mrf.mxu0  ;;  %v2410_v56 = vpop.f32.mrf.mxu1 }
 0x2ff   : > { %v1831_v1 = vpop.f32.mrf.mxu1  ;;  %v1874_v13 = vpop.f32.mrf.mxu0 }
 0x300   : > { %2031 = vst.msk [vmem:[%s2985_s29 + $0x30] sm:$0xf] %vm2018_vm5, %v1874_v13 }
 0x301   : > { %v2411_v31 = vpop.f32.mrf.mxu1  ;;  %v2416_v62 = vpop.f32.mrf.mxu0 }
 0x303   : > { %v1877_v3 = vpop.f32.mrf.mxu0  ;;  %v1920_v25 = vpop.f32.mrf.mxu1 }
 0x304   : > { %2032 = vst.msk [vmem:[%s2985_s29 + $0x34] sm:$0xf] %vm2018_vm5, %v1920_v25 }
 0x305   : > { %v2417_v57 = vpop.f32.mrf.mxu0  ;;  %v2422_v4 = vpop.f32.mrf.mxu1 }
 0x307   : > { %v1923_v8 = vpop.f32.mrf.mxu1  ;;  %v1966_v34 = vpop.f32.mrf.mxu0 }
 0x308   : > { %2033 = vst.msk [vmem:[%s2985_s29 + $0x38] sm:$0xf] %vm2018_vm5, %v1966_v34 }
 0x309   : > { %v2423_v33 = vpop.f32.mrf.mxu1  ;;  %v2428_v10 = vpop.f32.mrf.mxu0 }
 0x30b   : > { %v1969_v59 = vpop.f32.mrf.mxu0  ;;  %v2012_v12 = vpop.f32.mrf.mxu1 }
 0x30c   : > { %2034 = vst.msk [vmem:[%s2985_s29 + $0x3c] sm:$0xf] %vm2018_vm5, %v2012_v12 }
 0x30d   : > { %v2429_v2 = vpop.f32.mrf.mxu0  ;;  %v2434_v35 = vpop.f32.mrf.mxu1 }
 0x30f   : > { %v2015_v14 = vpop.f32.mrf.mxu1 }
 0x311   : > { %v2435_v5 = vpop.f32.mrf.mxu1 }
 0x312 PF: > { %s13_s12 = sadd.s32 1, %s2532_s12  }
 0x313   : > { %p10_p4 = scmp.ge.s32.totalorder %s13_s12, 4  }
 0x315   :  { %12 = sbr.rel (!%p10_p4) target bundleno = 1 (0x1), region = 68 }

// kernel: vit_forward.28
= control target key start
LH: loop header
LB: loop body
LE: loop exit
PB: predicated region body
PF: predicated region fallthrough
CT: control target
= control target key end

     0   :  { %vm26_vm0 = vcmask 523264   ;;  %vm103_vm5 = vcmask 1041409   ;;  %vm106_vm6 = vcmask 517120   ;;  %s170_s0 = inlined_call_operand.vmem [shape: f32[2,16,64], index: 0, kind: input, shape index: {}]   ;;  %s171_s1 = inlined_call_operand.vmem [shape: f32[1,64], index: 1, kind: input, shape index: {}]   ;;  %s172_s2 = inlined_call_operand.vmem [shape: f32[2,64], index: 2, kind: output, shape index: {}]  }
   0x1   :  { %v139_v0 = vld [vmem:[%s170_s0 + $0x10] sm:$0xff]  ;;  %v112_v1 = vld [vmem:[%s171_s1] ss:$0 sm:$0xff]  ;;  %v14_v5 = vld [vmem:[%s170_s0 + $0x18] sm:$0xff] }
   0x2   :  { %v147_v2 = vld [vmem:[%s170_s0] sm:$0xff]  ;;  %v24_v3 = vmul.f32 %v112_v1, %v139_v0  ;;  %v12_v6 = vld [vmem:[%s170_s0 + $0x8] sm:$0xff]  ;;  %v25_v7 = vmul.f32 %v112_v1, %v14_v5 }
   0x3   :  { %v22_v4 = vmul.f32 %v112_v1, %v147_v2  ;;  %v23_v8 = vmul.f32 %v112_v1, %v12_v6 }
   0x4   :  { %v33_v9 = vsel %vm26_vm0, %v24_v3, 0.0  ;;  %v36_v11 = vsel %vm26_vm0, %v25_v7, 0.0 }
   0x5   :  { %v27_v10 = vsel %vm26_vm0, %v22_v4, 0.0  ;;  %34 = vadd.xlane.f32.xlu1 %v33_v9  ;;  %v30_v12 = vsel %vm26_vm0, %v23_v8, 0.0 }
   0x6   :  { %28 = vadd.xlane.f32.xlu0 %v27_v10 }
   0x9   :  { %37 = vadd.xlane.f32.xlu1 %v36_v11 }
   0xa   :  { %31 = vadd.xlane.f32.xlu0 %v30_v12 }
  0x8e   :  { %v35_v13 = vpop.xlane.xlu1 %34 }
  0x8f   :  { %v29_v14 = vpop.xlane.xlu0 %28  ;;  %v41_v17 = vmul.f32 %v35_v13, %v35_v13 }
  0x90   :  { %v39_v18 = vmul.f32 %v29_v14, %v29_v14 }
  0x92   :  { %v38_v15 = vpop.xlane.xlu1 %37 }
  0x93   :  { %v32_v16 = vpop.xlane.xlu0 %31  ;;  %v42_v19 = vmul.f32 %v38_v15, %v38_v15 }
  0x94   :  { %v40_v20 = vmul.f32 %v32_v16, %v32_v16 }
  0x95   :  { %v50_v21 = vadd.f32 %v42_v19, %v41_v17 }
  0x96   :  { %v43_v22 = vadd.f32 %v40_v20, %v39_v18 }
  0x97   :  { %v51_v23 = vrot.slane %v50_v21, 4 }
  0x98   :  { %v44_v24 = vrot.slane %v43_v22, 4 }
  0x99   :  { %v52_v25 = vadd.f32 %v51_v23, %v50_v21 }
  0x9a   :  { %v45_v26 = vadd.f32 %v44_v24, %v43_v22 }
  0x9b   :  { %v53_v27 = vrot.slane %v52_v25, 2 }
  0x9c   :  { %v46_v28 = vrot.slane %v45_v26, 2 }
  0x9d   :  { %v54_v29 = vadd.f32 %v53_v27, %v52_v25 }
  0x9e   :  { %v47_v30 = vadd.f32 %v46_v28, %v45_v26 }
  0x9f   :  { %v55_v31 = vrot.slane %v54_v29, 1 }
  0xa0   :  { %v48_v32 = vrot.slane %v47_v30, 1 }
  0xa1   :  { %v56_v33 = vadd.f32 %v55_v31, %v54_v29 }
  0xa2   :  { %v49_v34 = vadd.f32 %v48_v32, %v47_v30 }
  0xa3   :  { %113 = vrsqrt.f32 %v56_v33  ;;  %vm66_vm1 = vcmp.eq.f32.partialorder %v56_v33, inf  ;;  %v69_v38 = vand.u32 2147483648, %v56_v33  ;;  %vm68_vm2 = vcmp.eq.f32.partialorder %v56_v33, 0.0 }
  0xa4   :  { %115 = vrsqrt.f32 %v49_v34  ;;  %vm59_vm3 = vcmp.eq.f32.partialorder %v49_v34, inf  ;;  %v62_v41 = vand.u32 2147483648, %v49_v34  ;;  %vm61_vm4 = vcmp.eq.f32.partialorder %v49_v34, 0.0 }
  0xb0   :  { %v114_v35 = vpop.eup %113 }
  0xb1   :  { %v116_v36 = vpop.eup %115  ;;  %v65_v37 = vmul.f32 %v114_v35, %v56_v33 }
  0xb2   :  { %v58_v39 = vmul.f32 %v116_v36, %v49_v34 }
  0xb3   :  { %v67_v40 = vsel %vm66_vm1, %v56_v33, %v65_v37 }
  0xb4   :  { %v70_v42 = vsel %vm68_vm2, %v69_v38, %v67_v40  ;;  %v60_v43 = vsel %vm59_vm3, %v49_v34, %v58_v39 }
  0xb5   :  { %v72_v44 = vmax.f32 %v70_v42, 1e-12  ;;  %v63_v45 = vsel %vm61_vm4, %v62_v41, %v60_v43 }
  0xb6   :  { %v71_v46 = vmax.f32 %v63_v45, 1e-12 }
  0xb7   :  { %117 = vrcp.f32 %v72_v44 }
  0xb8   :  { %119 = vrcp.f32 %v71_v46 }
  0xc4   :  { %v118_v47 = vpop.eup %117 }
  0xc5   :  { %v120_v48 = vpop.eup %119  ;;  %v77_v49 = vmul.f32 %v118_v47, %v35_v13  ;;  %v78_v50 = vmul.f32 %v118_v47, %v38_v15 }
  0xc6   :  { %v74_v51 = vmul.f32 %v120_v48, %v29_v14  ;;  %v75_v52 = vmul.f32 %v120_v48, %v32_v16 }
  0xc7   :  { %v81_v53 = vmul.f32 %v77_v49, %v139_v0  ;;  %v82_v54 = vmul.f32 %v78_v50, %v14_v5 }
  0xc8   :  { %v79_v55 = vmul.f32 %v74_v51, %v147_v2  ;;  %v80_v56 = vmul.f32 %v75_v52, %v12_v6 }
  0xc9   :  { %v92_v57 = vsel %vm26_vm0, %v81_v53, 0.0  ;;  %v93_v58 = vsel %vm26_vm0, %v82_v54, 0.0 }
  0xca   :  { %v94_v59 = vadd.f32 %v93_v58, %v92_v57  ;;  %v83_v60 = vsel %vm26_vm0, %v79_v55, 0.0  ;;  %v84_v61 = vsel %vm26_vm0, %v80_v56, 0.0 }
  0xcb   :  { %v85_v62 = vadd.f32 %v84_v61, %v83_v60 }
  0xcc   :  { %v95_v63 = vrot.slane %v94_v59, 4 }
  0xcd   :  { %v86_v1 = vrot.slane %v85_v62, 4 }
  0xce   :  { %v96_v3 = vadd.f32 %v95_v63, %v94_v59 }
  0xcf   :  { %v87_v4 = vadd.f32 %v86_v1, %v85_v62 }
  0xd0   :  { %v97_v7 = vrot.slane %v96_v3, 2 }
  0xd1   :  { %v88_v0 = vrot.slane %v87_v4, 2 }
  0xd2   :  { %v98_v5 = vadd.f32 %v97_v7, %v96_v3 }
  0xd3   :  { %v89_v8 = vadd.f32 %v88_v0, %v87_v4 }
  0xd4   :  { %v99_v2 = vrot.slane %v98_v5, 1 }
  0xd5   :  { %v90_v6 = vrot.slane %v89_v8, 1 }
  0xd6   :  { %v100_v9 = vadd.f32 %v99_v2, %v98_v5 }
  0xd7   :  { %v91_v10 = vadd.f32 %v90_v6, %v89_v8 }
  0xd9   :  { %v104_v11 = vsel %vm103_vm5, %v100_v9, %v91_v10 }
  0xda   :  { %107 = vst.msk [vmem:[%s172_s2] sm:$0x3] %vm106_vm6, %v104_v11 }

// kernel: vit_forward.29
= control target key start
LH: loop header
LB: loop body
LE: loop exit
PB: predicated region body
PF: predicated region fallthrough
CT: control target
= control target key end

     0   :  { %v174_v1 = vmov 0.0   ;;  %vm175_vm0 = vmmov 0   ;;  %s228_s0 = inlined_call_operand.vmem [shape: bf16[2,64], index: 0, kind: input, shape index: {}]   ;;  %s229_s1 = inlined_call_operand.vmem [shape: bf16[64,5], index: 1, kind: input, shape index: {}]   ;;  %s230_s2 = inlined_call_operand.vmem [shape: f32[1,5], index: 2, kind: input, shape index: {}]   ;;  %s231_s3 = inlined_call_operand.vmem [shape: f32[1,64], index: 3, kind: input, shape index: {}]   ;;  %s232_s4 = inlined_call_operand.vmem [shape: f32[1,64], index: 4, kind: input, shape index: {}]   ;;  %s233_s5 = inlined_call_operand.hbm [shape: f32[2,5], index: 5, kind: output, shape index: {}]  }
   0x1   :  { %v148_v0 = vld [vmem:[%s229_s1 + $0x18] sm:$0xff]   ;;  %133 = vmatprep.subr.bf16.mxu0 %v174_v1  ;;  %v149_v2 = vld [vmem:[%s229_s1 + $0x10] sm:$0xff]   ;;  %141 = vmatprep.mubr.msk.bf16.mxu0 %vm175_vm0, %v174_v1 }
   0x2   :  { %134 = vmatpush3.bf16.msra.mxu0 %v148_v0 }
   0x3   :  { %135 = vmatprep.subr.bf16.mxu0 %v174_v1 }
   0x4   :  { %10 = vsyncpa [#allocation3], 0  ;;  %v150_v3 = vld [vmem:[%s229_s1 + $0x8] sm:$0xff]   ;;  %v151_v4 = vld [vmem:[%s229_s1] sm:$0xff]   ;;  %vm62_vm1 = vcmask 523264   ;;  %s176_s28 = smov [#allocation2]  }
   0x5   :  { %v22_v5 = vld [vmem:[%s228_s0] sm:$0x1]  ;;  %s114_s29 = sshll.u32 %s176_s28, 4  ;;  %vm106_vm2 = vcmask 33792   ;;  %s115_s29 = int_to_ptr.vmem [resolvable:$true] %s114_s29 }
   0x6   :  { %136 = vmatpush3.bf16.msra.mxu0 %v149_v2  ;;  %v122_v6 = vld [vmem:[%s230_s2] ss:$0 sm:$0xff]  ;;  %s152_s1 = scalar_lea.vmem %s115_s29, 32  ;;  %p157_p1 = scmp.lt.s32.totalorder %s115_s29, %s115_s29 }
   0x7   :  { %137 = vmatprep.subr.bf16.mxu0 %v174_v1  ;;  %p153_p0 = scmp.ne.s32.totalorder %s115_s29, %s152_s1  ;;  %p158_p2 = scmp.lt.s32.totalorder %s152_s1, %s152_s1 }
   0x9   :  { %p159_p3 = por %p158_p2, %p157_p1 }
   0xa   :  { %138 = vmatpush3.bf16.msra.mxu0 %v150_v3 }
   0xb   :  { %139 = vmatprep.subr.bf16.mxu0 %v174_v1  ;;  %p160_p4 = pnand %p159_p3, %p153_p0 }
   0xe   :  { %140 = vmatpush3.bf16.msra.mxu0 %v151_v4 }
  0x11   :  { %142 = vmatmul.mubr.msk.bf16.vlgmr.msra.gmra.mxu0 %vm62_vm1, %v22_v5 }
  0xd1   :  { %v100_v7 = vpop.f32.mrf.mxu0 }
  0xd2   :  { %v101_v8 = vadd.f32 %v122_v6, %v100_v7 }
  0xd3   :  { %v143_v9 = vpop.f32.mrf.mxu0 }
  0xd4   :  { %107 = vst.msk [vmem:[#allocation2] sm:$0x3] %vm106_vm2, %v101_v8 }
  0xd5   :  { %v103_v10 = vpop.f32.mrf.mxu0 }
  0xd6   :  { %163 = shalt.err (!%p160_p4)
}
  0xd7   :  { %117 = dma.vmem_to_hbm [thread:$0]  %s115_s29, 32, %s233_s5, [#allocation3]   ;;  %v144_v11 = vpop.f32.mrf.mxu0 }
  0xd8   :  { %172 = dma.done.wait [#allocation3], 32  }
  0xd9   :  { %173 = vsyncadd [#allocation3], 4294967264 }
  0xda   :  { %121 = vsyncpa [#allocation3], 1 }

</bundles_post_ra>
